<compile_context>
chip_gen: v6e
topology: v6e:2x2x1
jax: 0.10.0
libtpu: 0.0.40
codegen_flags: <defaults>
</compile_context>

<pallas_src>
import functools

import jax
import jax.numpy as jnp
from jax.experimental import pallas as pl
from jax.experimental.pallas import tpu as pltpu

C1P = 8    # layer-1 input channels padded 3 -> 8   (row width W*8  = 128 lanes)
CP = 16    # hidden / output channels padded 12/3 -> 16 (row width W*16 = 256)


# ----------------------------------------------------------------------------
# Wrapper-side weight layout transforms (tiny, traced into the same jit).
# ----------------------------------------------------------------------------
def _make_band(w_hwio, width, pad, cin_pad, cout_pad):
    """Tap-folded block-Toeplitz band for a stride-1 'same' conv along W.

    band[kh*W*cin_pad + wi*cin_pad + ci, wo*cout_pad + co]
        = w[kh, wi + pad - wo, ci, co]        (0 outside kernel / padded chans)

    so  out[h, wo*cout_pad+co] = LHS[h, :] @ band  with
        LHS[h, :] = concat_kh( x_haloed[h+kh, :] ), lanes = wi*cin_pad + ci.
    The W zero-padding of the conv is folded into the band; the H halo is
    handled by pre-zeroed scratch rows / the pre-padded input slab.
    """
    KH, KW, Cin, Cout = w_hwio.shape
    wi = jnp.arange(width)[:, None]
    wo = jnp.arange(width)[None, :]
    kw = wi + pad - wo                                    # (W, W)
    valid = (kw >= 0) & (kw < KW)
    g = w_hwio[:, jnp.clip(kw, 0, KW - 1)]                # (KH, wi, wo, ci, co)
    g = jnp.where(valid[None, :, :, None, None], g, 0.0)
    g = jnp.transpose(g, (0, 1, 3, 2, 4))                 # (KH, wi, ci, wo, co)
    g = jnp.pad(g, ((0, 0), (0, 0), (0, cin_pad - Cin),
                    (0, 0), (0, cout_pad - Cout)))
    return g.reshape(KH * width * cin_pad,
                     width * cout_pad).astype(jnp.float32)


def _bias_row(b, width, cout_pad):
    """(1, W*cout_pad) bias row in the lane layout wo*cout_pad + co."""
    bp = jnp.pad(b.astype(jnp.float32), (0, cout_pad - b.shape[0]))
    return jnp.tile(bp, width).reshape(1, width * cout_pad)


# ----------------------------------------------------------------------------
# The fused kernel: `ipb` images per grid step, everything in VMEM.
# ----------------------------------------------------------------------------
def _net_kernel(x_ref, w1_ref, b1_ref, w2_ref, b2_ref, w3_ref, b3_ref,
                o_ref, xp2_ref, xp3_ref, *, H, W, ipb):
    f32 = jnp.float32
    L = W * CP                                            # 256-lane rows

    # Zero the H-halo rows of the activation scratches.  A handful of tiny
    # stores; redone every step so the kernel stays correct when the grid is
    # split across TensorCores (a core may never run step 0).
    z2 = jnp.zeros((2, L), f32)
    z1 = jnp.zeros((1, L), f32)
    for i in range(ipb):
        b2o = i * (H + 4)
        xp2_ref[pl.ds(b2o, 2), :] = z2
        xp2_ref[pl.ds(b2o + 2 + H, 2), :] = z2
        b3o = i * (H + 2)
        xp3_ref[pl.ds(b3o, 1), :] = z1
        xp3_ref[pl.ds(b3o + 1 + H, 1), :] = z1

    def folded_lhs(load_plane, kh_count):
        """Stack images along M and taps along K: (ipb*H, kh_count*lanes)."""
        rows = []
        for i in range(ipb):
            plane = load_plane(i)                         # (H + halo*2, lanes)
            taps = [plane[kh:kh + H, :] for kh in range(kh_count)]
            rows.append(jnp.concatenate(taps, axis=1))
        return rows[0] if ipb == 1 else jnp.concatenate(rows, axis=0)

    # ---- layer 1: 3->12, 3x3, pad 1 (ONE matmul, K = 3*W*8 = 384) ----------
    lhs = folded_lhs(lambda i: x_ref[i], 3)               # (ipb*H, 3*W*8)
    act = jnp.dot(lhs, w1_ref[...], preferred_element_type=f32)
    act = jnp.maximum(act + b1_ref[...], 0.0)             # (ipb*H, 256)
    for i in range(ipb):
        xp2_ref[pl.ds(i * (H + 4) + 2, H), :] = act[i * H:(i + 1) * H, :]

    # ---- layer 2: 12->12, 5x5, pad 2 (ONE matmul, K = 5*W*16 = 1280) -------
    lhs = folded_lhs(lambda i: xp2_ref[pl.ds(i * (H + 4), H + 4), :], 5)
    act = jnp.dot(lhs, w2_ref[...], preferred_element_type=f32)
    act = jnp.maximum(act + b2_ref[...], 0.0)             # (ipb*H, 256)
    for i in range(ipb):
        xp3_ref[pl.ds(i * (H + 2) + 1, H), :] = act[i * H:(i + 1) * H, :]

    # ---- layer 3: 12->3, 3x3, pad 1 (ONE matmul, K = 3*W*16 = 768) ---------
    lhs = folded_lhs(lambda i: xp3_ref[pl.ds(i * (H + 2), H + 2), :], 3)
    act = jnp.dot(lhs, w3_ref[...], preferred_element_type=f32)
    act = jnp.maximum(act + b3_ref[...], 0.0)             # (ipb*H, 256)
    for i in range(ipb):                                  # lane-dense store
        o_ref[i] = act[i * H:(i + 1) * H, :]


def _images_per_step(n):
    """One grid step per TensorCore: whole batch per step on single-TC chips
    (v5e/v6e), one half of the batch per step on dual-TC v7x."""
    try:
        kind = jax.devices()[0].device_kind.lower()
    except Exception:
        kind = ""
    n_cores = 2 if ("v7" in kind or "7x" in kind) else 1
    steps = min(n, max(1, n_cores))
    return n // steps if n % steps == 0 else 1


def net_forward_pallas(params, x_nchw, *, images_per_step=None):
    N, Cin, H, W = x_nchw.shape
    assert Cin == 3
    w1, b1 = params["conv1"]
    w2, b2 = params["conv2"]
    w3, b3 = params["conv3"]

    ipb = _images_per_step(N) if images_per_step is None else images_per_step
    assert N % ipb == 0

    # Tap-folded band weights + lane-layout bias rows.
    # NOTE (VMEM guard): band bytes grow ~ KH*(W*CP)^2.  At W≈90+ the
    # double-buffered bands exceed v7x's 64 MiB VMEM (32 MiB scoped default
    # everywhere much earlier) -> tile along W and/or raise vmem_limit_bytes
    # before reusing this kernel at large image widths.
    w1b = _make_band(w1, W, 1, C1P, CP)        # (3*W*8,  W*16) = (384, 256)
    w2b = _make_band(w2, W, 2, CP, CP)         # (5*W*16, W*16) = (1280, 256)
    w3b = _make_band(w3, W, 1, CP, CP)         # (3*W*16, W*16) = (768, 256)
    b1r = _bias_row(b1, W, CP)
    b2r = _bias_row(b2, W, CP)
    b3r = _bias_row(b3, W, CP)

    # Lane-dense input slab: (N, H+2, W*8) f32 — NHWC row-flattened, channels
    # padded 3->8, H halo pre-padded with zeros (cheap XLA glue, ~6 KB/image).
    xs = jnp.transpose(x_nchw.astype(jnp.float32), (0, 2, 3, 1))   # NHWC
    xs = jnp.pad(xs, ((0, 0), (1, 1), (0, 0), (0, C1P - Cin)))
    xs = xs.reshape(N, H + 2, W * C1P)

    def _full(arr):
        nd = arr.ndim
        return pl.BlockSpec(arr.shape, lambda n, _nd=nd: (0,) * _nd)

    kernel = functools.partial(_net_kernel, H=H, W=W, ipb=ipb)
    out = pl.pallas_call(
        kernel,
        out_shape=jax.ShapeDtypeStruct((N, H, W * CP), jnp.float32),
        grid=(N // ipb,),
        in_specs=[
            pl.BlockSpec((ipb, H + 2, W * C1P), lambda n: (n, 0, 0)),
            _full(w1b), _full(b1r),
            _full(w2b), _full(b2r),
            _full(w3b), _full(b3r),
        ],
        out_specs=pl.BlockSpec((ipb, H, W * CP), lambda n: (n, 0, 0)),
        scratch_shapes=[
            pltpu.VMEM((ipb * (H + 4), W * CP), jnp.float32),  # layer-2 input
            pltpu.VMEM((ipb * (H + 2), W * CP), jnp.float32),  # layer-3 input
        ],
        compiler_params=pltpu.CompilerParams(
            dimension_semantics=("parallel",)),   # core split on v7x
    )(xs, w1b, b1r, w2b, b2r, w3b, b3r)

    # Lane-dense (H, 256) slab -> NCHW, drop padded channels, restore dtype.
    y = out.reshape(N, H, W, CP)[..., :3]
    return jnp.transpose(y, (0, 3, 1, 2)).astype(x_nchw.dtype)


# ----------------------------------------------------------------------------
# Params / reference / test harness
# ----------------------------------------------------------------------------
def init_params(key):
    """Deterministic params matching nn.Conv2d shapes (stored HWIO)."""
    def conv_init(k, cout, cin, kh, kw):
        kw_key, kb_key = jax.random.split(k)
        fan_in = cin * kh * kw
        bound = 1.0 / (fan_in ** 0.5)
        w_oihw = jax.random.uniform(kw_key, (cout, cin, kh, kw),
                                    jnp.float32, -bound, bound)
        b = jax.random.uniform(kb_key, (cout,), jnp.float32, -bound, bound)
        return jnp.transpose(w_oihw, (2, 3, 1, 0)), b      # OIHW -> HWIO

    k1, k2, k3 = jax.random.split(key, 3)
    return {
        "conv1": conv_init(k1, 12, 3, 3, 3),
        "conv2": conv_init(k2, 12, 12, 5, 5),
        "conv3": conv_init(k3, 3, 12, 3, 3),
    }


def net_reference(params, x_nchw):
    """Pure-JAX reference (lax conv) for correctness checking."""
    x = jnp.transpose(x_nchw, (0, 2, 3, 1))
    for name, pad in (("conv1", 1), ("conv2", 2), ("conv3", 1)):
        w, b = params[name]
        x = jax.lax.conv_general_dilated(
            x, w, window_strides=(1, 1),
            padding=[(pad, pad), (pad, pad)],
            dimension_numbers=("NHWC", "HWIO", "NHWC"))
        x = jnp.maximum(x + b, 0.0)
    return jnp.transpose(x, (0, 3, 1, 2))


if __name__ == "__main__":
    key = jax.random.PRNGKey(0)
    pkey, xkey = jax.random.split(key)
    params = init_params(pkey)
    x = jax.random.normal(xkey, (2, 3, 16, 16), dtype=jnp.float32)   # NCHW

    net = jax.jit(net_forward_pallas)
    out = jax.block_until_ready(net(params, x))

    ref = net_reference(params, x)
    assert out.shape == (2, 3, 16, 16), out.shape
    max_err = float(jnp.max(jnp.abs(out - ref)))
    assert jnp.allclose(out, ref, atol=2e-4, rtol=2e-4), max_err

    print("KERNEL_OK")
</pallas_src>

<mosaic_0001>
module attributes {stable_mosaic.version = 11 : i64} {
  func.func @_net_kernel(%arg0: i32, %arg1: memref<2x18x128xf32, #tpu.memory_space<vmem>>, %arg2: memref<384x256xf32, #tpu.memory_space<vmem>>, %arg3: memref<1x256xf32, #tpu.memory_space<vmem>>, %arg4: memref<1280x256xf32, #tpu.memory_space<vmem>>, %arg5: memref<1x256xf32, #tpu.memory_space<vmem>>, %arg6: memref<768x256xf32, #tpu.memory_space<vmem>>, %arg7: memref<1x256xf32, #tpu.memory_space<vmem>>, %arg8: memref<2x16x256xf32, #tpu.memory_space<vmem>>, %arg9: memref<40x256xf32, #tpu.memory_space<vmem>>, %arg10: memref<36x256xf32, #tpu.memory_space<vmem>>) attributes {dimension_semantics = [#tpu.dimension_semantics<parallel>], iteration_bounds = array<i64: 1>, scalar_prefetch = 0 : i64, scratch_operands = 2 : i64, tpu.core_type = #tpu.core_type<tc>, window_params = [{transform_indices = @transform_0, window_bounds = array<i64: 2, 18, 128>}, {pipeline_mode = #tpu.pipeline_mode<synchronous>, transform_indices = @transform_1, window_bounds = array<i64: 384, 256>}, {pipeline_mode = #tpu.pipeline_mode<synchronous>, transform_indices = @transform_2, window_bounds = array<i64: 1, 256>}, {pipeline_mode = #tpu.pipeline_mode<synchronous>, transform_indices = @transform_3, window_bounds = array<i64: 1280, 256>}, {pipeline_mode = #tpu.pipeline_mode<synchronous>, transform_indices = @transform_4, window_bounds = array<i64: 1, 256>}, {pipeline_mode = #tpu.pipeline_mode<synchronous>, transform_indices = @transform_5, window_bounds = array<i64: 768, 256>}, {pipeline_mode = #tpu.pipeline_mode<synchronous>, transform_indices = @transform_6, window_bounds = array<i64: 1, 256>}, {transform_indices = @transform_7, window_bounds = array<i64: 2, 16, 256>}]} {
    %cst = arith.constant 0.000000e+00 : f32
    %0 = vector.broadcast %cst : f32 to vector<2x256xf32>
    %cst_0 = arith.constant 0.000000e+00 : f32
    %1 = vector.broadcast %cst_0 : f32 to vector<1x256xf32>
    %c0 = arith.constant 0 : index
    %c0_1 = arith.constant 0 : index
    %2 = vector.load %arg9[%c0, %c0_1] : memref<40x256xf32, #tpu.memory_space<vmem>>, vector<2x256xf32>
    tpu.vector_store %arg9[%c0, %c0_1], %0 {strides = array<i32>} : memref<40x256xf32, #tpu.memory_space<vmem>>, vector<2x256xf32>,
    %c18 = arith.constant 18 : index
    %c0_2 = arith.constant 0 : index
    %3 = vector.load %arg9[%c18, %c0_2] : memref<40x256xf32, #tpu.memory_space<vmem>>, vector<2x256xf32>
    tpu.vector_store %arg9[%c18, %c0_2], %0 {strides = array<i32>} : memref<40x256xf32, #tpu.memory_space<vmem>>, vector<2x256xf32>,
    %c0_3 = arith.constant 0 : index
    %c0_4 = arith.constant 0 : index
    %4 = vector.load %arg10[%c0_3, %c0_4] : memref<36x256xf32, #tpu.memory_space<vmem>>, vector<1x256xf32>
    tpu.vector_store %arg10[%c0_3, %c0_4], %1 {strides = array<i32>} : memref<36x256xf32, #tpu.memory_space<vmem>>, vector<1x256xf32>,
    %c17 = arith.constant 17 : index
    %c0_5 = arith.constant 0 : index
    %5 = vector.load %arg10[%c17, %c0_5] : memref<36x256xf32, #tpu.memory_space<vmem>>, vector<1x256xf32>
    tpu.vector_store %arg10[%c17, %c0_5], %1 {strides = array<i32>} : memref<36x256xf32, #tpu.memory_space<vmem>>, vector<1x256xf32>,
    %c20 = arith.constant 20 : index
    %c0_6 = arith.constant 0 : index
    %6 = vector.load %arg9[%c20, %c0_6] : memref<40x256xf32, #tpu.memory_space<vmem>>, vector<2x256xf32>
    tpu.vector_store %arg9[%c20, %c0_6], %0 {strides = array<i32>} : memref<40x256xf32, #tpu.memory_space<vmem>>, vector<2x256xf32>,
    %c38 = arith.constant 38 : index
    %c0_7 = arith.constant 0 : index
    %7 = vector.load %arg9[%c38, %c0_7] : memref<40x256xf32, #tpu.memory_space<vmem>>, vector<2x256xf32>
    tpu.vector_store %arg9[%c38, %c0_7], %0 {strides = array<i32>} : memref<40x256xf32, #tpu.memory_space<vmem>>, vector<2x256xf32>,
    %c18_8 = arith.constant 18 : index
    %c0_9 = arith.constant 0 : index
    %8 = vector.load %arg10[%c18_8, %c0_9] : memref<36x256xf32, #tpu.memory_space<vmem>>, vector<1x256xf32>
    tpu.vector_store %arg10[%c18_8, %c0_9], %1 {strides = array<i32>} : memref<36x256xf32, #tpu.memory_space<vmem>>, vector<1x256xf32>,
    %c35 = arith.constant 35 : index
    %c0_10 = arith.constant 0 : index
    %9 = vector.load %arg10[%c35, %c0_10] : memref<36x256xf32, #tpu.memory_space<vmem>>, vector<1x256xf32>
    tpu.vector_store %arg10[%c35, %c0_10], %1 {strides = array<i32>} : memref<36x256xf32, #tpu.memory_space<vmem>>, vector<1x256xf32>,
    %c0_11 = arith.constant 0 : index
    %c0_12 = arith.constant 0 : index
    %c0_13 = arith.constant 0 : index
    %10 = vector.load %arg1[%c0_11, %c0_12, %c0_13] : memref<2x18x128xf32, #tpu.memory_space<vmem>>, vector<1x18x128xf32>
    %11 = vector.shape_cast %10 : vector<1x18x128xf32> to vector<18x128xf32>
    %12 = vector.extract_strided_slice %11 {offsets = [0, 0], sizes = [16, 128], strides = [1, 1]} : vector<18x128xf32> to vector<16x128xf32>
    %13 = vector.extract_strided_slice %11 {offsets = [1, 0], sizes = [16, 128], strides = [1, 1]} : vector<18x128xf32> to vector<16x128xf32>
    %14 = vector.extract_strided_slice %11 {offsets = [2, 0], sizes = [16, 128], strides = [1, 1]} : vector<18x128xf32> to vector<16x128xf32>
    %15 = tpu.concatenate %12, %13, %14 in 1 : vector<16x128xf32>, vector<16x128xf32>, vector<16x128xf32> -> vector<16x384xf32>
    %c1 = arith.constant 1 : index
    %c0_14 = arith.constant 0 : index
    %c0_15 = arith.constant 0 : index
    %16 = vector.load %arg1[%c1, %c0_14, %c0_15] : memref<2x18x128xf32, #tpu.memory_space<vmem>>, vector<1x18x128xf32>
    %17 = vector.shape_cast %16 : vector<1x18x128xf32> to vector<18x128xf32>
    %18 = vector.extract_strided_slice %17 {offsets = [0, 0], sizes = [16, 128], strides = [1, 1]} : vector<18x128xf32> to vector<16x128xf32>
    %19 = vector.extract_strided_slice %17 {offsets = [1, 0], sizes = [16, 128], strides = [1, 1]} : vector<18x128xf32> to vector<16x128xf32>
    %20 = vector.extract_strided_slice %17 {offsets = [2, 0], sizes = [16, 128], strides = [1, 1]} : vector<18x128xf32> to vector<16x128xf32>
    %21 = tpu.concatenate %18, %19, %20 in 1 : vector<16x128xf32>, vector<16x128xf32>, vector<16x128xf32> -> vector<16x384xf32>
    %22 = tpu.concatenate %15, %21 in 0 : vector<16x384xf32>, vector<16x384xf32> -> vector<32x384xf32>
    %c0_16 = arith.constant 0 : index
    %c0_17 = arith.constant 0 : index
    %23 = vector.load %arg2[%c0_16, %c0_17] : memref<384x256xf32, #tpu.memory_space<vmem>>, vector<384x256xf32>
    %cst_18 = arith.constant dense<0.000000e+00> : vector<32x256xf32>
    %24 = tpu.matmul %22, %23, %cst_18 {dimension_numbers = #tpu.dot_dimension_numbers<[1], [0], [0], [1], [0, 0, 1, 1], [], []>} : vector<32x384xf32>, vector<384x256xf32>, vector<32x256xf32> -> vector<32x256xf32>
    %c0_19 = arith.constant 0 : index
    %c0_20 = arith.constant 0 : index
    %25 = vector.load %arg3[%c0_19, %c0_20] : memref<1x256xf32, #tpu.memory_space<vmem>>, vector<1x256xf32>
    %26 = vector.broadcast %25 : vector<1x256xf32> to vector<32x256xf32>
    %27 = arith.addf %24, %26 : vector<32x256xf32>
    %cst_21 = arith.constant 0.000000e+00 : f32
    %28 = vector.broadcast %cst_21 : f32 to vector<32x256xf32>
    %29 = arith.maximumf %27, %28 : vector<32x256xf32>
    %30 = vector.extract_strided_slice %29 {offsets = [0, 0], sizes = [16, 256], strides = [1, 1]} : vector<32x256xf32> to vector<16x256xf32>
    %c2 = arith.constant 2 : index
    %c0_22 = arith.constant 0 : index
    %31 = vector.load %arg9[%c2, %c0_22] : memref<40x256xf32, #tpu.memory_space<vmem>>, vector<16x256xf32>
    tpu.vector_store %arg9[%c2, %c0_22], %30 {strides = array<i32>} : memref<40x256xf32, #tpu.memory_space<vmem>>, vector<16x256xf32>,
    %32 = vector.extract_strided_slice %29 {offsets = [16, 0], sizes = [16, 256], strides = [1, 1]} : vector<32x256xf32> to vector<16x256xf32>
    %c22 = arith.constant 22 : index
    %c0_23 = arith.constant 0 : index
    %33 = vector.load %arg9[%c22, %c0_23] : memref<40x256xf32, #tpu.memory_space<vmem>>, vector<16x256xf32>
    tpu.vector_store %arg9[%c22, %c0_23], %32 {strides = array<i32>} : memref<40x256xf32, #tpu.memory_space<vmem>>, vector<16x256xf32>,
    %c0_24 = arith.constant 0 : index
    %c0_25 = arith.constant 0 : index
    %34 = vector.load %arg9[%c0_24, %c0_25] : memref<40x256xf32, #tpu.memory_space<vmem>>, vector<20x256xf32>
    %35 = vector.extract_strided_slice %34 {offsets = [0, 0], sizes = [16, 256], strides = [1, 1]} : vector<20x256xf32> to vector<16x256xf32>
    %36 = vector.extract_strided_slice %34 {offsets = [1, 0], sizes = [16, 256], strides = [1, 1]} : vector<20x256xf32> to vector<16x256xf32>
    %37 = vector.extract_strided_slice %34 {offsets = [2, 0], sizes = [16, 256], strides = [1, 1]} : vector<20x256xf32> to vector<16x256xf32>
    %38 = vector.extract_strided_slice %34 {offsets = [3, 0], sizes = [16, 256], strides = [1, 1]} : vector<20x256xf32> to vector<16x256xf32>
    %39 = vector.extract_strided_slice %34 {offsets = [4, 0], sizes = [16, 256], strides = [1, 1]} : vector<20x256xf32> to vector<16x256xf32>
    %40 = tpu.concatenate %35, %36, %37, %38, %39 in 1 : vector<16x256xf32>, vector<16x256xf32>, vector<16x256xf32>, vector<16x256xf32>, vector<16x256xf32> -> vector<16x1280xf32>
    %c20_26 = arith.constant 20 : index
    %c0_27 = arith.constant 0 : index
    %41 = vector.load %arg9[%c20_26, %c0_27] : memref<40x256xf32, #tpu.memory_space<vmem>>, vector<20x256xf32>
    %42 = vector.extract_strided_slice %41 {offsets = [0, 0], sizes = [16, 256], strides = [1, 1]} : vector<20x256xf32> to vector<16x256xf32>
    %43 = vector.extract_strided_slice %41 {offsets = [1, 0], sizes = [16, 256], strides = [1, 1]} : vector<20x256xf32> to vector<16x256xf32>
    %44 = vector.extract_strided_slice %41 {offsets = [2, 0], sizes = [16, 256], strides = [1, 1]} : vector<20x256xf32> to vector<16x256xf32>
    %45 = vector.extract_strided_slice %41 {offsets = [3, 0], sizes = [16, 256], strides = [1, 1]} : vector<20x256xf32> to vector<16x256xf32>
    %46 = vector.extract_strided_slice %41 {offsets = [4, 0], sizes = [16, 256], strides = [1, 1]} : vector<20x256xf32> to vector<16x256xf32>
    %47 = tpu.concatenate %42, %43, %44, %45, %46 in 1 : vector<16x256xf32>, vector<16x256xf32>, vector<16x256xf32>, vector<16x256xf32>, vector<16x256xf32> -> vector<16x1280xf32>
    %48 = tpu.concatenate %40, %47 in 0 : vector<16x1280xf32>, vector<16x1280xf32> -> vector<32x1280xf32>
    %c0_28 = arith.constant 0 : index
    %c0_29 = arith.constant 0 : index
    %49 = vector.load %arg4[%c0_28, %c0_29] : memref<1280x256xf32, #tpu.memory_space<vmem>>, vector<1280x256xf32>
    %cst_30 = arith.constant dense<0.000000e+00> : vector<32x256xf32>
    %50 = tpu.matmul %48, %49, %cst_30 {dimension_numbers = #tpu.dot_dimension_numbers<[1], [0], [0], [1], [0, 0, 1, 1], [], []>} : vector<32x1280xf32>, vector<1280x256xf32>, vector<32x256xf32> -> vector<32x256xf32>
    %c0_31 = arith.constant 0 : index
    %c0_32 = arith.constant 0 : index
    %51 = vector.load %arg5[%c0_31, %c0_32] : memref<1x256xf32, #tpu.memory_space<vmem>>, vector<1x256xf32>
    %52 = vector.broadcast %51 : vector<1x256xf32> to vector<32x256xf32>
    %53 = arith.addf %50, %52 : vector<32x256xf32>
    %cst_33 = arith.constant 0.000000e+00 : f32
    %54 = vector.broadcast %cst_33 : f32 to vector<32x256xf32>
    %55 = arith.maximumf %53, %54 : vector<32x256xf32>
    %56 = vector.extract_strided_slice %55 {offsets = [0, 0], sizes = [16, 256], strides = [1, 1]} : vector<32x256xf32> to vector<16x256xf32>
    %c1_34 = arith.constant 1 : index
    %c0_35 = arith.constant 0 : index
    %57 = vector.load %arg10[%c1_34, %c0_35] : memref<36x256xf32, #tpu.memory_space<vmem>>, vector<16x256xf32>
    tpu.vector_store %arg10[%c1_34, %c0_35], %56 {strides = array<i32>} : memref<36x256xf32, #tpu.memory_space<vmem>>, vector<16x256xf32>,
    %58 = vector.extract_strided_slice %55 {offsets = [16, 0], sizes = [16, 256], strides = [1, 1]} : vector<32x256xf32> to vector<16x256xf32>
    %c19 = arith.constant 19 : index
    %c0_36 = arith.constant 0 : index
    %59 = vector.load %arg10[%c19, %c0_36] : memref<36x256xf32, #tpu.memory_space<vmem>>, vector<16x256xf32>
    tpu.vector_store %arg10[%c19, %c0_36], %58 {strides = array<i32>} : memref<36x256xf32, #tpu.memory_space<vmem>>, vector<16x256xf32>,
    %c0_37 = arith.constant 0 : index
    %c0_38 = arith.constant 0 : index
    %60 = vector.load %arg10[%c0_37, %c0_38] : memref<36x256xf32, #tpu.memory_space<vmem>>, vector<18x256xf32>
    %61 = vector.extract_strided_slice %60 {offsets = [0, 0], sizes = [16, 256], strides = [1, 1]} : vector<18x256xf32> to vector<16x256xf32>
    %62 = vector.extract_strided_slice %60 {offsets = [1, 0], sizes = [16, 256], strides = [1, 1]} : vector<18x256xf32> to vector<16x256xf32>
    %63 = vector.extract_strided_slice %60 {offsets = [2, 0], sizes = [16, 256], strides = [1, 1]} : vector<18x256xf32> to vector<16x256xf32>
    %64 = tpu.concatenate %61, %62, %63 in 1 : vector<16x256xf32>, vector<16x256xf32>, vector<16x256xf32> -> vector<16x768xf32>
    %c18_39 = arith.constant 18 : index
    %c0_40 = arith.constant 0 : index
    %65 = vector.load %arg10[%c18_39, %c0_40] : memref<36x256xf32, #tpu.memory_space<vmem>>, vector<18x256xf32>
    %66 = vector.extract_strided_slice %65 {offsets = [0, 0], sizes = [16, 256], strides = [1, 1]} : vector<18x256xf32> to vector<16x256xf32>
    %67 = vector.extract_strided_slice %65 {offsets = [1, 0], sizes = [16, 256], strides = [1, 1]} : vector<18x256xf32> to vector<16x256xf32>
    %68 = vector.extract_strided_slice %65 {offsets = [2, 0], sizes = [16, 256], strides = [1, 1]} : vector<18x256xf32> to vector<16x256xf32>
    %69 = tpu.concatenate %66, %67, %68 in 1 : vector<16x256xf32>, vector<16x256xf32>, vector<16x256xf32> -> vector<16x768xf32>
    %70 = tpu.concatenate %64, %69 in 0 : vector<16x768xf32>, vector<16x768xf32> -> vector<32x768xf32>
    %c0_41 = arith.constant 0 : index
    %c0_42 = arith.constant 0 : index
    %71 = vector.load %arg6[%c0_41, %c0_42] : memref<768x256xf32, #tpu.memory_space<vmem>>, vector<768x256xf32>
    %cst_43 = arith.constant dense<0.000000e+00> : vector<32x256xf32>
    %72 = tpu.matmul %70, %71, %cst_43 {dimension_numbers = #tpu.dot_dimension_numbers<[1], [0], [0], [1], [0, 0, 1, 1], [], []>} : vector<32x768xf32>, vector<768x256xf32>, vector<32x256xf32> -> vector<32x256xf32>
    %c0_44 = arith.constant 0 : index
    %c0_45 = arith.constant 0 : index
    %73 = vector.load %arg7[%c0_44, %c0_45] : memref<1x256xf32, #tpu.memory_space<vmem>>, vector<1x256xf32>
    %74 = vector.broadcast %73 : vector<1x256xf32> to vector<32x256xf32>
    %75 = arith.addf %72, %74 : vector<32x256xf32>
    %cst_46 = arith.constant 0.000000e+00 : f32
    %76 = vector.broadcast %cst_46 : f32 to vector<32x256xf32>
    %77 = arith.maximumf %75, %76 : vector<32x256xf32>
    %78 = vector.extract_strided_slice %77 {offsets = [0, 0], sizes = [16, 256], strides = [1, 1]} : vector<32x256xf32> to vector<16x256xf32>
    %c0_47 = arith.constant 0 : index
    %c0_48 = arith.constant 0 : index
    %c0_49 = arith.constant 0 : index
    %79 = vector.load %arg8[%c0_47, %c0_48, %c0_49] : memref<2x16x256xf32, #tpu.memory_space<vmem>>, vector<1x16x256xf32>
    %80 = vector.shape_cast %79 : vector<1x16x256xf32> to vector<16x256xf32>
    %81 = vector.shape_cast %78 : vector<16x256xf32> to vector<1x16x256xf32>
    tpu.vector_store %arg8[%c0_47, %c0_48, %c0_49], %81 {strides = array<i32>} : memref<2x16x256xf32, #tpu.memory_space<vmem>>, vector<1x16x256xf32>,
    %82 = vector.extract_strided_slice %77 {offsets = [16, 0], sizes = [16, 256], strides = [1, 1]} : vector<32x256xf32> to vector<16x256xf32>
    %c1_50 = arith.constant 1 : index
    %c0_51 = arith.constant 0 : index
    %c0_52 = arith.constant 0 : index
    %83 = vector.load %arg8[%c1_50, %c0_51, %c0_52] : memref<2x16x256xf32, #tpu.memory_space<vmem>>, vector<1x16x256xf32>
    %84 = vector.shape_cast %83 : vector<1x16x256xf32> to vector<16x256xf32>
    %85 = vector.shape_cast %82 : vector<16x256xf32> to vector<1x16x256xf32>
    tpu.vector_store %arg8[%c1_50, %c0_51, %c0_52], %85 {strides = array<i32>} : memref<2x16x256xf32, #tpu.memory_space<vmem>>, vector<1x16x256xf32>,
    return
  }
  func.func @transform_0(%arg0: i32) -> (i32, i32, i32) {
    %c0_i32 = arith.constant 0 : i32
    %c0_i32_0 = arith.constant 0 : i32
    %c0_i32_1 = arith.constant 0 : i32
    return %arg0, %c0_i32, %c0_i32_0 : i32, i32, i32
  }
  func.func @transform_1(%arg0: i32) -> (i32, i32) {
    %c0_i32 = arith.constant 0 : i32
    %c0_i32_0 = arith.constant 0 : i32
    %c0_i32_1 = arith.constant 0 : i32
    return %c0_i32, %c0_i32_0 : i32, i32
  }
  func.func @transform_2(%arg0: i32) -> (i32, i32) {
    %c0_i32 = arith.constant 0 : i32
    %c0_i32_0 = arith.constant 0 : i32
    %c0_i32_1 = arith.constant 0 : i32
    return %c0_i32, %c0_i32_0 : i32, i32
  }
  func.func @transform_3(%arg0: i32) -> (i32, i32) {
    %c0_i32 = arith.constant 0 : i32
    %c0_i32_0 = arith.constant 0 : i32
    %c0_i32_1 = arith.constant 0 : i32
    return %c0_i32, %c0_i32_0 : i32, i32
  }
  func.func @transform_4(%arg0: i32) -> (i32, i32) {
    %c0_i32 = arith.constant 0 : i32
    %c0_i32_0 = arith.constant 0 : i32
    %c0_i32_1 = arith.constant 0 : i32
    return %c0_i32, %c0_i32_0 : i32, i32
  }
  func.func @transform_5(%arg0: i32) -> (i32, i32) {
    %c0_i32 = arith.constant 0 : i32
    %c0_i32_0 = arith.constant 0 : i32
    %c0_i32_1 = arith.constant 0 : i32
    return %c0_i32, %c0_i32_0 : i32, i32
  }
  func.func @transform_6(%arg0: i32) -> (i32, i32) {
    %c0_i32 = arith.constant 0 : i32
    %c0_i32_0 = arith.constant 0 : i32
    %c0_i32_1 = arith.constant 0 : i32
    return %c0_i32, %c0_i32_0 : i32, i32
  }
  func.func @transform_7(%arg0: i32) -> (i32, i32, i32) {
    %c0_i32 = arith.constant 0 : i32
    %c0_i32_0 = arith.constant 0 : i32
    %c0_i32_1 = arith.constant 0 : i32
    return %arg0, %c0_i32, %c0_i32_0 : i32, i32, i32
  }
}

</mosaic_0001>

<bundles_post_ra>
// kernel: tile.18
= control target key start
LH: loop header
LB: loop body
LE: loop exit
PB: predicated region body
PF: predicated region fallthrough
CT: control target
= control target key end

     0   :  { %s28_s0 = inlined_call_operand.vmem [shape: f32[16], index: 0, kind: input, shape index: {}]   ;;  %s29_s1 = inlined_call_operand.vmem [shape: f32[16,16], index: 1, kind: output, shape index: {}]  }
   0x1   :  { %v4_v0 = vld [vmem:[%s28_s0] ss:$0 sm:$0xff] }
   0x2   :  { %5 = vst [vmem:[%s29_s1] sm:$0xff] %v4_v0  ;;  %8 = vst [vmem:[%s29_s1 + $0x8] sm:$0xff] %v4_v0 }

// kernel: tile.19
= control target key start
LH: loop header
LB: loop body
LE: loop exit
PB: predicated region body
PF: predicated region fallthrough
CT: control target
= control target key end

     0   :  { %s7_s6 = smov 3  ;;  %s21_s9 = smov 3  ;;  %vm4_vm0 = vcmask 130048   ;;  %vm11_vm1 = vcmask 1048448   ;;  %vm18_vm2 = vcmask 917248   ;;  %vm25_vm3 = vcmask 786048   ;;  %s131_s0 = inlined_call_operand.vmem [shape: f32[16,16], index: 0, kind: input, shape index: {}]   ;;  %s132_s1 = inlined_call_operand.vmem [shape: f32[1,256], index: 1, kind: output, shape index: {}]  }
   0x1   :  { %v69_v0 = vld [vmem:[%s131_s0 + $0x7] ss:$8 sm:%s7_s6]   ;;  %s84_s10 = smov 112   ;;  %v71_v1 = vld [vmem:[%s131_s0 + $0x5] ss:$8 sm:%s21_s9]   ;;  %s14_s13 = smov 3 }
   0x2   :  { %9 = vrot.lane.b32.xlu0 %v69_v0, %s84_s10  ;;  %s85_s14 = smov 80   ;;  %v70_v2 = vld [vmem:[%s131_s0 + $0x6] ss:$8 sm:%s14_s13]   ;;  %s28_s17 = smov 3  ;;  %vm32_vm4 = vcmask 654848   ;;  %vm39_vm5 = vcmask 523648  }
   0x3   :  { %23 = vrot.lane.b32.xlu1 %v71_v1, %s85_s14  ;;  %v72_v3 = vld [vmem:[%s131_s0 + $0x4] ss:$8 sm:%s28_s17]   ;;  %s35_s20 = smov 3  ;;  %s42_s21 = smov 3  ;;  %vm46_vm6 = vcmask 392448   ;;  %vm53_vm7 = vcmask 261248  }
   0x4   :  { %s86_s22 = smov 96   ;;  %s87_s23 = smov 64   ;;  %v73_v4 = vld [vmem:[%s131_s0 + $0x3] ss:$8 sm:%s35_s20]   ;;  %v74_v5 = vld [vmem:[%s131_s0 + $0x2] ss:$8 sm:%s42_s21]  }
   0x5   :  { %s2_s26 = smov 3  ;;  %s49_s29 = smov 3 }
   0x6   :  { %16 = vrot.lane.b32.xlu0 %v70_v2, %s86_s22  ;;  %v3_v6 = vld [vmem:[%s131_s0] ss:$8 sm:%s2_s26]   ;;  %s88_s3 = smov 48   ;;  %s89_s4 = smov 32  }
   0x7   :  { %30 = vrot.lane.b32.xlu1 %v72_v3, %s87_s23  ;;  %5 = vst.msk [vmem:[#allocation0] ss:$8 sm:$0x3] %vm4_vm0, %v3_v6   ;;  %v75_v7 = vld [vmem:[%s131_s0 + $0x1] ss:$8 sm:%s49_s29]   ;;  %s90_s0 = smov 16  }
   0xa   :  { %37 = vrot.lane.b32.xlu0 %v73_v4, %s88_s3 }
   0xb   :  { %44 = vrot.lane.b32.xlu1 %v74_v5, %s89_s4 }
   0xe   :  { %51 = vrot.lane.b32.xlu0 %v75_v7, %s90_s0 }
  0x74   :  { %v10_v8 = vpop.permute.xlu0 %9  }
  0x75   :  { %12 = vst.msk [vmem:[#allocation0] ss:$8 sm:$0x3] %vm11_vm1, %v10_v8   ;;  %v24_v9 = vpop.permute.xlu1 %23  }
  0x78   :  { %v17_v10 = vpop.permute.xlu0 %16  }
  0x79   :  { %19 = vst.msk [vmem:[#allocation0] ss:$8 sm:$0x3] %vm18_vm2, %v17_v10   ;;  %v31_v11 = vpop.permute.xlu1 %30  }
  0x7a   :  { %26 = vst.msk [vmem:[#allocation0] ss:$8 sm:$0x3] %vm25_vm3, %v24_v9  }
  0x7b   :  { %33 = vst.msk [vmem:[#allocation0] ss:$8 sm:$0x3] %vm32_vm4, %v31_v11  }
  0x7c   :  { %v38_v12 = vpop.permute.xlu0 %37  }
  0x7d   :  { %40 = vst.msk [vmem:[#allocation0] ss:$8 sm:$0x3] %vm39_vm5, %v38_v12   ;;  %v45_v13 = vpop.permute.xlu1 %44  }
  0x7e   :  { %47 = vst.msk [vmem:[#allocation0] ss:$8 sm:$0x3] %vm46_vm6, %v45_v13  }
  0x80   :  { %v52_v14 = vpop.permute.xlu0 %51  }
  0x81   :  { %54 = vst.msk [vmem:[#allocation0] ss:$8 sm:$0x3] %vm53_vm7, %v52_v14  }
  0x88   :  { %v59_v15 = vld [vmem:[#allocation0] sm:$0x1]  ;;  %v64_v16 = vld [vmem:[#allocation0 + $0x8] sm:$0x1] }
  0x89   :  { %62 = vst [vmem:[%s132_s1] sm:$0x1] %v59_v15  ;;  %76 = vst [vmem:[%s132_s1 + $0x1] sm:$0x1] %v64_v16 }

// kernel: net_forward_pallas.1
= control target key start
LH: loop header
LB: loop body
LE: loop exit
PB: predicated region body
PF: predicated region fallthrough
CT: control target
= control target key end

     0   :  { %v2048_v3 = vmov 0.0   ;;  %vm55_vm0 = vcmask 1046528   ;;  %vm63_vm1 = vcmask 1045504   ;;  %vm390_vm3 = vcmask 1041408   ;;  %s4391_s1 = inlined_call_operand.vmem [shape: f32[384,256], index: 1, kind: input, shape index: {}]   ;;  %s4392_s0 = inlined_call_operand.vmem [shape: f32[2,18,128], index: 0, kind: input, shape index: {}]   ;;  %s4393_s3 = inlined_call_operand.vmem [shape: f32[1280,256], index: 3, kind: input, shape index: {}]   ;;  %s4394_s2 = inlined_call_operand.vmem [shape: f32[1,256], index: 2, kind: input, shape index: {}]   ;;  %s4395_s5 = inlined_call_operand.vmem [shape: f32[768,256], index: 5, kind: input, shape index: {}]   ;;  %s4396_s4 = inlined_call_operand.vmem [shape: f32[1,256], index: 4, kind: input, shape index: {}]   ;;  %s4397_s6 = inlined_call_operand.vmem [shape: f32[1,256], index: 6, kind: input, shape index: {}]   ;;  %s4398_s7 = inlined_call_operand.vmem [shape: f32[2,16,256], index: 7, kind: output, shape index: {}]  }
   0x1   :  { %v123_v0 = vld [vmem:[%s4391_s1 + $0xf8] sm:$0xff]  ;;  %v122_v1 = vld [vmem:[%s4391_s1 + $0xf0] sm:$0xff]  ;;  %v121_v2 = vld [vmem:[%s4391_s1 + $0xe8] sm:$0xff]  ;;  %353 = vmatprep.mubr.f32.mxu1 %v2048_v3  ;;  %26 = vst [vmem:[#allocation2 + $0x10] sm:$0x3] %v2048_v3  ;;  %vm471_vm4 = vcmask 1044480  }
   0x2   :  { %27 = vst [vmem:[#allocation2] sm:$0x3] %v2048_v3  ;;  %28 = vst [vmem:[#allocation2 + $0x28] sm:$0xc] %v2048_v3  ;;  %200 = vmatprep.subr.mxu0 %v123_v0  ;;  %v120_v4 = vld [vmem:[%s4391_s1 + $0xe0] sm:$0xff]  ;;  %v119_v5 = vld [vmem:[%s4391_s1 + $0xd8] sm:$0xff] }
   0x3   :  { %29 = vst [vmem:[#allocation2 + $0x20] sm:$0xc] %v2048_v3  ;;  %39 = vst [vmem:[#allocation2 + $0x28] sm:$0x30] %v2048_v3  ;;  %201 = vmatpush1.msra.mxu0 %v122_v1  ;;  %v118_v6 = vld [vmem:[%s4391_s1 + $0xd0] sm:$0xff]  ;;  %v117_v7 = vld [vmem:[%s4391_s1 + $0xc8] sm:$0xff] }
   0x4   :  { %40 = vst [vmem:[#allocation2 + $0x20] sm:$0x30] %v2048_v3  ;;  %41 = vst [vmem:[#allocation2 + $0x38] sm:$0xc0] %v2048_v3  ;;  %202 = vmatprep.subr.mxu0 %v121_v2  ;;  %v116_v8 = vld [vmem:[%s4391_s1 + $0xc0] sm:$0xff]  ;;  %v115_v9 = vld [vmem:[%s4391_s1 + $0xb8] sm:$0xff] }
   0x5   :  { %42 = vst [vmem:[#allocation2 + $0x48] sm:$0xc0] %v2048_v3  ;;  %203 = vmatpush1.msra.mxu0 %v120_v4  ;;  %v114_v10 = vld [vmem:[%s4391_s1 + $0xb0] sm:$0xff]  ;;  %v113_v11 = vld [vmem:[%s4391_s1 + $0xa8] sm:$0xff]  ;;  %v112_v12 = vld [vmem:[%s4391_s1 + $0xa0] sm:$0xff]  ;;  %vm486_vm5 = vcmask 1043456  }
   0x6   :  { %204 = vmatprep.subr.mxu0 %v119_v5  ;;  %v111_v13 = vld [vmem:[%s4391_s1 + $0x98] sm:$0xff]  ;;  %v110_v14 = vld [vmem:[%s4391_s1 + $0x90] sm:$0xff]  ;;  %v109_v17 = vld [vmem:[%s4391_s1 + $0x88] sm:$0xff]  ;;  %vm1402_vm6 = vcmask 1040384   ;;  %vm1425_vm7 = vcmask 1042432  }
   0x7   :  { %205 = vmatpush1.msra.mxu0 %v118_v6  ;;  %v187_v15 = vld [vmem:[%s4391_s1 + $0x2f8] sm:$0xff]  ;;  %v186_v16 = vld [vmem:[%s4391_s1 + $0x2f0] sm:$0xff]  ;;  %v185_v18 = vld [vmem:[%s4391_s1 + $0x2e8] sm:$0xff] }
   0x8   :  { %206 = vmatprep.subr.mxu0 %v117_v7  ;;  %289 = vmatprep.subr.mxu1 %v187_v15  ;;  %v108_v19 = vld [vmem:[%s4391_s1 + $0x80] sm:$0xff]  ;;  %v183_v21 = vld [vmem:[%s4391_s1 + $0x2d8] sm:$0xff]  ;;  %v182_v23 = vld [vmem:[%s4391_s1 + $0x2d0] sm:$0xff] }
   0x9   :  { %207 = vmatpush1.msra.mxu0 %v116_v8  ;;  %290 = vmatpush1.msra.mxu1 %v186_v16  ;;  %v184_v20 = vld [vmem:[%s4391_s1 + $0x2e0] sm:$0xff]  ;;  %v107_v22 = vld [vmem:[%s4391_s1 + $0x78] sm:$0xff]  ;;  %v106_v24 = vld [vmem:[%s4391_s1 + $0x70] sm:$0xff] }
   0xa   :  { %208 = vmatprep.subr.mxu0 %v115_v9  ;;  %291 = vmatprep.subr.mxu1 %v185_v18  ;;  %v181_v25 = vld [vmem:[%s4391_s1 + $0x2c8] sm:$0xff]  ;;  %v180_v27 = vld [vmem:[%s4391_s1 + $0x2c0] sm:$0xff]  ;;  %v179_v29 = vld [vmem:[%s4391_s1 + $0x2b8] sm:$0xff] }
   0xb   :  { %209 = vmatpush1.msra.mxu0 %v114_v10  ;;  %292 = vmatpush1.msra.mxu1 %v184_v20  ;;  %v105_v26 = vld [vmem:[%s4391_s1 + $0x68] sm:$0xff]  ;;  %v104_v28 = vld [vmem:[%s4391_s1 + $0x60] sm:$0xff]  ;;  %v103_v30 = vld [vmem:[%s4391_s1 + $0x58] sm:$0xff] }
   0xc   :  { %210 = vmatprep.subr.mxu0 %v113_v11  ;;  %293 = vmatprep.subr.mxu1 %v183_v21  ;;  %v178_v31 = vld [vmem:[%s4391_s1 + $0x2b0] sm:$0xff]  ;;  %v177_v33 = vld [vmem:[%s4391_s1 + $0x2a8] sm:$0xff]  ;;  %v176_v35 = vld [vmem:[%s4391_s1 + $0x2a0] sm:$0xff] }
   0xd   :  { %211 = vmatpush1.msra.mxu0 %v112_v12  ;;  %294 = vmatpush1.msra.mxu1 %v182_v23  ;;  %v102_v32 = vld [vmem:[%s4391_s1 + $0x50] sm:$0xff]  ;;  %v101_v34 = vld [vmem:[%s4391_s1 + $0x48] sm:$0xff]  ;;  %v100_v36 = vld [vmem:[%s4391_s1 + $0x40] sm:$0xff] }
   0xe   :  { %212 = vmatprep.subr.mxu0 %v111_v13  ;;  %295 = vmatprep.subr.mxu1 %v181_v25  ;;  %v175_v37 = vld [vmem:[%s4391_s1 + $0x298] sm:$0xff]  ;;  %v174_v39 = vld [vmem:[%s4391_s1 + $0x290] sm:$0xff]  ;;  %v173_v41 = vld [vmem:[%s4391_s1 + $0x288] sm:$0xff] }
   0xf   :  { %213 = vmatpush1.msra.mxu0 %v110_v14  ;;  %296 = vmatpush1.msra.mxu1 %v180_v27  ;;  %v99_v38 = vld [vmem:[%s4391_s1 + $0x38] sm:$0xff]  ;;  %v98_v40 = vld [vmem:[%s4391_s1 + $0x30] sm:$0xff]  ;;  %v97_v42 = vld [vmem:[%s4391_s1 + $0x28] sm:$0xff] }
  0x10   :  { %214 = vmatprep.subr.mxu0 %v109_v17  ;;  %297 = vmatprep.subr.mxu1 %v179_v29  ;;  %v172_v43 = vld [vmem:[%s4391_s1 + $0x280] sm:$0xff]  ;;  %v171_v45 = vld [vmem:[%s4391_s1 + $0x278] sm:$0xff]  ;;  %v170_v47 = vld [vmem:[%s4391_s1 + $0x270] sm:$0xff] }
  0x11   :  { %215 = vmatpush1.msra.mxu0 %v108_v19  ;;  %298 = vmatpush1.msra.mxu1 %v178_v31  ;;  %v96_v44 = vld [vmem:[%s4391_s1 + $0x20] sm:$0xff]  ;;  %v95_v46 = vld [vmem:[%s4391_s1 + $0x18] sm:$0xff]  ;;  %v94_v48 = vld [vmem:[%s4391_s1 + $0x10] sm:$0xff] }
  0x12   :  { %216 = vmatprep.subr.mxu0 %v107_v22  ;;  %299 = vmatprep.subr.mxu1 %v177_v33  ;;  %v169_v49 = vld [vmem:[%s4391_s1 + $0x268] sm:$0xff]  ;;  %v168_v51 = vld [vmem:[%s4391_s1 + $0x260] sm:$0xff]  ;;  %v167_v53 = vld [vmem:[%s4391_s1 + $0x258] sm:$0xff] }
  0x13   :  { %217 = vmatpush1.msra.mxu0 %v106_v24  ;;  %300 = vmatpush1.msra.mxu1 %v176_v35  ;;  %v93_v50 = vld [vmem:[%s4391_s1 + $0x8] sm:$0xff]  ;;  %v92_v52 = vld [vmem:[%s4391_s1] sm:$0xff]  ;;  %v155_v54 = vld [vmem:[%s4391_s1 + $0x1f8] sm:$0xff] }
  0x14   :  { %218 = vmatprep.subr.mxu0 %v105_v26  ;;  %301 = vmatprep.subr.mxu1 %v175_v37  ;;  %v166_v55 = vld [vmem:[%s4391_s1 + $0x250] sm:$0xff]  ;;  %v165_v57 = vld [vmem:[%s4391_s1 + $0x248] sm:$0xff]  ;;  %v152_v59 = vld [vmem:[%s4391_s1 + $0x1e0] sm:$0xff] }
  0x15   :  { %219 = vmatpush1.msra.mxu0 %v104_v28  ;;  %302 = vmatpush1.msra.mxu1 %v174_v39  ;;  %v154_v56 = vld [vmem:[%s4391_s1 + $0x1f0] sm:$0xff]  ;;  %v153_v58 = vld [vmem:[%s4391_s1 + $0x1e8] sm:$0xff]  ;;  %v164_v60 = vld [vmem:[%s4391_s1 + $0x240] sm:$0xff] }
  0x16   :  { %220 = vmatprep.subr.mxu0 %v103_v30  ;;  %303 = vmatprep.subr.mxu1 %v173_v41  ;;  %v163_v61 = vld [vmem:[%s4391_s1 + $0x238] sm:$0xff]  ;;  %v2284_v62 = vld [vmem:[%s4392_s0] sm:$0xff]  ;;  %v2289_v63 = vld [vmem:[%s4392_s0 + $0x8] sm:$0xff] }
  0x17   :  { %221 = vmatpush1.msra.mxu0 %v102_v32  ;;  %304 = vmatpush1.msra.mxu1 %v172_v43  ;;  %v151_v0 = vld [vmem:[%s4391_s1 + $0x1d8] sm:$0xff]  ;;  %v162_v1 = vld [vmem:[%s4391_s1 + $0x230] sm:$0xff]  ;;  %v161_v4 = vld [vmem:[%s4391_s1 + $0x228] sm:$0xff]  ;;  %v56_v7 = vrot.slane %v2284_v62, 1  ;;  %v57_v8 = vrot.slane %v2289_v63, 1  ;;  %v64_v13 = vrot.slane %v2284_v62, 2 }
  0x18   :  { %222 = vmatprep.subr.mxu0 %v101_v34  ;;  %305 = vmatprep.subr.mxu1 %v171_v45  ;;  %v150_v2 = vld [vmem:[%s4391_s1 + $0x1d0] sm:$0xff]  ;;  %v149_v5 = vld [vmem:[%s4391_s1 + $0x1c8] sm:$0xff]  ;;  %v160_v6 = vld [vmem:[%s4391_s1 + $0x220] sm:$0xff]  ;;  %v65_v14 = vrot.slane %v2289_v63, 2 }
  0x19   :  { %223 = vmatpush1.msra.mxu0 %v100_v36  ;;  %306 = vmatpush1.msra.mxu1 %v170_v47  ;;  %v148_v9 = vld [vmem:[%s4391_s1 + $0x1c0] sm:$0xff]  ;;  %v159_v10 = vld [vmem:[%s4391_s1 + $0x218] sm:$0xff]  ;;  %v158_v12 = vld [vmem:[%s4391_s1 + $0x210] sm:$0xff]  ;;  %v58_v18 = vsel %vm55_vm0, %v56_v7, %v57_v8 }
  0x1a   :  { %224 = vmatprep.subr.mxu0 %v99_v38  ;;  %307 = vmatprep.subr.mxu1 %v169_v49  ;;  %v147_v11 = vld [vmem:[%s4391_s1 + $0x1b8] sm:$0xff]  ;;  %v146_v15 = vld [vmem:[%s4391_s1 + $0x1b0] sm:$0xff]  ;;  %v157_v16 = vld [vmem:[%s4391_s1 + $0x208] sm:$0xff]  ;;  %v66_v23 = vsel %vm63_vm1, %v64_v13, %v65_v14 }
  0x1b   :  { %225 = vmatpush1.msra.mxu0 %v98_v40  ;;  %308 = vmatpush1.msra.mxu1 %v168_v51  ;;  %v145_v17 = vld [vmem:[%s4391_s1 + $0x1a8] sm:$0xff]  ;;  %v144_v19 = vld [vmem:[%s4391_s1 + $0x1a0] sm:$0xff]  ;;  %v2346_v21 = vld [vmem:[%s4392_s0 + $0x10] sm:$0x3] }
  0x1c   :  { %226 = vmatprep.subr.mxu0 %v97_v42  ;;  %309 = vmatprep.subr.mxu1 %v167_v53  ;;  %v156_v20 = vld [vmem:[%s4391_s1 + $0x200] sm:$0xff]  ;;  %v143_v22 = vld [vmem:[%s4391_s1 + $0x198] sm:$0xff]  ;;  %v67_v24 = vrot.slane %v2346_v21, 2  ;;  %v142_v25 = vld [vmem:[%s4391_s1 + $0x190] sm:$0xff] }
  0x1d   :  { %227 = vmatpush1.msra.mxu0 %v96_v44  ;;  %310 = vmatpush1.msra.mxu1 %v166_v55  ;;  %v141_v26 = vld [vmem:[%s4391_s1 + $0x188] sm:$0xff]  ;;  %v140_v27 = vld [vmem:[%s4391_s1 + $0x180] sm:$0xff]  ;;  %v644_v28 = vld [vmem:[%s4393_s3 + $0xf8] sm:$0xff] }
  0x1e   :  { %228 = vmatprep.subr.mxu0 %v95_v46  ;;  %311 = vmatprep.subr.mxu1 %v165_v57  ;;  %v2368_v29 = vld [vmem:[%s4392_s0 + $0x18] sm:$0xff]  ;;  %v2373_v30 = vld [vmem:[%s4392_s0 + $0x20] sm:$0xff]  ;;  %v643_v31 = vld [vmem:[%s4393_s3 + $0xf0] sm:$0xff]  ;;  %v68_v33 = vsel %vm63_vm1, %v65_v14, %v67_v24 }
  0x1f   :  { %229 = vmatpush1.msra.mxu0 %v94_v48  ;;  %312 = vmatpush1.msra.mxu1 %v164_v60  ;;  %v139_v32 = vld [vmem:[%s4391_s1 + $0x178] sm:$0xff]  ;;  %v85_v34 = vrot.slane %v2368_v29, 2  ;;  %v86_v35 = vrot.slane %v2373_v30, 2  ;;  %v138_v36 = vld [vmem:[%s4391_s1 + $0x170] sm:$0xff]  ;;  %v137_v37 = vld [vmem:[%s4391_s1 + $0x168] sm:$0xff] }
  0x20   :  { %230 = vmatprep.subr.mxu0 %v93_v50  ;;  %313 = vmatprep.subr.mxu1 %v163_v61  ;;  %v642_v38 = vld [vmem:[%s4393_s3 + $0xe8] sm:$0xff]  ;;  %v136_v39 = vld [vmem:[%s4391_s1 + $0x160] sm:$0xff]  ;;  %v135_v42 = vld [vmem:[%s4391_s1 + $0x158] sm:$0xff]  ;;  %v59_v61 = vrot.slane %v2346_v21, 1 }
  0x21   :  { %231 = vmatpush1.msra.mxu0 %v92_v52  ;;  %314 = vmatpush1.msra.mxu1 %v162_v1  ;;  %v2400_v40 = vld [vmem:[%s4392_s0 + $0x28] sm:$0x3]  ;;  %v641_v41 = vld [vmem:[%s4393_s3 + $0xe0] sm:$0xff]  ;;  %v87_v43 = vsel %vm63_vm1, %v85_v34, %v86_v35  ;;  %v134_v45 = vld [vmem:[%s4391_s1 + $0x150] sm:$0xff] }
  0x22   :  { %232 = vmatprep.subr.mxu0 %v155_v54  ;;  %315 = vmatprep.subr.mxu1 %v161_v4  ;;  %v88_v44 = vrot.slane %v2400_v40, 2  ;;  %v133_v46 = vld [vmem:[%s4391_s1 + $0x148] sm:$0xff]  ;;  %v640_v47 = vld [vmem:[%s4393_s3 + $0xd8] sm:$0xff]  ;;  %v132_v48 = vld [vmem:[%s4391_s1 + $0x140] sm:$0xff]  ;;  %v60_v7 = vsel %vm55_vm0, %v57_v8, %v59_v61 }
  0x23   :  { %233 = vmatpush2.msra.mxu0 %v154_v56  ;;  %316 = vmatpush1.msra.mxu1 %v160_v6  ;;  %v639_v49 = vld [vmem:[%s4393_s3 + $0xd0] sm:$0xff]  ;;  %v131_v50 = vld [vmem:[%s4391_s1 + $0x138] sm:$0xff]  ;;  %v638_v53 = vld [vmem:[%s4393_s3 + $0xc8] sm:$0xff] }
  0x24   :  { %234 = vmatprep.subr.mxu0 %v153_v58  ;;  %317 = vmatprep.subr.mxu1 %v159_v10  ;;  %v89_v51 = vsel %vm63_vm1, %v86_v35, %v88_v44  ;;  %v130_v52 = vld [vmem:[%s4391_s1 + $0x130] sm:$0xff]  ;;  %v129_v54 = vld [vmem:[%s4391_s1 + $0x128] sm:$0xff]  ;;  %v637_v55 = vld [vmem:[%s4393_s3 + $0xc0] sm:$0xff]  ;;  %v79_v10 = vrot.slane %v2373_v30, 1 }
  0x25   :  { %235 = vmatpush2.msra.mxu0 %v152_v59  ;;  %318 = vmatpush1.msra.mxu1 %v158_v12  ;;  %v128_v56 = vld [vmem:[%s4391_s1 + $0x120] sm:$0xff]  ;;  %v636_v57 = vld [vmem:[%s4393_s3 + $0xb8] sm:$0xff]  ;;  %v635_v59 = vld [vmem:[%s4393_s3 + $0xb0] sm:$0xff] }
  0x26   :  { %236 = vmatprep.subr.mxu0 %v151_v0  ;;  %319 = vmatprep.subr.mxu1 %v157_v16  ;;  %v127_v58 = vld [vmem:[%s4391_s1 + $0x118] sm:$0xff]  ;;  %v126_v60 = vld [vmem:[%s4391_s1 + $0x110] sm:$0xff]  ;;  %v634_v0 = vld [vmem:[%s4393_s3 + $0xa8] sm:$0xff] }
  0x27   :  { %237 = vmatpush2.msra.mxu0 %v150_v2  ;;  %264 = vmatprep.mubr.f32.mxu0 %v58_v18  ;;  %v125_v1 = vld [vmem:[%s4391_s1 + $0x108] sm:$0xff]  ;;  %v633_v2 = vld [vmem:[%s4393_s3 + $0xa0] sm:$0xff]  ;;  %v708_v6 = vld [vmem:[%s4393_s3 + $0x2f8] sm:$0xff] }
  0x28   :  { %238 = vmatprep.subr.mxu0 %v149_v5  ;;  %320 = vmatpush1.msra.mxu1 %v156_v20  ;;  %v124_v4 = vld [vmem:[%s4391_s1 + $0x100] sm:$0xff]  ;;  %v632_v5 = vld [vmem:[%s4393_s3 + $0x98] sm:$0xff]  ;;  %v706_v12 = vld [vmem:[%s4393_s3 + $0x2e8] sm:$0xff] }
  0x29   :  { %239 = vmatpush2.msra.mxu0 %v148_v9  ;;  %354 = vmatmul.mubr.f32.vlgmr.msra.gmra.mxu1 %v66_v23  ;;  %v78_v9 = vrot.slane %v2368_v29, 1  ;;  %v631_v13 = vld [vmem:[%s4393_s3 + $0x90] sm:$0xff]  ;;  %v705_v8 = vld [vmem:[%s4393_s3 + $0x2e0] sm:$0xff]  ;;  %v630_v14 = vld [vmem:[%s4393_s3 + $0x88] sm:$0xff] }
  0x2a   :  { %240 = vmatprep.subr.mxu0 %v147_v11  ;;  %359 = vmatprep.mubr.f32.mxu1 %v2048_v3  ;;  %v707_v11 = vld [vmem:[%s4393_s3 + $0x2f0] sm:$0xff]  ;;  %v702_v18 = vld [vmem:[%s4393_s3 + $0x2c8] sm:$0xff]  ;;  %v701_v20 = vld [vmem:[%s4393_s3 + $0x2c0] sm:$0xff] }
  0x2b   :  { %241 = vmatpush2.msra.mxu0 %v146_v15  ;;  %945 = vmatprep.subr.mxu1 %v644_v28  ;;  %v704_v15 = vld [vmem:[%s4393_s3 + $0x2d8] sm:$0xff]  ;;  %v80_v16 = vsel %vm55_vm0, %v78_v9, %v79_v10  ;;  %v699_v24 = vld [vmem:[%s4393_s3 + $0x2b0] sm:$0xff]  ;;  %v621_v35 = vld [vmem:[%s4393_s3 + $0x40] sm:$0xff] }
  0x2c   :  { %242 = vmatprep.subr.mxu0 %v145_v17  ;;  %946 = vmatpush1.msra.mxu1 %v643_v31  ;;  %v81_v17 = vrot.slane %v2400_v40, 1  ;;  %v628_v21 = vld [vmem:[%s4393_s3 + $0x78] sm:$0xff]  ;;  %v623_v31 = vld [vmem:[%s4393_s3 + $0x50] sm:$0xff]  ;;  %v618_v40 = vld [vmem:[%s4393_s3 + $0x28] sm:$0xff] }
  0x2d   :  { %243 = vmatpush2.msra.mxu0 %v144_v19  ;;  %360 = vmatmul.mubr.f32.gmra.mxu1 %v68_v33  ;;  %v629_v19 = vld [vmem:[%s4393_s3 + $0x80] sm:$0xff]  ;;  %v624_v28 = vld [vmem:[%s4393_s3 + $0x58] sm:$0xff]  ;;  %v622_v33 = vld [vmem:[%s4393_s3 + $0x48] sm:$0xff] }
  0x2e   :  { %244 = vmatprep.subr.mxu0 %v143_v22  ;;  %365 = vmatprep.mubr.f32.mxu1 %v2048_v3  ;;  %v700_v22 = vld [vmem:[%s4393_s3 + $0x2b8] sm:$0xff]  ;;  %v82_v23 = vsel %vm55_vm0, %v79_v10, %v81_v17  ;;  %v695_v34 = vld [vmem:[%s4393_s3 + $0x290] sm:$0xff]  ;;  %v681_v61 = vld [vmem:[%s4393_s3 + $0x220] sm:$0xff] }
  0x2f   :  { %245 = vmatpush2.msra.mxu0 %v142_v25  ;;  %947 = vmatprep.subr.mxu1 %v642_v38  ;;  %v626_v25 = vld [vmem:[%s4393_s3 + $0x68] sm:$0xff]  ;;  %v619_v38 = vld [vmem:[%s4393_s3 + $0x30] sm:$0xff]  ;;  %v616_v44 = vld [vmem:[%s4393_s3 + $0x18] sm:$0xff] }
  0x30   :  { %246 = vmatprep.subr.mxu0 %v141_v26  ;;  %948 = vmatpush1.msra.mxu1 %v641_v41  ;;  %v698_v26 = vld [vmem:[%s4393_s3 + $0x2a8] sm:$0xff]  ;;  %v691_v41 = vld [vmem:[%s4393_s3 + $0x270] sm:$0xff]  ;;  %v677_v9 = vld [vmem:[%s4393_s3 + $0x200] sm:$0xff] }
  0x31   :  { %247 = vmatpush2.msra.mxu0 %v140_v27  ;;  %366 = vmatmul.mubr.f32.gmra.mxu1 %v87_v43  ;;  %v625_v27 = vld [vmem:[%s4393_s3 + $0x60] sm:$0xff]  ;;  %v690_v43 = vld [vmem:[%s4393_s3 + $0x268] sm:$0xff]  ;;  %v667_v10 = vld [vmem:[%s4393_s3 + $0x1b0] sm:$0xff] }
  0x32   :  { %248 = vmatprep.subr.mxu0 %v139_v32  ;;  %371 = vmatprep.mubr.f32.mxu1 %v2048_v3  ;;  %v696_v32 = vld [vmem:[%s4393_s3 + $0x298] sm:$0xff] }
  0x33   :  { %249 = vmatpush2.msra.mxu0 %v138_v36  ;;  %949 = vmatprep.subr.mxu1 %v640_v47  ;;  %v694_v36 = vld [vmem:[%s4393_s3 + $0x288] sm:$0xff]  ;;  %v688_v47 = vld [vmem:[%s4393_s3 + $0x258] sm:$0xff] }
  0x34   :  { %250 = vmatprep.subr.mxu0 %v137_v37  ;;  %950 = vmatpush1.msra.mxu1 %v639_v49  ;;  %v620_v37 = vld [vmem:[%s4393_s3 + $0x38] sm:$0xff]  ;;  %v687_v49 = vld [vmem:[%s4393_s3 + $0x250] sm:$0xff] }
  0x35   :  { %251 = vmatpush2.msra.mxu0 %v136_v39  ;;  %372 = vmatmul.mubr.f32.gmra.mxu1 %v89_v51  ;;  %v692_v39 = vld [vmem:[%s4393_s3 + $0x278] sm:$0xff]  ;;  %v686_v51 = vld [vmem:[%s4393_s3 + $0x248] sm:$0xff] }
  0x36   :  { %252 = vmatprep.subr.mxu0 %v135_v42  ;;  %951 = vmatprep.subr.mxu1 %v638_v53  ;;  %v617_v42 = vld [vmem:[%s4393_s3 + $0x20] sm:$0xff]  ;;  %v736_v17 = vld [vmem:[%s4393_s3 + $0x3d8] sm:$0xff] }
  0x37   :  { %253 = vmatpush2.msra.mxu0 %v134_v45  ;;  %952 = vmatpush1.msra.mxu1 %v637_v55  ;;  %v689_v45 = vld [vmem:[%s4393_s3 + $0x260] sm:$0xff]  ;;  %v684_v55 = vld [vmem:[%s4393_s3 + $0x238] sm:$0xff] }
  0x38   :  { %254 = vmatprep.subr.mxu0 %v133_v46  ;;  %953 = vmatprep.subr.mxu1 %v636_v57  ;;  %v615_v46 = vld [vmem:[%s4393_s3 + $0x10] sm:$0xff]  ;;  %v685_v53 = vld [vmem:[%s4393_s3 + $0x240] sm:$0xff] }
  0x39   :  { %255 = vmatpush2.msra.mxu0 %v132_v48  ;;  %954 = vmatpush1.msra.mxu1 %v635_v59  ;;  %v614_v48 = vld [vmem:[%s4393_s3 + $0x8] sm:$0xff]  ;;  %v683_v57 = vld [vmem:[%s4393_s3 + $0x230] sm:$0xff] }
  0x3a   :  { %256 = vmatprep.subr.mxu0 %v131_v50  ;;  %955 = vmatprep.subr.mxu1 %v634_v0  ;;  %v613_v50 = vld [vmem:[%s4393_s3] sm:$0xff]  ;;  %v682_v59 = vld [vmem:[%s4393_s3 + $0x228] sm:$0xff]  ;;  %v671_v0 = vld [vmem:[%s4393_s3 + $0x1d0] sm:$0xff] }
  0x3b   :  { %257 = vmatpush2.msra.mxu0 %v130_v52  ;;  %956 = vmatpush1.msra.mxu1 %v633_v2  ;;  %v676_v52 = vld [vmem:[%s4393_s3 + $0x1f8] sm:$0xff]  ;;  %v670_v2 = vld [vmem:[%s4393_s3 + $0x1c8] sm:$0xff] }
  0x3c   :  { %258 = vmatprep.subr.mxu0 %v129_v54  ;;  %957 = vmatprep.subr.mxu1 %v632_v5  ;;  %v675_v54 = vld [vmem:[%s4393_s3 + $0x1f0] sm:$0xff]  ;;  %v669_v5 = vld [vmem:[%s4393_s3 + $0x1c0] sm:$0xff] }
  0x3d   :  { %259 = vmatpush2.msra.mxu0 %v128_v56  ;;  %958 = vmatpush1.msra.mxu1 %v631_v13  ;;  %v674_v56 = vld [vmem:[%s4393_s3 + $0x1e8] sm:$0xff]  ;;  %v739_v13 = vld [vmem:[%s4393_s3 + $0x3f0] sm:$0xff] }
  0x3e   :  { %260 = vmatprep.subr.mxu0 %v127_v58  ;;  %959 = vmatprep.subr.mxu1 %v630_v14  ;;  %v673_v58 = vld [vmem:[%s4393_s3 + $0x1e0] sm:$0xff]  ;;  %v738_v14 = vld [vmem:[%s4393_s3 + $0x3e8] sm:$0xff] }
  0x3f   :  { %261 = vmatpush2.msra.mxu0 %v126_v60  ;;  %960 = vmatpush1.msra.mxu1 %v629_v19  ;;  %v672_v60 = vld [vmem:[%s4393_s3 + $0x1d8] sm:$0xff]  ;;  %v733_v19 = vld [vmem:[%s4393_s3 + $0x3c0] sm:$0xff] }
  0x40   :  { %262 = vmatprep.subr.mxu0 %v125_v1  ;;  %961 = vmatprep.subr.mxu1 %v628_v21  ;;  %v680_v1 = vld [vmem:[%s4393_s3 + $0x218] sm:$0xff]  ;;  %v731_v21 = vld [vmem:[%s4393_s3 + $0x3b0] sm:$0xff] }
  0x41   :  { %263 = vmatpush2.msra.mxu0 %v124_v4  ;;  %v679_v4 = vld [vmem:[%s4393_s3 + $0x210] sm:$0xff] }
  0x42   :  { %265 = vmatmul.mubr.f32.vlgmr.msra.gmra.mxu0 %v2284_v62  ;;  %1034 = vmatprep.subr.mxu0 %v708_v6  ;;  %v703_v62 = vld [vmem:[%s4393_s3 + $0x2d0] sm:$0xff]  ;;  %v678_v6 = vld [vmem:[%s4393_s3 + $0x208] sm:$0xff] }
  0x43   :  { %270 = vmatprep.mubr.f32.mxu0 %v60_v7  ;;  %1035 = vmatpush1.msra.mxu0 %v707_v11  ;;  %v668_v7 = vld [vmem:[%s4393_s3 + $0x1b8] sm:$0xff] }
  0x44   :  { %1036 = vmatprep.subr.mxu0 %v706_v12  ;;  %v740_v11 = vld [vmem:[%s4393_s3 + $0x3f8] sm:$0xff]  ;;  %v666_v12 = vld [vmem:[%s4393_s3 + $0x1a8] sm:$0xff] }
  0x45   :  { %1037 = vmatpush1.msra.mxu0 %v705_v8  ;;  %v665_v8 = vld [vmem:[%s4393_s3 + $0x1a0] sm:$0xff] }
  0x46   :  { %271 = vmatmul.mubr.f32.gmra.mxu0 %v2289_v63  ;;  %1038 = vmatprep.subr.mxu0 %v704_v15  ;;  %v627_v63 = vld [vmem:[%s4393_s3 + $0x70] sm:$0xff]  ;;  %v664_v15 = vld [vmem:[%s4393_s3 + $0x198] sm:$0xff] }
  0x47   :  { %276 = vmatprep.mubr.f32.mxu0 %v80_v16  ;;  %1039 = vmatpush1.msra.mxu0 %v703_v62  ;;  %v737_v16 = vld [vmem:[%s4393_s3 + $0x3e0] sm:$0xff]  ;;  %v735_v62 = vld [vmem:[%s4393_s3 + $0x3d0] sm:$0xff] }
  0x48   :  { %1040 = vmatprep.subr.mxu0 %v702_v18  ;;  %962 = vmatpush1.msra.mxu1 %v627_v63  ;;  %v734_v18 = vld [vmem:[%s4393_s3 + $0x3c8] sm:$0xff] }
  0x49   :  { %1041 = vmatpush1.msra.mxu0 %v701_v20  ;;  %963 = vmatprep.subr.mxu1 %v626_v25  ;;  %v732_v20 = vld [vmem:[%s4393_s3 + $0x3b8] sm:$0xff]  ;;  %v662_v63 = vld [vmem:[%s4393_s3 + $0x188] sm:$0xff]  ;;  %v661_v25 = vld [vmem:[%s4393_s3 + $0x180] sm:$0xff] }
  0x4a   :  { %277 = vmatmul.mubr.f32.gmra.mxu0 %v2368_v29  ;;  %1042 = vmatprep.subr.mxu0 %v700_v22  ;;  %v697_v29 = vld [vmem:[%s4393_s3 + $0x2a0] sm:$0xff]  ;;  %v663_v22 = vld [vmem:[%s4393_s3 + $0x190] sm:$0xff] }
  0x4b   :  { %282 = vmatprep.mubr.f32.mxu0 %v82_v23  ;;  %1043 = vmatpush1.msra.mxu0 %v699_v24  ;;  %v730_v23 = vld [vmem:[%s4393_s3 + $0x3a8] sm:$0xff]  ;;  %v729_v24 = vld [vmem:[%s4393_s3 + $0x3a0] sm:$0xff] }
  0x4c   :  { %1044 = vmatprep.subr.mxu0 %v698_v26  ;;  %964 = vmatpush1.msra.mxu1 %v625_v27  ;;  %v728_v26 = vld [vmem:[%s4393_s3 + $0x398] sm:$0xff] }
  0x4d   :  { %965 = vmatprep.subr.mxu1 %v624_v28  ;;  %1045 = vmatpush1.msra.mxu0 %v697_v29  ;;  %v660_v27 = vld [vmem:[%s4393_s3 + $0x178] sm:$0xff]  ;;  %v727_v28 = vld [vmem:[%s4393_s3 + $0x390] sm:$0xff] }
  0x4e   :  { %283 = vmatmul.mubr.f32.gmra.mxu0 %v2373_v30  ;;  %966 = vmatpush1.msra.mxu1 %v623_v31  ;;  %v693_v30 = vld [vmem:[%s4393_s3 + $0x280] sm:$0xff]  ;;  %v659_v29 = vld [vmem:[%s4393_s3 + $0x170] sm:$0xff]  ;;  %v726_v31 = vld [vmem:[%s4393_s3 + $0x388] sm:$0xff] }
  0x4f   :  { %1046 = vmatprep.subr.mxu0 %v696_v32  ;;  %967 = vmatprep.subr.mxu1 %v622_v33  ;;  %v658_v32 = vld [vmem:[%s4393_s3 + $0x168] sm:$0xff]  ;;  %v725_v33 = vld [vmem:[%s4393_s3 + $0x380] sm:$0xff] }
  0x50   :  { %1047 = vmatpush1.msra.mxu0 %v695_v34  ;;  %968 = vmatpush1.msra.mxu1 %v621_v35  ;;  %v657_v34 = vld [vmem:[%s4393_s3 + $0x160] sm:$0xff]  ;;  %v724_v35 = vld [vmem:[%s4393_s3 + $0x378] sm:$0xff] }
  0x51   :  { %1048 = vmatprep.subr.mxu0 %v694_v36  ;;  %969 = vmatprep.subr.mxu1 %v620_v37  ;;  %v656_v36 = vld [vmem:[%s4393_s3 + $0x158] sm:$0xff]  ;;  %v655_v37 = vld [vmem:[%s4393_s3 + $0x150] sm:$0xff] }
  0x52   :  { %1049 = vmatpush1.msra.mxu0 %v693_v30  ;;  %970 = vmatpush1.msra.mxu1 %v619_v38  ;;  %v723_v30 = vld [vmem:[%s4393_s3 + $0x370] sm:$0xff]  ;;  %v654_v38 = vld [vmem:[%s4393_s3 + $0x148] sm:$0xff] }
  0x53   :  { %1050 = vmatprep.subr.mxu0 %v692_v39  ;;  %971 = vmatprep.subr.mxu1 %v618_v40  ;;  %v722_v39 = vld [vmem:[%s4393_s3 + $0x368] sm:$0xff]  ;;  %v30_v40 = vlaneseq }
  0x54   :  { %1051 = vmatpush1.msra.mxu0 %v691_v41  ;;  %972 = vmatpush1.msra.mxu1 %v617_v42  ;;  %v653_v41 = vld [vmem:[%s4393_s3 + $0x140] sm:$0xff] }
  0x55   :  { %1052 = vmatprep.subr.mxu0 %v690_v43  ;;  %973 = vmatprep.subr.mxu1 %v616_v44  ;;  %v721_v42 = vld [vmem:[%s4393_s3 + $0x360] sm:$0xff]  ;;  %v652_v43 = vld [vmem:[%s4393_s3 + $0x138] sm:$0xff]  ;;  %vm32_vm2 = vcmp.lt.s32.totalorder %v30_v40, 256 }
  0x56   :  { %1053 = vmatpush1.msra.mxu0 %v689_v45  ;;  %974 = vmatpush1.msra.mxu1 %v615_v46  ;;  %v720_v44 = vld [vmem:[%s4393_s3 + $0x358] sm:$0xff]  ;;  %v719_v45 = vld [vmem:[%s4393_s3 + $0x350] sm:$0xff]  ;;  %34 = vst.msk [vmem:[#allocation3] ss:$8 sm:$0x3] %vm32_vm2, %v2048_v3 }
  0x57   :  { %1054 = vmatprep.subr.mxu0 %v688_v47  ;;  %975 = vmatprep.subr.mxu1 %v614_v48  ;;  %37 = vst.msk [vmem:[#allocation3 + $0x21] ss:$8 sm:$0x3] %vm32_vm2, %v2048_v3  ;;  %44 = vst.msk [vmem:[#allocation3 + $0x22] ss:$8 sm:$0x3] %vm32_vm2, %v2048_v3 }
  0x58   :  { %1055 = vmatpush1.msra.mxu0 %v687_v49  ;;  %976 = vmatpush1.msra.mxu1 %v613_v50  ;;  %47 = vst.msk [vmem:[#allocation3 + $0x43] ss:$8 sm:$0x3] %vm32_vm2, %v2048_v3  ;;  %v651_v46 = vld [vmem:[%s4393_s3 + $0x130] sm:$0xff]  ;;  %v718_v47 = vld [vmem:[%s4393_s3 + $0x348] sm:$0xff]  ;;  %v717_v49 = vld [vmem:[%s4393_s3 + $0x340] sm:$0xff] }
  0x59   :  { %1056 = vmatprep.subr.mxu0 %v686_v51  ;;  %977 = vmatprep.subr.mxu1 %v676_v52  ;;  %v650_v48 = vld [vmem:[%s4393_s3 + $0x128] sm:$0xff]  ;;  %v649_v3 = vld [vmem:[%s4393_s3 + $0x120] sm:$0xff]  ;;  %v716_v50 = vld [vmem:[%s4393_s3 + $0x338] sm:$0xff] }
  0x5a   :  { %1057 = vmatpush1.msra.mxu0 %v685_v53  ;;  %978 = vmatpush2.msra.mxu1 %v675_v54  ;;  %v648_v51 = vld [vmem:[%s4393_s3 + $0x118] sm:$0xff]  ;;  %v715_v52 = vld [vmem:[%s4393_s3 + $0x330] sm:$0xff]  ;;  %v714_v54 = vld [vmem:[%s4393_s3 + $0x328] sm:$0xff] }
  0x5b   :  { %1058 = vmatprep.subr.mxu0 %v684_v55  ;;  %979 = vmatprep.subr.mxu1 %v674_v56  ;;  %v647_v53 = vld [vmem:[%s4393_s3 + $0x110] sm:$0xff]  ;;  %v646_v55 = vld [vmem:[%s4393_s3 + $0x108] sm:$0xff]  ;;  %v713_v56 = vld [vmem:[%s4393_s3 + $0x320] sm:$0xff] }
  0x5c   :  { %1059 = vmatpush1.msra.mxu0 %v683_v57  ;;  %980 = vmatpush2.msra.mxu1 %v673_v58  ;;  %v645_v57 = vld [vmem:[%s4393_s3 + $0x100] sm:$0xff]  ;;  %v712_v58 = vld [vmem:[%s4393_s3 + $0x318] sm:$0xff] }
  0x5d   :  { %1060 = vmatprep.subr.mxu0 %v682_v59  ;;  %981 = vmatprep.subr.mxu1 %v672_v60  ;;  %v772_v59 = vld [vmem:[%s4393_s3 + $0x4f8] sm:$0xff]  ;;  %v711_v60 = vld [vmem:[%s4393_s3 + $0x310] sm:$0xff] }
  0x5e   :  { %1061 = vmatpush1.msra.mxu0 %v681_v61  ;;  %982 = vmatpush2.msra.mxu1 %v671_v0  ;;  %v710_v61 = vld [vmem:[%s4393_s3 + $0x308] sm:$0xff]  ;;  %v709_v0 = vld [vmem:[%s4393_s3 + $0x300] sm:$0xff] }
  0x5f   :  { %1062 = vmatprep.subr.mxu0 %v680_v1  ;;  %983 = vmatprep.subr.mxu1 %v670_v2  ;;  %v836_v1 = vld [vmem:[%s4393_s3 + $0x6f8] sm:$0xff] }
  0x60   :  { %1063 = vmatpush1.msra.mxu0 %v679_v4  ;;  %984 = vmatpush2.msra.mxu1 %v669_v5  ;;  %v191_v4 = vshrl.u32 %v30_v40, 7 }
  0x61   :  { %1064 = vmatprep.subr.mxu0 %v678_v6  ;;  %985 = vmatprep.subr.mxu1 %v668_v7  ;;  %v188_v7 = vld [vmem:[%s4394_s2] sm:$0x3] }
  0x62   :  { %1065 = vmatpush1.msra.mxu0 %v677_v9  ;;  %986 = vmatpush2.msra.mxu1 %v667_v10  ;;  %v2841_v6 = vsub.s32 0, %v191_v4  ;;  %v2846_v10 = vsub.s32 1, %v191_v4 }
  0x63   :  { %1066 = vmatprep.subr.mxu0 %v740_v11  ;;  %987 = vmatprep.subr.mxu1 %v666_v12 }
  0x64   :  { %1067 = vmatpush2.msra.mxu0 %v739_v13  ;;  %988 = vmatpush2.msra.mxu1 %v665_v8  ;;  %v193_v11 = vrot.slane %v188_v7, %v2841_v6  ;;  %v197_v13 = vrot.slane %v188_v7, %v2846_v10 }
  0x65   :  { %1068 = vmatprep.subr.mxu0 %v738_v14  ;;  %989 = vmatprep.subr.mxu1 %v664_v15 }
  0x66   :  { %1069 = vmatpush2.msra.mxu0 %v737_v16  ;;  %990 = vmatpush2.msra.mxu1 %v663_v22 }
  0x67   :  { %1070 = vmatprep.subr.mxu0 %v736_v17  ;;  %991 = vmatprep.subr.mxu1 %v662_v63 }
  0x68   :  { %1071 = vmatpush2.msra.mxu0 %v735_v62  ;;  %992 = vmatpush2.msra.mxu1 %v661_v25 }
  0x69   :  { %1072 = vmatprep.subr.mxu0 %v734_v18  ;;  %993 = vmatprep.subr.mxu1 %v660_v27 }
  0x6a   :  { %1073 = vmatpush2.msra.mxu0 %v733_v19  ;;  %994 = vmatpush2.msra.mxu1 %v659_v29 }
  0x6b   :  { %1074 = vmatprep.subr.mxu0 %v732_v20  ;;  %995 = vmatprep.subr.mxu1 %v658_v32 }
  0x6c   :  { %1075 = vmatpush2.msra.mxu0 %v731_v21  ;;  %996 = vmatpush2.msra.mxu1 %v657_v34 }
  0x6d   :  { %1076 = vmatprep.subr.mxu0 %v730_v23  ;;  %997 = vmatprep.subr.mxu1 %v656_v36 }
  0x6e   :  { %1077 = vmatpush2.msra.mxu0 %v729_v24  ;;  %998 = vmatpush2.msra.mxu1 %v655_v37 }
  0x6f   :  { %1078 = vmatprep.subr.mxu0 %v728_v26  ;;  %999 = vmatprep.subr.mxu1 %v654_v38 }
  0x70   :  { %1079 = vmatpush2.msra.mxu0 %v727_v28  ;;  %1000 = vmatpush2.msra.mxu1 %v653_v41 }
  0x71   :  { %1080 = vmatprep.subr.mxu0 %v726_v31  ;;  %1001 = vmatprep.subr.mxu1 %v652_v43 }
  0x72   :  { %1081 = vmatpush2.msra.mxu0 %v725_v33  ;;  %1002 = vmatpush2.msra.mxu1 %v651_v46 }
  0x73   :  { %1082 = vmatprep.subr.mxu0 %v724_v35  ;;  %1003 = vmatprep.subr.mxu1 %v650_v48 }
  0x74   :  { %1083 = vmatpush2.msra.mxu0 %v723_v30  ;;  %1004 = vmatpush2.msra.mxu1 %v649_v3 }
  0x75   :  { %1084 = vmatprep.subr.mxu0 %v722_v39  ;;  %1005 = vmatprep.subr.mxu1 %v648_v51 }
  0x76   :  { %1085 = vmatpush2.msra.mxu0 %v721_v42  ;;  %1006 = vmatpush2.msra.mxu1 %v647_v53 }
  0x77   :  { %1086 = vmatprep.subr.mxu0 %v720_v44  ;;  %1007 = vmatprep.subr.mxu1 %v646_v55 }
  0x78   :  { %1087 = vmatpush2.msra.mxu0 %v719_v45  ;;  %1008 = vmatpush2.msra.mxu1 %v645_v57  ;;  %v771_v57 = vld [vmem:[%s4393_s3 + $0x4f0] sm:$0xff] }
  0x79   :  { %1088 = vmatprep.subr.mxu0 %v718_v47  ;;  %1123 = vmatprep.subr.mxu1 %v772_v59 }
  0x7a   :  { %1089 = vmatpush2.msra.mxu0 %v717_v49 }
  0x7b   :  { %1090 = vmatprep.subr.mxu0 %v716_v50 }
  0x7c   :  { %1091 = vmatpush2.msra.mxu0 %v715_v52 }
  0x7d   :  { %1092 = vmatprep.subr.mxu0 %v714_v54 }
  0x7e   :  { %1093 = vmatpush2.msra.mxu0 %v713_v56 }
  0x7f   :  { %1094 = vmatprep.subr.mxu0 %v712_v58 }
  0x80   :  { %1095 = vmatpush2.msra.mxu0 %v711_v60 }
  0x81   :  { %1096 = vmatprep.subr.mxu0 %v710_v61 }
  0x82   :  { %1097 = vmatpush2.msra.mxu0 %v709_v0 }
  0x83   :  { %1212 = vmatprep.subr.mxu0 %v836_v1  ;;  %v770_v1 = vld [vmem:[%s4393_s3 + $0x4e8] sm:$0xff] }
  0xe9   :  { %v355_v2 = vpop.f32.mrf.mxu1 }
  0xeb   :  { %v357_v5 = vpop.f32.mrf.mxu1 }
  0xed   :  { %v361_v9 = vpop.f32.mrf.mxu1 }
  0xef   :  { %v363_v12 = vpop.f32.mrf.mxu1 }
  0xf1   :  { %v367_v16 = vpop.f32.mrf.mxu1 }
  0xf3   :  { %v369_v23 = vpop.f32.mrf.mxu1 }
  0xf5   :  { %v373_v34 = vpop.f32.mrf.mxu1 }
  0xf7   :  { %v375_v45 = vpop.f32.mrf.mxu1 }
 0x102   :  { %v266_v8 = vpop.f32.mrf.mxu0 }
 0x103   :  { %v267_v14 = vadd.f32 %v266_v8, %v193_v11 }
 0x104   :  { %v268_v15 = vpop.f32.mrf.mxu0 }
 0x105   :  { %v356_v17 = vadd.f32 %v355_v2, %v267_v14  ;;  %v269_v62 = vadd.f32 %v268_v15, %v197_v13  ;;  %v768_v14 = vld [vmem:[%s4393_s3 + $0x4d8] sm:$0xff] }
 0x106   :  { %v272_v18 = vpop.f32.mrf.mxu0 }
 0x107   :  { %v378_v19 = vmax.f32 %v356_v17, 0.0  ;;  %v358_v20 = vadd.f32 %v357_v5, %v269_v62  ;;  %v273_v21 = vadd.f32 %v272_v18, %v193_v11  ;;  %v769_v5 = vld [vmem:[%s4393_s3 + $0x4e0] sm:$0xff]  ;;  %v835_v62 = vld [vmem:[%s4393_s3 + $0x6f0] sm:$0xff] }
 0x108   :  { %v274_v22 = vpop.f32.mrf.mxu0 }
 0x109   :  { %v391_v63 = vrot.slane %v378_v19, 6  ;;  %v379_v24 = vmax.f32 %v358_v20, 0.0  ;;  %v275_v25 = vadd.f32 %v274_v22, %v197_v13  ;;  %v362_v26 = vadd.f32 %v361_v9, %v273_v21  ;;  %v766_v20 = vld [vmem:[%s4393_s3 + $0x4c8] sm:$0xff] }
 0x10a   :  { %v278_v27 = vpop.f32.mrf.mxu0  ;;  %v834_v22 = vld [vmem:[%s4393_s3 + $0x6e8] sm:$0xff] }
 0x10b   :  { %403 = vst [vmem:[#allocation2 + $0x10] sm:$0xfc] %v391_v63  ;;  %v392_v28 = vrot.slane %v379_v24, 6  ;;  %v380_v29 = vmax.f32 %v362_v26, 0.0  ;;  %v279_v31 = vadd.f32 %v278_v27, %v193_v11  ;;  %v364_v32 = vadd.f32 %v363_v12, %v275_v25  ;;  %v765_v24 = vld [vmem:[%s4393_s3 + $0x4c0] sm:$0xff] }
 0x10c   :  { %v280_v33 = vpop.f32.mrf.mxu0 }
 0x10d   :  { %404 = vst [vmem:[#allocation2] sm:$0xfc] %v392_v28  ;;  %v393_v35 = vrot.slane %v380_v29, 6  ;;  %v381_v36 = vmax.f32 %v364_v32, 0.0  ;;  %v281_v37 = vadd.f32 %v280_v33, %v197_v13  ;;  %v368_v30 = vadd.f32 %v367_v16, %v279_v31  ;;  %v767_v16 = vld [vmem:[%s4393_s3 + $0x4d0] sm:$0xff]  ;;  %v764_v29 = vld [vmem:[%s4393_s3 + $0x4b8] sm:$0xff] }
 0x10e   :  { %v284_v38 = vpop.f32.mrf.mxu0  ;;  %v833_v32 = vld [vmem:[%s4393_s3 + $0x6e0] sm:$0xff] }
 0x10f   :  { %v2851_v39 = vsel %vm390_vm3, %v391_v63, %v393_v35  ;;  %407 = vst [vmem:[#allocation2 + $0x28] sm:$0x3] %v393_v35  ;;  %v395_v40 = vrot.slane %v381_v36, 6  ;;  %v382_v41 = vmax.f32 %v368_v30, 0.0  ;;  %v285_v42 = vadd.f32 %v284_v38, %v193_v11  ;;  %v763_v36 = vld [vmem:[%s4393_s3 + $0x4b0] sm:$0xff] }
 0x110   :  { %v370_v43 = vadd.f32 %v369_v23, %v281_v37  ;;  %v286_v44 = vpop.f32.mrf.mxu0  ;;  %v458_v54 = vrot.slane %v2851_v39, 2  ;;  %v473_v60 = vrot.slane %v2851_v39, 3  ;;  %v444_v7 = vrot.slane %v2851_v39, 1  ;;  %v832_v37 = vld [vmem:[%s4393_s3 + $0x6d8] sm:$0xff] }
 0x111   :  { %v2854_v46 = vsel %vm390_vm3, %v392_v28, %v395_v40  ;;  %408 = vst [vmem:[#allocation2 + $0x20] sm:$0x3] %v395_v40  ;;  %v413_v47 = vrot.slane %v382_v41, 2  ;;  %v287_v48 = vadd.f32 %v286_v44, %v197_v13  ;;  %v374_v49 = vadd.f32 %v373_v34, %v285_v42  ;;  %v762_v42 = vld [vmem:[%s4393_s3 + $0x4a8] sm:$0xff] }
 0x112   :  { %v383_v3 = vmax.f32 %v370_v43, 0.0  ;;  %v2856_v50 = vld [vmem:[#allocation2 + $0x10] sm:$0xff]  ;;  %v447_v4 = vrot.slane %v2854_v46, 1  ;;  %v461_v27 = vrot.slane %v2854_v46, 2  ;;  %v491_v28 = vrot.slane %v2854_v46, 4 }
 0x113   :  { %425 = vst [vmem:[#allocation2 + $0x28] sm:$0xc0] %v413_v47  ;;  %v384_v51 = vmax.f32 %v374_v49, 0.0  ;;  %v376_v52 = vadd.f32 %v375_v45, %v287_v48  ;;  %v457_v53 = vrot.slane %v2856_v50, 2  ;;  %v443_v58 = vrot.slane %v2856_v50, 1  ;;  %v761_v49 = vld [vmem:[%s4393_s3 + $0x4a0] sm:$0xff] }
 0x114   :  { %v414_v55 = vrot.slane %v383_v3, 2  ;;  %v2860_v56 = vld [vmem:[#allocation2] sm:$0xff]  ;;  %v472_v59 = vrot.slane %v2856_v50, 3  ;;  %v487_v41 = vrot.slane %v2856_v50, 4  ;;  %v831_v3 = vld [vmem:[%s4393_s3 + $0x6d0] sm:$0xff] }
 0x115   :  { %v415_v61 = vrot.slane %v384_v51, 2  ;;  %v385_v0 = vmax.f32 %v376_v52, 0.0  ;;  %1009 = vmatprep.mubr.f32.mxu1 %v2860_v56  ;;  %v446_v2 = vrot.slane %v2860_v56, 1  ;;  %v2884_v11 = vsel %vm63_vm1, %v457_v53, %v458_v54 }
 0x116   :  { %426 = vst [vmem:[#allocation2 + $0x20] sm:$0xc0] %v414_v55  ;;  %1010 = vmatmul.mubr.f32.vlgmr.msra.gmra.mxu1 %v2856_v50  ;;  %v2879_v9 = vld [vmem:[#allocation2 + $0x28] sm:$0xf]  ;;  %v2889_v12 = vsel %vm471_vm4, %v472_v59, %v473_v60  ;;  %v445_v17 = vsel %vm55_vm0, %v443_v58, %v444_v7  ;;  %v460_v63 = vrot.slane %v2860_v56, 2  ;;  %v475_v48 = vrot.slane %v2860_v56, 3 }
 0x117   :  { %v2892_v13 = vsel %vm63_vm1, %v413_v47, %v415_v61  ;;  %429 = vst [vmem:[#allocation2 + $0x38] sm:$0x3f] %v415_v61  ;;  %v417_v8 = vrot.slane %v385_v0, 2  ;;  %1124 = vmatpush1.msra.mxu1 %v771_v57  ;;  %1015 = vmatprep.mubr.f32.mxu1 %v2854_v46  ;;  %v448_v15 = vsel %vm55_vm0, %v446_v2, %v447_v4  ;;  %v449_v23 = vrot.slane %v2879_v9, 1  ;;  %v760_v58 = vld [vmem:[%s4393_s3 + $0x498] sm:$0xff]  ;;  %v830_v59 = vld [vmem:[%s4393_s3 + $0x6c8] sm:$0xff] }
 0x118   :  { %1125 = vmatprep.subr.mxu1 %v770_v1  ;;  %1098 = vmatprep.mubr.f32.mxu0 %v448_v15  ;;  %v2906_v18 = vld [vmem:[#allocation2 + $0x20] sm:$0xf]  ;;  %v2927_v26 = vrot.slane %v2892_v13, 4  ;;  %v514_v35 = vrot.slane %v2892_v13, 1  ;;  %v524_v40 = vrot.slane %v2892_v13, 2  ;;  %v2963_v47 = vsel %vm63_vm1, %v460_v63, %v461_v27  ;;  %v828_v63 = vld [vmem:[%s4393_s3 + $0x6b8] sm:$0xff] }
 0x119   :  { %v2909_v19 = vsel %vm63_vm1, %v414_v55, %v417_v8  ;;  %430 = vst [vmem:[#allocation2 + $0x48] sm:$0x3f] %v417_v8  ;;  %1126 = vmatpush1.msra.mxu1 %v769_v5  ;;  %1099 = vmatmul.mubr.f32.vlgmr.msra.gmra.mxu0 %v445_v17  ;;  %v451_v21 = vrot.slane %v2906_v18, 1  ;;  %v450_v43 = vsel %vm55_vm0, %v444_v7, %v449_v23  ;;  %v478_v2 = vrot.slane %v2879_v9, 3  ;;  %v829_v5 = vld [vmem:[%s4393_s3 + $0x6c0] sm:$0xff]  ;;  %v758_v17 = vld [vmem:[%s4393_s3 + $0x488] sm:$0xff] }
 0x11a   :  { %1127 = vmatprep.subr.mxu1 %v768_v14  ;;  %1016 = vmatmul.mubr.f32.gmra.mxu1 %v2851_v39  ;;  %v2924_v25 = vld [vmem:[#allocation2 + $0x28] sm:$0xf0]  ;;  %v517_v30 = vrot.slane %v2909_v19, 1  ;;  %v2958_v45 = vrot.slane %v2909_v19, 4  ;;  %v527_v57 = vrot.slane %v2909_v19, 2  ;;  %v757_v23 = vld [vmem:[%s4393_s3 + $0x480] sm:$0xff] }
 0x11b   :  { %1128 = vmatpush1.msra.mxu1 %v767_v16  ;;  %1213 = vmatpush1.msra.mxu0 %v835_v62  ;;  %v452_v31 = vsel %vm55_vm0, %v447_v4, %v451_v21  ;;  %v549_v33 = vrot.slane %v2924_v25, 4  ;;  %v513_v34 = vrot.slane %v2924_v25, 1  ;;  %v523_v38 = vrot.slane %v2924_v25, 2  ;;  %v759_v4 = vld [vmem:[%s4393_s3 + $0x490] sm:$0xff] }
 0x11c   :  { %1129 = vmatprep.subr.mxu1 %v766_v20  ;;  %1104 = vmatprep.mubr.f32.mxu0 %v452_v31  ;;  %v537_v16 = vrot.slane %v2909_v19, 3  ;;  %v747_v50 = vld [vmem:[%s4393_s3 + $0x430] sm:$0xff]  ;;  %v842_v19 = vld [vmem:[%s4393_s3 + $0x728] sm:$0xff] }
 0x11d   :  { %1130 = vmatpush1.msra.mxu1 %v765_v24  ;;  %1214 = vmatprep.subr.mxu0 %v834_v22  ;;  %v2955_v44 = vld [vmem:[#allocation2 + $0x20] sm:$0xf0]  ;;  %v550_v52 = vsel %vm486_vm5, %v549_v33, %v2927_v26  ;;  %v515_v61 = vsel %vm55_vm0, %v513_v34, %v514_v35  ;;  %v525_v14 = vsel %vm63_vm1, %v523_v38, %v524_v40  ;;  %v756_v33 = vld [vmem:[%s4393_s3 + $0x478] sm:$0xff]  ;;  %v755_v38 = vld [vmem:[%s4393_s3 + $0x470] sm:$0xff] }
 0x11e   :  { %1131 = vmatprep.subr.mxu1 %v764_v29  ;;  %1215 = vmatpush1.msra.mxu0 %v833_v32  ;;  %v551_v51 = vrot.slane %v2955_v44, 4  ;;  %v516_v53 = vrot.slane %v2955_v44, 1  ;;  %v2976_v55 = vld [vmem:[#allocation2 + $0x38] sm:$0xff]  ;;  %v553_v29 = vrot.slane %v515_v61, 4 }
 0x11f   :  { %1132 = vmatpush1.msra.mxu1 %v763_v36  ;;  %1216 = vmatprep.subr.mxu0 %v832_v37  ;;  %v519_v0 = vrot.slane %v2976_v55, 1  ;;  %v545_v1 = vrot.slane %v2976_v55, 4  ;;  %v529_v15 = vrot.slane %v2976_v55, 2  ;;  %v559_v37 = vrot.slane %v525_v14, 4 }
 0x120   :  { %1133 = vmatprep.subr.mxu1 %v762_v42  ;;  %1105 = vmatmul.mubr.f32.gmra.mxu0 %v450_v43  ;;  %v2995_v7 = vld [vmem:[#allocation2 + $0x48] sm:$0xff]  ;;  %v518_v8 = vsel %vm55_vm0, %v516_v53, %v517_v30  ;;  %v552_v62 = vsel %vm486_vm5, %v551_v51, %v2958_v45  ;;  %v827_v42 = vld [vmem:[%s4393_s3 + $0x6b0] sm:$0xff] }
 0x121   :  { %1134 = vmatpush1.msra.mxu1 %v761_v49  ;;  %1217 = vmatpush1.msra.mxu0 %v831_v3  ;;  %v521_v20 = vrot.slane %v2995_v7, 1  ;;  %v547_v21 = vrot.slane %v2995_v7, 4  ;;  %v520_v22 = vsel %vm55_vm0, %v514_v35, %v519_v0  ;;  %v556_v24 = vrot.slane %v518_v8, 4  ;;  %v754_v51 = vld [vmem:[%s4393_s3 + $0x468] sm:$0xff] }
 0x122   :  { %1135 = vmatprep.subr.mxu1 %v760_v58  ;;  %1218 = vmatprep.subr.mxu0 %v830_v59  ;;  %v554_v31 = vrot.slane %v520_v22, 4  ;;  %v531_v32 = vrot.slane %v2995_v7, 2  ;;  %v3026_v35 = vsel %vm486_vm5, %v2927_v26, %v545_v1  ;;  %v577_v36 = vrot.slane %v519_v0, 4  ;;  %v826_v53 = vld [vmem:[%s4393_s3 + $0x6a8] sm:$0xff] }
 0x123   :  { %1136 = vmatpush1.msra.mxu1 %v759_v4  ;;  %1219 = vmatpush1.msra.mxu0 %v829_v5  ;;  %v522_v34 = vsel %vm55_vm0, %v517_v30, %v521_v20  ;;  %v3038_v30 = vsel %vm486_vm5, %v2958_v45, %v547_v21  ;;  %v572_v49 = vrot.slane %v3026_v35, 4  ;;  %v579_v3 = vrot.slane %v521_v20, 4  ;;  %v753_v5 = vld [vmem:[%s4393_s3 + $0x460] sm:$0xff] }
 0x124   :  { %1137 = vmatprep.subr.mxu1 %v758_v17  ;;  %1021 = vmatprep.mubr.f32.mxu1 %v552_v62  ;;  %v557_v43 = vrot.slane %v522_v34, 4  ;;  %v575_v58 = vrot.slane %v3038_v30, 4  ;;  %v3051_v59 = vsel %vm63_vm1, %v527_v57, %v531_v32  ;;  %v530_v61 = vsel %vm63_vm1, %v524_v40, %v529_v15  ;;  %v825_v40 = vld [vmem:[%s4393_s3 + $0x6a0] sm:$0xff]  ;;  %v751_v34 = vld [vmem:[%s4393_s3 + $0x450] sm:$0xff] }
 0x125   :  { %1138 = vmatpush1.msra.mxu1 %v757_v23  ;;  %1220 = vmatprep.subr.mxu0 %v828_v63  ;;  %v583_v0 = vrot.slane %v531_v32, 4  ;;  %v555_v8 = vsel %vm486_vm5, %v553_v29, %v554_v31  ;;  %v563_v14 = vrot.slane %v3051_v59, 4  ;;  %v560_v17 = vrot.slane %v530_v61, 4  ;;  %v752_v23 = vld [vmem:[%s4393_s3 + $0x458] sm:$0xff]  ;;  %v893_v59 = vld [vmem:[%s4393_s3 + $0x8c0] sm:$0xff] }
 0x126   :  { %1139 = vmatprep.subr.mxu1 %v756_v33  ;;  %1022 = vmatmul.mubr.f32.gmra.mxu1 %v550_v52  ;;  %v558_v4 = vsel %vm486_vm5, %v556_v24, %v557_v43  ;;  %v3066_v62 = vsel %vm486_vm5, %v554_v31, %v577_v36  ;;  %v581_v52 = vrot.slane %v529_v15, 4  ;;  %v3071_v20 = vsel %vm471_vm4, %v473_v60, %v478_v2  ;;  %v824_v2 = vld [vmem:[%s4393_s3 + $0x698] sm:$0xff]  ;;  %v823_v36 = vld [vmem:[%s4393_s3 + $0x690] sm:$0xff] }
 0x127   :  { %1140 = vmatpush1.msra.mxu1 %v755_v38  ;;  %1221 = vmatpush1.msra.mxu0 %v827_v42  ;;  %v536_v22 = vrot.slane %v2955_v44, 3  ;;  %v580_v63 = vsel %vm486_vm5, %v557_v43, %v579_v3  ;;  %v3079_v24 = vsel %vm486_vm5, %v559_v37, %v560_v17  ;;  %v3084_v15 = vsel %vm486_vm5, %v563_v14, %v583_v0  ;;  %v750_v43 = vld [vmem:[%s4393_s3 + $0x448] sm:$0xff] }
 0x128   :  { %1141 = vmatprep.subr.mxu1 %v754_v51  ;;  %1222 = vmatprep.subr.mxu0 %v826_v53  ;;  %v541_v60 = vrot.slane %v2995_v7, 3  ;;  %v3091_v29 = vsel %vm486_vm5, %v560_v17, %v581_v52  ;;  %v490_v32 = vrot.slane %v2860_v56, 4  ;;  %v533_v33 = vrot.slane %v2924_v25, 3  ;;  %v821_v17 = vld [vmem:[%s4393_s3 + $0x680] sm:$0xff]  ;;  %v746_v7 = vld [vmem:[%s4393_s3 + $0x428] sm:$0xff]  ;;  %v744_v56 = vld [vmem:[%s4393_s3 + $0x418] sm:$0xff] }
 0x129   :  { %1110 = vmatprep.mubr.f32.mxu0 %v558_v4  ;;  %1142 = vmatpush1.msra.mxu1 %v753_v5  ;;  %v538_v31 = vsel %vm471_vm4, %v536_v22, %v537_v16  ;;  %v534_v42 = vrot.slane %v2892_v13, 3  ;;  %v539_v25 = vrot.slane %v2976_v55, 3  ;;  %v822_v13 = vld [vmem:[%s4393_s3 + $0x688] sm:$0xff]  ;;  %v495_v5 = vrot.slane %v2906_v18, 4 }
 0x12a   :  { %1223 = vmatpush1.msra.mxu0 %v825_v40  ;;  %1027 = vmatprep.mubr.f32.mxu1 %v3038_v30  ;;  %v542_v37 = vsel %vm471_vm4, %v537_v16, %v541_v60  ;;  %v568_v38 = vrot.slane %v538_v31, 4  ;;  %v3116_v51 = vsel %vm486_vm5, %v490_v32, %v491_v28  ;;  %v587_v53 = vrot.slane %v541_v60, 4  ;;  %v748_v60 = vld [vmem:[%s4393_s3 + $0x438] sm:$0xff] }
 0x12b   :  { %1111 = vmatmul.mubr.f32.gmra.mxu0 %v555_v8  ;;  %1143 = vmatprep.subr.mxu1 %v752_v23  ;;  %v569_v3 = vrot.slane %v542_v37, 4  ;;  %v488_v16 = vrot.slane %v2851_v39, 4  ;;  %v535_v61 = vsel %vm471_vm4, %v533_v33, %v534_v42  ;;  %v540_v0 = vsel %vm471_vm4, %v534_v42, %v539_v25  ;;  %v749_v8 = vld [vmem:[%s4393_s3 + $0x440] sm:$0xff]  ;;  %v838_v39 = vld [vmem:[%s4393_s3 + $0x708] sm:$0xff] }
 0x12c   :  { %1224 = vmatprep.subr.mxu0 %v824_v2  ;;  %1028 = vmatmul.mubr.f32.gmra.mxu1 %v3026_v35  ;;  %v585_v4 = vrot.slane %v539_v25, 4  ;;  %v565_v52 = vrot.slane %v535_v61, 4  ;;  %v566_v22 = vrot.slane %v540_v0, 4  ;;  %v3150_v31 = vsel %vm486_vm5, %v491_v28, %v495_v5  ;;  %v817_v25 = vld [vmem:[%s4393_s3 + $0x660] sm:$0xff]  ;;  %v815_v35 = vld [vmem:[%s4393_s3 + $0x650] sm:$0xff]  ;;  %v810_v5 = vld [vmem:[%s4393_s3 + $0x628] sm:$0xff] }
 0x12d   :  { %1144 = vmatpush1.msra.mxu1 %v751_v34  ;;  %1225 = vmatpush1.msra.mxu0 %v823_v36  ;;  %v3133_v40 = vsel %vm486_vm5, %v568_v38, %v569_v3  ;;  %v3136_v23 = vsel %vm486_vm5, %v569_v3, %v587_v53  ;;  %v3145_v2 = vsel %vm486_vm5, %v487_v41, %v488_v16  ;;  %v493_v32 = vrot.slane %v2879_v9, 4  ;;  %v741_v3 = vld [vmem:[%s4393_s3 + $0x400] sm:$0xff]  ;;  %v803_v61 = vld [vmem:[%s4393_s3 + $0x5f0] sm:$0xff] }
 0x12e   :  { %1145 = vmatprep.subr.mxu1 %v750_v43  ;;  %1187 = vmatprep.mubr.f32.mxu1 %v2963_v47  ;;  %v574_v33 = vrot.slane %v2958_v45, 4  ;;  %v820_v47 = vld [vmem:[%s4393_s3 + $0x678] sm:$0xff]  ;;  %v3161_v41 = vsel %vm486_vm5, %v565_v52, %v566_v22  ;;  %v3164_v28 = vsel %vm486_vm5, %v566_v22, %v585_v4  ;;  %v571_v34 = vrot.slane %v2927_v26, 4  ;;  %v814_v43 = vld [vmem:[%s4393_s3 + $0x648] sm:$0xff]  ;;  %v813_v53 = vld [vmem:[%s4393_s3 + $0x640] sm:$0xff] }
 0x12f   :  { %1226 = vmatprep.subr.mxu0 %v822_v13  ;;  %1116 = vmatprep.mubr.f32.mxu0 %v580_v63  ;;  %v591_v45 = vrot.slane %v547_v21, 4  ;;  %v819_v63 = vld [vmem:[%s4393_s3 + $0x670] sm:$0xff]  ;;  %v476_v36 = vrot.slane %v2854_v46, 3  ;;  %v3174_v37 = vsel %vm486_vm5, %v488_v16, %v493_v32  ;;  %v589_v26 = vrot.slane %v545_v1, 4  ;;  %v818_v21 = vld [vmem:[%s4393_s3 + $0x668] sm:$0xff]  ;;  %v804_v16 = vld [vmem:[%s4393_s3 + $0x5f8] sm:$0xff] }
 0x130   :  { %1146 = vmatpush1.msra.mxu1 %v749_v8  ;;  %1227 = vmatpush1.msra.mxu0 %v821_v17  ;;  %v3179_v38 = vsel %vm486_vm5, %v574_v33, %v575_v58  ;;  %v3193_v42 = vsel %vm486_vm5, %v571_v34, %v572_v49  ;;  %v812_v13 = vld [vmem:[%s4393_s3 + $0x638] sm:$0xff]  ;;  %v811_v0 = vld [vmem:[%s4393_s3 + $0x630] sm:$0xff]  ;;  %v802_v4 = vld [vmem:[%s4393_s3 + $0x5e8] sm:$0xff] }
 0x131   :  { %1117 = vmatmul.mubr.f32.gmra.mxu0 %v3066_v62  ;;  %1147 = vmatprep.subr.mxu1 %v748_v60  ;;  %v3198_v55 = vsel %vm486_vm5, %v575_v58, %v591_v45  ;;  %v477_v1 = vsel %vm471_vm4, %v475_v48, %v476_v36  ;;  %v745_v62 = vld [vmem:[%s4393_s3 + $0x420] sm:$0xff]  ;;  %v3214_v30 = vsel %vm486_vm5, %v572_v49, %v589_v26  ;;  %v816_v48 = vld [vmem:[%s4393_s3 + $0x658] sm:$0xff]  ;;  %v743_v58 = vld [vmem:[%s4393_s3 + $0x410] sm:$0xff] }
 0x132   :  { %1228 = vmatprep.subr.mxu0 %v820_v47  ;;  %1148 = vmatpush1.msra.mxu1 %v747_v50  ;;  %v742_v49 = vld [vmem:[%s4393_s3 + $0x408] sm:$0xff]  ;;  %v801_v8 = vld [vmem:[%s4393_s3 + $0x5e0] sm:$0xff]  ;;  %v800_v52 = vld [vmem:[%s4393_s3 + $0x5d8] sm:$0xff] }
 0x133   :  { %1229 = vmatpush1.msra.mxu0 %v819_v63  ;;  %1276 = vmatprep.mubr.f32.mxu0 %v477_v1  ;;  %v809_v17 = vld [vmem:[%s4393_s3 + $0x620] sm:$0xff]  ;;  %v808_v22 = vld [vmem:[%s4393_s3 + $0x618] sm:$0xff]  ;;  %v799_v60 = vld [vmem:[%s4393_s3 + $0x5d0] sm:$0xff] }
 0x134   :  { %1149 = vmatprep.subr.mxu1 %v746_v7  ;;  %1230 = vmatprep.subr.mxu0 %v818_v21  ;;  %v807_v32 = vld [vmem:[%s4393_s3 + $0x610] sm:$0xff]  ;;  %v798_v33 = vld [vmem:[%s4393_s3 + $0x5c8] sm:$0xff]  ;;  %v797_v50 = vld [vmem:[%s4393_s3 + $0x5c0] sm:$0xff] }
 0x135   :  { %1150 = vmatpush1.msra.mxu1 %v745_v62  ;;  %1231 = vmatpush1.msra.mxu0 %v817_v25  ;;  %v806_v47 = vld [vmem:[%s4393_s3 + $0x608] sm:$0xff]  ;;  %v805_v34 = vld [vmem:[%s4393_s3 + $0x600] sm:$0xff]  ;;  %v796_v45 = vld [vmem:[%s4393_s3 + $0x5b8] sm:$0xff] }
 0x136   :  { %1151 = vmatprep.subr.mxu1 %v744_v56  ;;  %1232 = vmatprep.subr.mxu0 %v816_v48  ;;  %v868_v63 = vld [vmem:[%s4393_s3 + $0x7f8] sm:$0xff]  ;;  %v795_v26 = vld [vmem:[%s4393_s3 + $0x5b0] sm:$0xff]  ;;  %v794_v21 = vld [vmem:[%s4393_s3 + $0x5a8] sm:$0xff] }
 0x137   :  { %1152 = vmatpush1.msra.mxu1 %v743_v58  ;;  %1233 = vmatpush1.msra.mxu0 %v815_v35  ;;  %v867_v7 = vld [vmem:[%s4393_s3 + $0x7f0] sm:$0xff]  ;;  %v866_v1 = vld [vmem:[%s4393_s3 + $0x7e8] sm:$0xff]  ;;  %v793_v62 = vld [vmem:[%s4393_s3 + $0x5a0] sm:$0xff] }
 0x138   :  { %1153 = vmatprep.subr.mxu1 %v742_v49  ;;  %1234 = vmatprep.subr.mxu0 %v814_v43  ;;  %v865_v25 = vld [vmem:[%s4393_s3 + $0x7e0] sm:$0xff]  ;;  %v792_v56 = vld [vmem:[%s4393_s3 + $0x598] sm:$0xff]  ;;  %v791_v58 = vld [vmem:[%s4393_s3 + $0x590] sm:$0xff] }
 0x139   :  { %1154 = vmatpush1.msra.mxu1 %v741_v3  ;;  %1235 = vmatpush1.msra.mxu0 %v813_v53  ;;  %v864_v48 = vld [vmem:[%s4393_s3 + $0x7d8] sm:$0xff]  ;;  %v863_v35 = vld [vmem:[%s4393_s3 + $0x7d0] sm:$0xff]  ;;  %v790_v49 = vld [vmem:[%s4393_s3 + $0x588] sm:$0xff] }
 0x13a   :  { %1155 = vmatprep.subr.mxu1 %v804_v16  ;;  %1236 = vmatprep.subr.mxu0 %v812_v13  ;;  %v862_v43 = vld [vmem:[%s4393_s3 + $0x7c8] sm:$0xff]  ;;  %v789_v3 = vld [vmem:[%s4393_s3 + $0x580] sm:$0xff]  ;;  %v788_v16 = vld [vmem:[%s4393_s3 + $0x578] sm:$0xff] }
 0x13b   :  { %1156 = vmatpush2.msra.mxu1 %v803_v61  ;;  %1237 = vmatpush1.msra.mxu0 %v811_v0  ;;  %v861_v53 = vld [vmem:[%s4393_s3 + $0x7c0] sm:$0xff]  ;;  %v860_v13 = vld [vmem:[%s4393_s3 + $0x7b8] sm:$0xff]  ;;  %v787_v61 = vld [vmem:[%s4393_s3 + $0x570] sm:$0xff] }
 0x13c   :  { %1157 = vmatprep.subr.mxu1 %v802_v4  ;;  %1238 = vmatprep.subr.mxu0 %v810_v5  ;;  %v859_v0 = vld [vmem:[%s4393_s3 + $0x7b0] sm:$0xff]  ;;  %v786_v4 = vld [vmem:[%s4393_s3 + $0x568] sm:$0xff] }
 0x13d   :  { %1158 = vmatpush2.msra.mxu1 %v801_v8  ;;  %1239 = vmatpush1.msra.mxu0 %v809_v17  ;;  %v858_v5 = vld [vmem:[%s4393_s3 + $0x7a8] sm:$0xff]  ;;  %v785_v8 = vld [vmem:[%s4393_s3 + $0x560] sm:$0xff] }
 0x13e   :  { %1159 = vmatprep.subr.mxu1 %v800_v52  ;;  %1240 = vmatprep.subr.mxu0 %v808_v22  ;;  %v857_v17 = vld [vmem:[%s4393_s3 + $0x7a0] sm:$0xff]  ;;  %v784_v52 = vld [vmem:[%s4393_s3 + $0x558] sm:$0xff]  ;;  %v886_v46 = vld [vmem:[%s4393_s3 + $0x888] sm:$0xff] }
 0x13f   :  { %1160 = vmatpush2.msra.mxu1 %v799_v60  ;;  %1241 = vmatpush1.msra.mxu0 %v807_v32  ;;  %v856_v22 = vld [vmem:[%s4393_s3 + $0x798] sm:$0xff]  ;;  %v783_v60 = vld [vmem:[%s4393_s3 + $0x550] sm:$0xff] }
 0x140   :  { %1161 = vmatprep.subr.mxu1 %v798_v33  ;;  %1242 = vmatprep.subr.mxu0 %v806_v47  ;;  %v855_v32 = vld [vmem:[%s4393_s3 + $0x790] sm:$0xff]  ;;  %v782_v33 = vld [vmem:[%s4393_s3 + $0x548] sm:$0xff] }
 0x141   :  { %1162 = vmatpush2.msra.mxu1 %v797_v50  ;;  %1243 = vmatpush1.msra.mxu0 %v805_v34  ;;  %v854_v47 = vld [vmem:[%s4393_s3 + $0x788] sm:$0xff]  ;;  %v781_v50 = vld [vmem:[%s4393_s3 + $0x540] sm:$0xff] }
 0x142   :  { %1163 = vmatprep.subr.mxu1 %v796_v45  ;;  %1244 = vmatprep.subr.mxu0 %v868_v63  ;;  %v853_v34 = vld [vmem:[%s4393_s3 + $0x780] sm:$0xff]  ;;  %v780_v45 = vld [vmem:[%s4393_s3 + $0x538] sm:$0xff] }
 0x143   :  { %1164 = vmatpush2.msra.mxu1 %v795_v26  ;;  %1245 = vmatpush2.msra.mxu0 %v867_v7  ;;  %v852_v63 = vld [vmem:[%s4393_s3 + $0x778] sm:$0xff]  ;;  %v779_v26 = vld [vmem:[%s4393_s3 + $0x530] sm:$0xff] }
 0x144   :  { %1165 = vmatprep.subr.mxu1 %v794_v21  ;;  %1246 = vmatprep.subr.mxu0 %v866_v1  ;;  %v851_v7 = vld [vmem:[%s4393_s3 + $0x770] sm:$0xff]  ;;  %v778_v21 = vld [vmem:[%s4393_s3 + $0x528] sm:$0xff] }
 0x145   :  { %1166 = vmatpush2.msra.mxu1 %v793_v62  ;;  %1247 = vmatpush2.msra.mxu0 %v865_v25  ;;  %v850_v1 = vld [vmem:[%s4393_s3 + $0x768] sm:$0xff]  ;;  %v777_v62 = vld [vmem:[%s4393_s3 + $0x520] sm:$0xff] }
 0x146   :  { %1167 = vmatprep.subr.mxu1 %v792_v56  ;;  %1248 = vmatprep.subr.mxu0 %v864_v48  ;;  %v849_v25 = vld [vmem:[%s4393_s3 + $0x760] sm:$0xff]  ;;  %v776_v56 = vld [vmem:[%s4393_s3 + $0x518] sm:$0xff] }
 0x147   :  { %1168 = vmatpush2.msra.mxu1 %v791_v58  ;;  %1249 = vmatpush2.msra.mxu0 %v863_v35  ;;  %v848_v48 = vld [vmem:[%s4393_s3 + $0x758] sm:$0xff]  ;;  %v775_v58 = vld [vmem:[%s4393_s3 + $0x510] sm:$0xff] }
 0x148   :  { %1169 = vmatprep.subr.mxu1 %v790_v49  ;;  %1250 = vmatprep.subr.mxu0 %v862_v43  ;;  %v847_v35 = vld [vmem:[%s4393_s3 + $0x750] sm:$0xff]  ;;  %v526_v49 = vrot.slane %v2955_v44, 2  ;;  %v774_v43 = vld [vmem:[%s4393_s3 + $0x508] sm:$0xff]  ;;  %v845_v44 = vld [vmem:[%s4393_s3 + $0x740] sm:$0xff] }
 0x149   :  { %1170 = vmatpush2.msra.mxu1 %v789_v3  ;;  %1251 = vmatpush2.msra.mxu0 %v861_v53  ;;  %v846_v3 = vld [vmem:[%s4393_s3 + $0x748] sm:$0xff]  ;;  %v773_v53 = vld [vmem:[%s4393_s3 + $0x500] sm:$0xff] }
 0x14a   :  { %1171 = vmatprep.subr.mxu1 %v788_v16  ;;  %1252 = vmatprep.subr.mxu0 %v860_v13  ;;  %v465_v16 = vrot.slane %v2906_v18, 2  ;;  %v844_v13 = vld [vmem:[%s4393_s3 + $0x738] sm:$0xff] }
 0x14b   :  { %1172 = vmatpush2.msra.mxu1 %v787_v61  ;;  %1253 = vmatpush2.msra.mxu0 %v859_v0  ;;  %v900_v61 = vld [vmem:[%s4393_s3 + $0x8f8] sm:$0xff]  ;;  %v528_v0 = vsel %vm63_vm1, %v526_v49, %v527_v57  ;;  %v898_v57 = vld [vmem:[%s4393_s3 + $0x8e8] sm:$0xff]  ;;  %v931_v49 = vld [vmem:[%s4393_s3 + $0x9f0] sm:$0xff] }
 0x14c   :  { %1173 = vmatprep.subr.mxu1 %v786_v4  ;;  %1254 = vmatprep.subr.mxu0 %v858_v5  ;;  %v843_v4 = vld [vmem:[%s4393_s3 + $0x730] sm:$0xff] }
 0x14d   :  { %1174 = vmatpush2.msra.mxu1 %v785_v8  ;;  %1255 = vmatpush2.msra.mxu0 %v857_v17  ;;  %v899_v5 = vld [vmem:[%s4393_s3 + $0x8f0] sm:$0xff]  ;;  %v466_v8 = vsel %vm63_vm1, %v461_v27, %v465_v16  ;;  %v463_v17 = vrot.slane %v2879_v9, 2  ;;  %v897_v27 = vld [vmem:[%s4393_s3 + $0x8e0] sm:$0xff]  ;;  %v896_v9 = vld [vmem:[%s4393_s3 + $0x8d8] sm:$0xff] }
 0x14e   :  { %1175 = vmatprep.subr.mxu1 %v784_v52  ;;  %1256 = vmatprep.subr.mxu0 %v856_v22  ;;  %v562_v52 = vrot.slane %v528_v0, 4  ;;  %v840_v22 = vld [vmem:[%s4393_s3 + $0x718] sm:$0xff]  ;;  %v926_v16 = vld [vmem:[%s4393_s3 + $0x9c8] sm:$0xff]  ;;  %v923_v0 = vld [vmem:[%s4393_s3 + $0x9b0] sm:$0xff] }
 0x14f   :  { %1176 = vmatpush2.msra.mxu1 %v783_v60  ;;  %1257 = vmatpush2.msra.mxu0 %v855_v32  ;;  %v464_v60 = vsel %vm63_vm1, %v458_v54, %v463_v17  ;;  %v839_v32 = vld [vmem:[%s4393_s3 + $0x710] sm:$0xff]  ;;  %v894_v54 = vld [vmem:[%s4393_s3 + $0x8c8] sm:$0xff]  ;;  %v917_v17 = vld [vmem:[%s4393_s3 + $0x980] sm:$0xff] }
 0x150   :  { %1177 = vmatprep.subr.mxu1 %v782_v33  ;;  %1258 = vmatprep.subr.mxu0 %v854_v47  ;;  %v895_v33 = vld [vmem:[%s4393_s3 + $0x8d0] sm:$0xff]  ;;  %v564_v47 = vsel %vm486_vm5, %v562_v52, %v563_v14  ;;  %v480_v14 = vrot.slane %v2906_v18, 3  ;;  %v890_v18 = vld [vmem:[%s4393_s3 + $0x8a8] sm:$0xff] }
 0x151   :  { %1178 = vmatpush2.msra.mxu1 %v781_v50  ;;  %1259 = vmatpush2.msra.mxu0 %v853_v34  ;;  %v837_v50 = vld [vmem:[%s4393_s3 + $0x700] sm:$0xff]  ;;  %v892_v34 = vld [vmem:[%s4393_s3 + $0x8b8] sm:$0xff]  ;;  %v914_v52 = vld [vmem:[%s4393_s3 + $0x968] sm:$0xff] }
 0x152   :  { %1179 = vmatprep.subr.mxu1 %v780_v45  ;;  %1260 = vmatprep.subr.mxu0 %v852_v63  ;;  %v891_v45 = vld [vmem:[%s4393_s3 + $0x8b0] sm:$0xff]  ;;  %v481_v63 = vsel %vm471_vm4, %v476_v36, %v480_v14  ;;  %v884_v36 = vld [vmem:[%s4393_s3 + $0x878] sm:$0xff] }
 0x153   :  { %1180 = vmatpush2.msra.mxu1 %v779_v26  ;;  %1261 = vmatpush2.msra.mxu0 %v851_v7  ;;  %v889_v26 = vld [vmem:[%s4393_s3 + $0x8a0] sm:$0xff]  ;;  %v903_v14 = vld [vmem:[%s4393_s3 + $0x910] sm:$0xff] }
 0x154   :  { %1181 = vmatprep.subr.mxu1 %v778_v21  ;;  %1262 = vmatprep.subr.mxu0 %v850_v1  ;;  %v877_v7 = vld [vmem:[%s4393_s3 + $0x840] sm:$0xff]  ;;  %v876_v21 = vld [vmem:[%s4393_s3 + $0x838] sm:$0xff]  ;;  %v875_v1 = vld [vmem:[%s4393_s3 + $0x830] sm:$0xff] }
 0x155   :  { %1182 = vmatpush2.msra.mxu1 %v777_v62  ;;  %1263 = vmatpush2.msra.mxu0 %v849_v25  ;;  %v873_v62 = vld [vmem:[%s4393_s3 + $0x820] sm:$0xff]  ;;  %v872_v25 = vld [vmem:[%s4393_s3 + $0x818] sm:$0xff] }
 0x156   :  { %1183 = vmatprep.subr.mxu1 %v776_v56  ;;  %1264 = vmatprep.subr.mxu0 %v848_v48  ;;  %v871_v56 = vld [vmem:[%s4393_s3 + $0x810] sm:$0xff]  ;;  %v870_v48 = vld [vmem:[%s4393_s3 + $0x808] sm:$0xff] }
 0x157   :  { %1184 = vmatpush2.msra.mxu1 %v775_v58  ;;  %1265 = vmatpush2.msra.mxu0 %v847_v35  ;;  %v869_v58 = vld [vmem:[%s4393_s3 + $0x800] sm:$0xff]  ;;  %v932_v35 = vld [vmem:[%s4393_s3 + $0x9f8] sm:$0xff] }
 0x158   :  { %1185 = vmatprep.subr.mxu1 %v774_v43  ;;  %1266 = vmatprep.subr.mxu0 %v846_v3  ;;  %v930_v43 = vld [vmem:[%s4393_s3 + $0x9e8] sm:$0xff]  ;;  %v929_v3 = vld [vmem:[%s4393_s3 + $0x9e0] sm:$0xff] }
 0x159   :  { %1186 = vmatpush2.msra.mxu1 %v773_v53  ;;  %1267 = vmatpush2.msra.mxu0 %v845_v44  ;;  %v928_v53 = vld [vmem:[%s4393_s3 + $0x9d8] sm:$0xff]  ;;  %v927_v44 = vld [vmem:[%s4393_s3 + $0x9d0] sm:$0xff] }
 0x15a   :  { %1188 = vmatmul.mubr.f32.vlgmr.msra.gmra.mxu1 %v2884_v11  ;;  %1268 = vmatprep.subr.mxu0 %v844_v13  ;;  %v841_v11 = vld [vmem:[%s4393_s3 + $0x720] sm:$0xff] }
 0x15b   :  { %1301 = vmatprep.subr.mxu1 %v900_v61  ;;  %1193 = vmatprep.mubr.f32.mxu1 %v466_v8  ;;  %v925_v13 = vld [vmem:[%s4393_s3 + $0x9c0] sm:$0xff]  ;;  %v924_v61 = vld [vmem:[%s4393_s3 + $0x9b8] sm:$0xff] }
 0x15c   :  { %1269 = vmatpush2.msra.mxu0 %v843_v4  ;;  %1302 = vmatpush1.msra.mxu1 %v899_v5  ;;  %v922_v4 = vld [vmem:[%s4393_s3 + $0x9a8] sm:$0xff]  ;;  %v921_v5 = vld [vmem:[%s4393_s3 + $0x9a0] sm:$0xff]  ;;  %v920_v8 = vld [vmem:[%s4393_s3 + $0x998] sm:$0xff] }
 0x15d   :  { %1270 = vmatprep.subr.mxu0 %v842_v19  ;;  %1303 = vmatprep.subr.mxu1 %v898_v57  ;;  %v919_v19 = vld [vmem:[%s4393_s3 + $0x990] sm:$0xff]  ;;  %v918_v57 = vld [vmem:[%s4393_s3 + $0x988] sm:$0xff] }
 0x15e   :  { %1271 = vmatpush2.msra.mxu0 %v841_v11  ;;  %1304 = vmatpush1.msra.mxu1 %v897_v27  ;;  %v916_v11 = vld [vmem:[%s4393_s3 + $0x978] sm:$0xff]  ;;  %v915_v27 = vld [vmem:[%s4393_s3 + $0x970] sm:$0xff] }
 0x15f   :  { %1194 = vmatmul.mubr.f32.gmra.mxu1 %v464_v60  ;;  %1272 = vmatprep.subr.mxu0 %v840_v22  ;;  %v913_v22 = vld [vmem:[%s4393_s3 + $0x960] sm:$0xff]  ;;  %v911_v60 = vld [vmem:[%s4393_s3 + $0x950] sm:$0xff] }
 0x160   :  { %1305 = vmatprep.subr.mxu1 %v896_v9  ;;  %1199 = vmatprep.mubr.f32.mxu1 %v564_v47  ;;  %v912_v9 = vld [vmem:[%s4393_s3 + $0x958] sm:$0xff] }
 0x161   :  { %1273 = vmatpush2.msra.mxu0 %v839_v32  ;;  %1306 = vmatpush1.msra.mxu1 %v895_v33  ;;  %v910_v32 = vld [vmem:[%s4393_s3 + $0x948] sm:$0xff]  ;;  %v909_v33 = vld [vmem:[%s4393_s3 + $0x940] sm:$0xff]  ;;  %v908_v47 = vld [vmem:[%s4393_s3 + $0x938] sm:$0xff] }
 0x162   :  { %1274 = vmatprep.subr.mxu0 %v838_v39  ;;  %1307 = vmatprep.subr.mxu1 %v894_v54  ;;  %v907_v39 = vld [vmem:[%s4393_s3 + $0x930] sm:$0xff]  ;;  %v906_v54 = vld [vmem:[%s4393_s3 + $0x928] sm:$0xff] }
 0x163   :  { %1275 = vmatpush2.msra.mxu0 %v837_v50  ;;  %1308 = vmatpush1.msra.mxu1 %v893_v59  ;;  %v905_v50 = vld [vmem:[%s4393_s3 + $0x920] sm:$0xff]  ;;  %v904_v59 = vld [vmem:[%s4393_s3 + $0x918] sm:$0xff] }
 0x164   :  { %1200 = vmatmul.mubr.f32.gmra.mxu1 %v3079_v24  ;;  %1277 = vmatmul.mubr.f32.vlgmr.msra.gmra.mxu0 %v2889_v12  ;;  %v888_v12 = vld [vmem:[%s4393_s3 + $0x898] sm:$0xff]  ;;  %v887_v24 = vld [vmem:[%s4393_s3 + $0x890] sm:$0xff] }
 0x165   :  { %1309 = vmatprep.subr.mxu1 %v892_v34  ;;  %1205 = vmatprep.mubr.f32.mxu1 %v3084_v15  ;;  %v885_v15 = vld [vmem:[%s4393_s3 + $0x880] sm:$0xff]  ;;  %v902_v34 = vld [vmem:[%s4393_s3 + $0x908] sm:$0xff] }
 0x166   :  { %1282 = vmatprep.mubr.f32.mxu0 %v481_v63  ;;  %1310 = vmatpush1.msra.mxu1 %v891_v45  ;;  %v901_v45 = vld [vmem:[%s4393_s3 + $0x900] sm:$0xff]  ;;  %v1571_v63 = vld [vmem:[%s4395_s5 + $0xb8] sm:$0xff] }
 0x167   :  { %1311 = vmatprep.subr.mxu1 %v890_v18  ;;  %v1579_v18 = vld [vmem:[%s4395_s5 + $0xf8] sm:$0xff] }
 0x168   :  { %1312 = vmatpush1.msra.mxu1 %v889_v26  ;;  %1283 = vmatmul.mubr.f32.gmra.mxu0 %v3071_v20  ;;  %v883_v20 = vld [vmem:[%s4393_s3 + $0x870] sm:$0xff]  ;;  %v1643_v26 = vld [vmem:[%s4395_s5 + $0x2f8] sm:$0xff] }
 0x169   :  { %1206 = vmatmul.mubr.f32.gmra.mxu1 %v3091_v29  ;;  %1313 = vmatprep.subr.mxu1 %v888_v12  ;;  %v882_v29 = vld [vmem:[%s4393_s3 + $0x868] sm:$0xff]  ;;  %v1570_v12 = vld [vmem:[%s4395_s5 + $0xb0] sm:$0xff] }
 0x16a   :  { %1288 = vmatprep.mubr.f32.mxu0 %v3133_v40  ;;  %1314 = vmatpush1.msra.mxu1 %v887_v24  ;;  %v881_v40 = vld [vmem:[%s4393_s3 + $0x860] sm:$0xff]  ;;  %v1642_v24 = vld [vmem:[%s4395_s5 + $0x2f0] sm:$0xff] }
 0x16b   :  { %1365 = vmatprep.mubr.f32.mxu1 %v3116_v51  ;;  %1315 = vmatprep.subr.mxu1 %v886_v46  ;;  %v880_v51 = vld [vmem:[%s4393_s3 + $0x858] sm:$0xff]  ;;  %v1569_v46 = vld [vmem:[%s4395_s5 + $0xa8] sm:$0xff] }
 0x16c   :  { %1316 = vmatpush1.msra.mxu1 %v885_v15  ;;  %1289 = vmatmul.mubr.f32.gmra.mxu0 %v3161_v41  ;;  %v879_v41 = vld [vmem:[%s4393_s3 + $0x850] sm:$0xff]  ;;  %v1641_v15 = vld [vmem:[%s4395_s5 + $0x2e8] sm:$0xff] }
 0x16d   :  { %1317 = vmatprep.subr.mxu1 %v884_v36  ;;  %1294 = vmatprep.mubr.f32.mxu0 %v3136_v23  ;;  %v878_v23 = vld [vmem:[%s4393_s3 + $0x848] sm:$0xff]  ;;  %v1640_v36 = vld [vmem:[%s4395_s5 + $0x2e0] sm:$0xff] }
 0x16e   :  { %1318 = vmatpush1.msra.mxu1 %v883_v20  ;;  %1752 = vmatprep.subr.mxu0 %v1579_v18  ;;  %v1568_v20 = vld [vmem:[%s4395_s5 + $0xa0] sm:$0xff]  ;;  %v1609_v18 = vld [vmem:[%s4395_s5 + $0x1e8] sm:$0xff] }
 0x16f   :  { %1319 = vmatprep.subr.mxu1 %v882_v29  ;;  %v1639_v29 = vld [vmem:[%s4395_s5 + $0x2d8] sm:$0xff] }
 0x170   :  { %1320 = vmatpush1.msra.mxu1 %v881_v40  ;;  %1295 = vmatmul.mubr.f32.gmra.mxu0 %v3164_v28  ;;  %v874_v28 = vld [vmem:[%s4393_s3 + $0x828] sm:$0xff]  ;;  %v1567_v40 = vld [vmem:[%s4395_s5 + $0x98] sm:$0xff] }
 0x171   :  { %1321 = vmatprep.subr.mxu1 %v880_v51  ;;  %v1638_v51 = vld [vmem:[%s4395_s5 + $0x2d0] sm:$0xff] }
 0x172   :  { %1322 = vmatpush1.msra.mxu1 %v879_v41  ;;  %v1637_v41 = vld [vmem:[%s4395_s5 + $0x2c8] sm:$0xff] }
 0x173   :  { %1323 = vmatprep.subr.mxu1 %v878_v23  ;;  %v1566_v23 = vld [vmem:[%s4395_s5 + $0x90] sm:$0xff] }
 0x174   :  { %1324 = vmatpush1.msra.mxu1 %v877_v7  ;;  %v1636_v7 = vld [vmem:[%s4395_s5 + $0x2c0] sm:$0xff] }
 0x175   :  { %1325 = vmatprep.subr.mxu1 %v876_v21  ;;  %v1565_v21 = vld [vmem:[%s4395_s5 + $0x88] sm:$0xff] }
 0x176   :  { %1326 = vmatpush1.msra.mxu1 %v875_v1  ;;  %v1635_v1 = vld [vmem:[%s4395_s5 + $0x2b8] sm:$0xff] }
 0x177   :  { %1327 = vmatprep.subr.mxu1 %v874_v28  ;;  %v1564_v28 = vld [vmem:[%s4395_s5 + $0x80] sm:$0xff] }
 0x178   :  { %1328 = vmatpush1.msra.mxu1 %v873_v62  ;;  %v1634_v62 = vld [vmem:[%s4395_s5 + $0x2b0] sm:$0xff] }
 0x179   :  { %1329 = vmatprep.subr.mxu1 %v872_v25  ;;  %v1563_v25 = vld [vmem:[%s4395_s5 + $0x78] sm:$0xff] }
 0x17a   :  { %1330 = vmatpush1.msra.mxu1 %v871_v56  ;;  %v1633_v56 = vld [vmem:[%s4395_s5 + $0x2a8] sm:$0xff] }
 0x17b   :  { %1331 = vmatprep.subr.mxu1 %v870_v48  ;;  %v1562_v48 = vld [vmem:[%s4395_s5 + $0x70] sm:$0xff] }
 0x17c   :  { %1332 = vmatpush1.msra.mxu1 %v869_v58  ;;  %v1632_v58 = vld [vmem:[%s4395_s5 + $0x2a0] sm:$0xff] }
 0x17d   :  { %1333 = vmatprep.subr.mxu1 %v932_v35  ;;  %v1561_v35 = vld [vmem:[%s4395_s5 + $0x68] sm:$0xff] }
 0x17e   :  { %1334 = vmatpush2.msra.mxu1 %v931_v49  ;;  %v1631_v49 = vld [vmem:[%s4395_s5 + $0x298] sm:$0xff] }
 0x17f   :  { %1335 = vmatprep.subr.mxu1 %v930_v43  ;;  %v1560_v43 = vld [vmem:[%s4395_s5 + $0x60] sm:$0xff] }
 0x180   :  { %1336 = vmatpush2.msra.mxu1 %v929_v3  ;;  %v1630_v3 = vld [vmem:[%s4395_s5 + $0x290] sm:$0xff] }
 0x181   :  { %1337 = vmatprep.subr.mxu1 %v928_v53  ;;  %v1559_v53 = vld [vmem:[%s4395_s5 + $0x58] sm:$0xff] }
 0x182   :  { %1338 = vmatpush2.msra.mxu1 %v927_v44  ;;  %v1629_v44 = vld [vmem:[%s4395_s5 + $0x288] sm:$0xff] }
 0x183   :  { %1339 = vmatprep.subr.mxu1 %v926_v16  ;;  %v1558_v16 = vld [vmem:[%s4395_s5 + $0x50] sm:$0xff] }
 0x184   :  { %1340 = vmatpush2.msra.mxu1 %v925_v13  ;;  %v1628_v13 = vld [vmem:[%s4395_s5 + $0x280] sm:$0xff] }
 0x185   :  { %1341 = vmatprep.subr.mxu1 %v924_v61  ;;  %v1557_v61 = vld [vmem:[%s4395_s5 + $0x48] sm:$0xff] }
 0x186   :  { %1342 = vmatpush2.msra.mxu1 %v923_v0  ;;  %v1627_v0 = vld [vmem:[%s4395_s5 + $0x278] sm:$0xff] }
 0x187   :  { %1343 = vmatprep.subr.mxu1 %v922_v4  ;;  %v1556_v4 = vld [vmem:[%s4395_s5 + $0x40] sm:$0xff] }
 0x188   :  { %1344 = vmatpush2.msra.mxu1 %v921_v5  ;;  %v1626_v5 = vld [vmem:[%s4395_s5 + $0x270] sm:$0xff] }
 0x189   :  { %1345 = vmatprep.subr.mxu1 %v920_v8  ;;  %v1555_v8 = vld [vmem:[%s4395_s5 + $0x38] sm:$0xff] }
 0x18a   :  { %1346 = vmatpush2.msra.mxu1 %v919_v19  ;;  %v1625_v19 = vld [vmem:[%s4395_s5 + $0x268] sm:$0xff] }
 0x18b   :  { %1347 = vmatprep.subr.mxu1 %v918_v57  ;;  %v1554_v57 = vld [vmem:[%s4395_s5 + $0x30] sm:$0xff] }
 0x18c   :  { %1348 = vmatpush2.msra.mxu1 %v917_v17  ;;  %v1624_v17 = vld [vmem:[%s4395_s5 + $0x260] sm:$0xff] }
 0x18d   :  { %1349 = vmatprep.subr.mxu1 %v916_v11  ;;  %v1553_v11 = vld [vmem:[%s4395_s5 + $0x28] sm:$0xff] }
 0x18e   :  { %1350 = vmatpush2.msra.mxu1 %v915_v27  ;;  %v1623_v27 = vld [vmem:[%s4395_s5 + $0x258] sm:$0xff] }
 0x18f   :  { %1351 = vmatprep.subr.mxu1 %v914_v52  ;;  %v1552_v52 = vld [vmem:[%s4395_s5 + $0x20] sm:$0xff] }
 0x190   :  { %1352 = vmatpush2.msra.mxu1 %v913_v22  ;;  %v1622_v22 = vld [vmem:[%s4395_s5 + $0x250] sm:$0xff] }
 0x191   :  { %1353 = vmatprep.subr.mxu1 %v912_v9  ;;  %v1551_v9 = vld [vmem:[%s4395_s5 + $0x18] sm:$0xff] }
 0x192   :  { %1354 = vmatpush2.msra.mxu1 %v911_v60  ;;  %v1621_v60 = vld [vmem:[%s4395_s5 + $0x248] sm:$0xff] }
 0x193   :  { %1355 = vmatprep.subr.mxu1 %v910_v32  ;;  %v1550_v32 = vld [vmem:[%s4395_s5 + $0x10] sm:$0xff] }
 0x194   :  { %1356 = vmatpush2.msra.mxu1 %v909_v33  ;;  %v1620_v33 = vld [vmem:[%s4395_s5 + $0x240] sm:$0xff] }
 0x195   :  { %1357 = vmatprep.subr.mxu1 %v908_v47  ;;  %v1549_v47 = vld [vmem:[%s4395_s5 + $0x8] sm:$0xff] }
 0x196   :  { %1358 = vmatpush2.msra.mxu1 %v907_v39  ;;  %v1619_v39 = vld [vmem:[%s4395_s5 + $0x238] sm:$0xff] }
 0x197   :  { %1359 = vmatprep.subr.mxu1 %v906_v54  ;;  %v1548_v54 = vld [vmem:[%s4395_s5] sm:$0xff] }
 0x198   :  { %1360 = vmatpush2.msra.mxu1 %v905_v50  ;;  %v1618_v50 = vld [vmem:[%s4395_s5 + $0x230] sm:$0xff] }
 0x199   :  { %1361 = vmatprep.subr.mxu1 %v904_v59  ;;  %v1611_v59 = vld [vmem:[%s4395_s5 + $0x1f8] sm:$0xff] }
 0x19a   :  { %1362 = vmatpush2.msra.mxu1 %v903_v14  ;;  %v1617_v14 = vld [vmem:[%s4395_s5 + $0x228] sm:$0xff] }
 0x19b   :  { %1363 = vmatprep.subr.mxu1 %v902_v34  ;;  %v1610_v34 = vld [vmem:[%s4395_s5 + $0x1f0] sm:$0xff] }
 0x19c   :  { %1364 = vmatpush2.msra.mxu1 %v901_v45  ;;  %v1616_v45 = vld [vmem:[%s4395_s5 + $0x220] sm:$0xff] }
 0x19d   :  { %1366 = vmatmul.mubr.f32.vlgmr.msra.gmra.mxu1 %v3145_v2  ;;  %v1578_v2 = vld [vmem:[%s4395_s5 + $0xf0] sm:$0xff]  ;;  %1841 = vmatprep.subr.mxu1 %v1643_v26  ;;  %v1675_v26 = vld [vmem:[%s4395_s5 + $0x3f8] sm:$0xff] }
 0x19e   :  { %1371 = vmatprep.mubr.f32.mxu1 %v3150_v31  ;;  %v1577_v31 = vld [vmem:[%s4395_s5 + $0xe8] sm:$0xff]  ;;  %1753 = vmatpush1.msra.mxu0 %v1578_v2  ;;  %v1615_v2 = vld [vmem:[%s4395_s5 + $0x218] sm:$0xff] }
 0x19f   :  { %1754 = vmatprep.subr.mxu0 %v1577_v31  ;;  %1842 = vmatpush1.msra.mxu1 %v1642_v24  ;;  %v1608_v31 = vld [vmem:[%s4395_s5 + $0x1e0] sm:$0xff]  ;;  %v1674_v24 = vld [vmem:[%s4395_s5 + $0x3f0] sm:$0xff] }
 0x1a0   :  { %1843 = vmatprep.subr.mxu1 %v1641_v15  ;;  %v1673_v15 = vld [vmem:[%s4395_s5 + $0x3e8] sm:$0xff] }
 0x1a1   :  { %1372 = vmatmul.mubr.f32.gmra.mxu1 %v3174_v37  ;;  %v1576_v37 = vld [vmem:[%s4395_s5 + $0xe0] sm:$0xff] }
 0x1a2   :  { %1377 = vmatprep.mubr.f32.mxu1 %v3179_v38  ;;  %v1575_v38 = vld [vmem:[%s4395_s5 + $0xd8] sm:$0xff]  ;;  %1755 = vmatpush1.msra.mxu0 %v1576_v37  ;;  %v1614_v37 = vld [vmem:[%s4395_s5 + $0x210] sm:$0xff] }
 0x1a3   :  { %1756 = vmatprep.subr.mxu0 %v1575_v38  ;;  %1844 = vmatpush1.msra.mxu1 %v1640_v36  ;;  %v1607_v38 = vld [vmem:[%s4395_s5 + $0x1d8] sm:$0xff]  ;;  %v1602_v36 = vld [vmem:[%s4395_s5 + $0x1b0] sm:$0xff] }
 0x1a4   :  { %1845 = vmatprep.subr.mxu1 %v1639_v29  ;;  %v1601_v29 = vld [vmem:[%s4395_s5 + $0x1a8] sm:$0xff] }
 0x1a5   :  { %1378 = vmatmul.mubr.f32.gmra.mxu1 %v3193_v42  ;;  %v1574_v42 = vld [vmem:[%s4395_s5 + $0xd0] sm:$0xff] }
 0x1a6   :  { %1383 = vmatprep.mubr.f32.mxu1 %v3198_v55  ;;  %v1573_v55 = vld [vmem:[%s4395_s5 + $0xc8] sm:$0xff]  ;;  %1757 = vmatpush1.msra.mxu0 %v1574_v42 }
 0x1a7   :  { %1758 = vmatprep.subr.mxu0 %v1573_v55  ;;  %1846 = vmatpush1.msra.mxu1 %v1638_v51  ;;  %v1613_v42 = vld [vmem:[%s4395_s5 + $0x208] sm:$0xff]  ;;  %v1606_v55 = vld [vmem:[%s4395_s5 + $0x1d0] sm:$0xff]  ;;  %v1600_v51 = vld [vmem:[%s4395_s5 + $0x1a0] sm:$0xff] }
 0x1a8   :  { %1847 = vmatprep.subr.mxu1 %v1637_v41  ;;  %v1670_v41 = vld [vmem:[%s4395_s5 + $0x3d0] sm:$0xff] }
 0x1a9   :  { %1384 = vmatmul.mubr.f32.gmra.mxu1 %v3214_v30  ;;  %v1572_v30 = vld [vmem:[%s4395_s5 + $0xc0] sm:$0xff] }
 0x1aa   :  { %1759 = vmatpush1.msra.mxu0 %v1572_v30  ;;  %1848 = vmatpush1.msra.mxu1 %v1636_v7  ;;  %v1612_v30 = vld [vmem:[%s4395_s5 + $0x200] sm:$0xff]  ;;  %v1598_v7 = vld [vmem:[%s4395_s5 + $0x190] sm:$0xff] }
 0x1ab   :  { %1760 = vmatprep.subr.mxu0 %v1571_v63  ;;  %1849 = vmatprep.subr.mxu1 %v1635_v1  ;;  %v1605_v63 = vld [vmem:[%s4395_s5 + $0x1c8] sm:$0xff]  ;;  %v1596_v1 = vld [vmem:[%s4395_s5 + $0x180] sm:$0xff] }
 0x1ac   :  { %1761 = vmatpush1.msra.mxu0 %v1570_v12  ;;  %1850 = vmatpush1.msra.mxu1 %v1634_v62  ;;  %v1604_v12 = vld [vmem:[%s4395_s5 + $0x1c0] sm:$0xff]  ;;  %v1595_v62 = vld [vmem:[%s4395_s5 + $0x178] sm:$0xff] }
 0x1ad   :  { %1762 = vmatprep.subr.mxu0 %v1569_v46  ;;  %1851 = vmatprep.subr.mxu1 %v1633_v56  ;;  %v1603_v46 = vld [vmem:[%s4395_s5 + $0x1b8] sm:$0xff]  ;;  %v1594_v56 = vld [vmem:[%s4395_s5 + $0x170] sm:$0xff] }
 0x1ae   :  { %1763 = vmatpush1.msra.mxu0 %v1568_v20  ;;  %1852 = vmatpush1.msra.mxu1 %v1632_v58  ;;  %v1672_v20 = vld [vmem:[%s4395_s5 + $0x3e0] sm:$0xff]  ;;  %v1593_v58 = vld [vmem:[%s4395_s5 + $0x168] sm:$0xff] }
 0x1af   :  { %1764 = vmatprep.subr.mxu0 %v1567_v40  ;;  %1853 = vmatprep.subr.mxu1 %v1631_v49  ;;  %v1671_v40 = vld [vmem:[%s4395_s5 + $0x3d8] sm:$0xff]  ;;  %v1592_v49 = vld [vmem:[%s4395_s5 + $0x160] sm:$0xff] }
 0x1b0   :  { %1765 = vmatpush1.msra.mxu0 %v1566_v23  ;;  %1854 = vmatpush1.msra.mxu1 %v1630_v3  ;;  %v1599_v23 = vld [vmem:[%s4395_s5 + $0x198] sm:$0xff] }
 0x1b1   :  { %1766 = vmatprep.subr.mxu0 %v1565_v21  ;;  %1855 = vmatprep.subr.mxu1 %v1629_v44  ;;  %v1597_v21 = vld [vmem:[%s4395_s5 + $0x188] sm:$0xff]  ;;  %v1591_v3 = vld [vmem:[%s4395_s5 + $0x158] sm:$0xff]  ;;  %v1590_v44 = vld [vmem:[%s4395_s5 + $0x150] sm:$0xff] }
 0x1b2   :  { %1767 = vmatpush1.msra.mxu0 %v1564_v28  ;;  %1856 = vmatpush1.msra.mxu1 %v1628_v13  ;;  %v1669_v28 = vld [vmem:[%s4395_s5 + $0x3c8] sm:$0xff] }
 0x1b3   :  { %1768 = vmatprep.subr.mxu0 %v1563_v25  ;;  %1857 = vmatprep.subr.mxu1 %v1627_v0  ;;  %v1668_v25 = vld [vmem:[%s4395_s5 + $0x3c0] sm:$0xff]  ;;  %v1589_v13 = vld [vmem:[%s4395_s5 + $0x148] sm:$0xff] }
 0x1b4   :  { %1769 = vmatpush1.msra.mxu0 %v1562_v48  ;;  %1858 = vmatpush1.msra.mxu1 %v1626_v5  ;;  %v1667_v48 = vld [vmem:[%s4395_s5 + $0x3b8] sm:$0xff]  ;;  %v1588_v0 = vld [vmem:[%s4395_s5 + $0x140] sm:$0xff] }
 0x1b5   :  { %1770 = vmatprep.subr.mxu0 %v1561_v35  ;;  %1859 = vmatprep.subr.mxu1 %v1625_v19  ;;  %v1666_v35 = vld [vmem:[%s4395_s5 + $0x3b0] sm:$0xff]  ;;  %v1587_v5 = vld [vmem:[%s4395_s5 + $0x138] sm:$0xff] }
 0x1b6   :  { %1771 = vmatpush1.msra.mxu0 %v1560_v43  ;;  %1860 = vmatpush1.msra.mxu1 %v1624_v17  ;;  %v1665_v43 = vld [vmem:[%s4395_s5 + $0x3a8] sm:$0xff]  ;;  %v1586_v19 = vld [vmem:[%s4395_s5 + $0x130] sm:$0xff] }
 0x1b7   :  { %1772 = vmatprep.subr.mxu0 %v1559_v53  ;;  %1861 = vmatprep.subr.mxu1 %v1623_v27  ;;  %v1664_v53 = vld [vmem:[%s4395_s5 + $0x3a0] sm:$0xff]  ;;  %v1585_v17 = vld [vmem:[%s4395_s5 + $0x128] sm:$0xff] }
 0x1b8   :  { %1773 = vmatpush1.msra.mxu0 %v1558_v16  ;;  %1862 = vmatpush1.msra.mxu1 %v1622_v22  ;;  %v1663_v16 = vld [vmem:[%s4395_s5 + $0x398] sm:$0xff]  ;;  %v1584_v27 = vld [vmem:[%s4395_s5 + $0x120] sm:$0xff] }
 0x1b9   :  { %1774 = vmatprep.subr.mxu0 %v1557_v61  ;;  %1863 = vmatprep.subr.mxu1 %v1621_v60  ;;  %v1662_v61 = vld [vmem:[%s4395_s5 + $0x390] sm:$0xff]  ;;  %v1583_v22 = vld [vmem:[%s4395_s5 + $0x118] sm:$0xff] }
 0x1ba   :  { %1775 = vmatpush1.msra.mxu0 %v1556_v4  ;;  %1864 = vmatpush1.msra.mxu1 %v1620_v33  ;;  %v1661_v4 = vld [vmem:[%s4395_s5 + $0x388] sm:$0xff]  ;;  %v1582_v60 = vld [vmem:[%s4395_s5 + $0x110] sm:$0xff] }
 0x1bb   :  { %1776 = vmatprep.subr.mxu0 %v1555_v8  ;;  %1865 = vmatprep.subr.mxu1 %v1619_v39  ;;  %v1660_v8 = vld [vmem:[%s4395_s5 + $0x380] sm:$0xff]  ;;  %v1581_v33 = vld [vmem:[%s4395_s5 + $0x108] sm:$0xff] }
 0x1bc   :  { %1777 = vmatpush1.msra.mxu0 %v1554_v57  ;;  %1866 = vmatpush1.msra.mxu1 %v1618_v50  ;;  %v1659_v57 = vld [vmem:[%s4395_s5 + $0x378] sm:$0xff]  ;;  %v1580_v39 = vld [vmem:[%s4395_s5 + $0x100] sm:$0xff] }
 0x1bd   :  { %1778 = vmatprep.subr.mxu0 %v1553_v11  ;;  %1867 = vmatprep.subr.mxu1 %v1617_v14  ;;  %v1658_v11 = vld [vmem:[%s4395_s5 + $0x370] sm:$0xff]  ;;  %v1652_v50 = vld [vmem:[%s4395_s5 + $0x340] sm:$0xff]  ;;  %v1651_v14 = vld [vmem:[%s4395_s5 + $0x338] sm:$0xff] }
 0x1be   :  { %1779 = vmatpush1.msra.mxu0 %v1552_v52  ;;  %1868 = vmatpush1.msra.mxu1 %v1616_v45  ;;  %v1657_v52 = vld [vmem:[%s4395_s5 + $0x368] sm:$0xff] }
 0x1bf   :  { %1780 = vmatprep.subr.mxu0 %v1551_v9  ;;  %1869 = vmatprep.subr.mxu1 %v1615_v2  ;;  %v1656_v9 = vld [vmem:[%s4395_s5 + $0x360] sm:$0xff]  ;;  %v1649_v45 = vld [vmem:[%s4395_s5 + $0x328] sm:$0xff]  ;;  %v1647_v2 = vld [vmem:[%s4395_s5 + $0x318] sm:$0xff] }
 0x1c0   :  { %1781 = vmatpush1.msra.mxu0 %v1550_v32  ;;  %1870 = vmatpush1.msra.mxu1 %v1614_v37  ;;  %v1655_v32 = vld [vmem:[%s4395_s5 + $0x358] sm:$0xff]  ;;  %v1645_v37 = vld [vmem:[%s4395_s5 + $0x308] sm:$0xff] }
 0x1c1   :  { %1782 = vmatprep.subr.mxu0 %v1549_v47  ;;  %1871 = vmatprep.subr.mxu1 %v1613_v42  ;;  %v1654_v47 = vld [vmem:[%s4395_s5 + $0x350] sm:$0xff] }
 0x1c2   :  { %1783 = vmatpush1.msra.mxu0 %v1548_v54  ;;  %1872 = vmatpush1.msra.mxu1 %v1612_v30  ;;  %v1653_v54 = vld [vmem:[%s4395_s5 + $0x348] sm:$0xff] }
 0x1c3   :  { %1784 = vmatprep.subr.mxu0 %v1611_v59  ;;  %1873 = vmatprep.subr.mxu1 %v1675_v26  ;;  %v1707_v59 = vld [vmem:[%s4395_s5 + $0x4f8] sm:$0xff] }
 0x1c4   :  { %1785 = vmatpush2.msra.mxu0 %v1610_v34  ;;  %1874 = vmatpush2.msra.mxu1 %v1674_v24  ;;  %v1650_v34 = vld [vmem:[%s4395_s5 + $0x330] sm:$0xff] }
 0x1c5   :  { %1786 = vmatprep.subr.mxu0 %v1609_v18  ;;  %1875 = vmatprep.subr.mxu1 %v1673_v15  ;;  %v1648_v18 = vld [vmem:[%s4395_s5 + $0x320] sm:$0xff] }
 0x1c6   :  { %1787 = vmatpush2.msra.mxu0 %v1608_v31  ;;  %1876 = vmatpush2.msra.mxu1 %v1672_v20  ;;  %v1646_v31 = vld [vmem:[%s4395_s5 + $0x310] sm:$0xff] }
 0x1c7   :  { %1788 = vmatprep.subr.mxu0 %v1607_v38  ;;  %1877 = vmatprep.subr.mxu1 %v1671_v40  ;;  %v1644_v38 = vld [vmem:[%s4395_s5 + $0x300] sm:$0xff] }
 0x1c8   :  { %1789 = vmatpush2.msra.mxu0 %v1606_v55  ;;  %1878 = vmatpush2.msra.mxu1 %v1670_v41 }
 0x1c9   :  { %1790 = vmatprep.subr.mxu0 %v1605_v63  ;;  %1879 = vmatprep.subr.mxu1 %v1669_v28 }
 0x1ca   :  { %1791 = vmatpush2.msra.mxu0 %v1604_v12  ;;  %1880 = vmatpush2.msra.mxu1 %v1668_v25 }
 0x1cb   :  { %1792 = vmatprep.subr.mxu0 %v1603_v46  ;;  %1881 = vmatprep.subr.mxu1 %v1667_v48 }
 0x1cc   :  { %1793 = vmatpush2.msra.mxu0 %v1602_v36  ;;  %1882 = vmatpush2.msra.mxu1 %v1666_v35 }
 0x1cd   :  { %1794 = vmatprep.subr.mxu0 %v1601_v29  ;;  %1883 = vmatprep.subr.mxu1 %v1665_v43 }
 0x1ce   :  { %1795 = vmatpush2.msra.mxu0 %v1600_v51  ;;  %1884 = vmatpush2.msra.mxu1 %v1664_v53 }
 0x1cf   :  { %1796 = vmatprep.subr.mxu0 %v1599_v23  ;;  %1885 = vmatprep.subr.mxu1 %v1663_v16 }
 0x1d0   :  { %1797 = vmatpush2.msra.mxu0 %v1598_v7  ;;  %1886 = vmatpush2.msra.mxu1 %v1662_v61 }
 0x1d1   :  { %1798 = vmatprep.subr.mxu0 %v1597_v21  ;;  %1887 = vmatprep.subr.mxu1 %v1661_v4 }
 0x1d2   :  { %1799 = vmatpush2.msra.mxu0 %v1596_v1  ;;  %1888 = vmatpush2.msra.mxu1 %v1660_v8 }
 0x1d3   :  { %1800 = vmatprep.subr.mxu0 %v1595_v62  ;;  %1889 = vmatprep.subr.mxu1 %v1659_v57  ;;  %v933_v62 = vld [vmem:[%s4396_s4] sm:$0x3] }
 0x1d4   :  { %1801 = vmatpush2.msra.mxu0 %v1594_v56  ;;  %1890 = vmatpush2.msra.mxu1 %v1658_v11  ;;  %v938_v56 = vrot.slane %v933_v62, %v2841_v6  ;;  %v942_v35 = vrot.slane %v933_v62, %v2846_v10 }
 0x1d5   :  { %1802 = vmatprep.subr.mxu0 %v1593_v58  ;;  %1891 = vmatprep.subr.mxu1 %v1657_v52 }
 0x1d6   :  { %1803 = vmatpush2.msra.mxu0 %v1592_v49  ;;  %1892 = vmatpush2.msra.mxu1 %v1656_v9  ;;  %v1011_v42 = vpop.f32.mrf.mxu1 }
 0x1d7   :  { %1804 = vmatprep.subr.mxu0 %v1591_v3  ;;  %1893 = vmatprep.subr.mxu1 %v1655_v32  ;;  %v1012_v49 = vadd.f32 %v1011_v42, %v938_v56 }
 0x1d8   :  { %1805 = vmatpush2.msra.mxu0 %v1590_v44  ;;  %1894 = vmatpush2.msra.mxu1 %v1654_v47  ;;  %v1013_v55 = vpop.f32.mrf.mxu1 }
 0x1d9   :  { %1806 = vmatprep.subr.mxu0 %v1589_v13  ;;  %1895 = vmatprep.subr.mxu1 %v1653_v54  ;;  %v1100_v63 = vpop.f32.mrf.mxu0  ;;  %v1014_v53 = vadd.f32 %v1013_v55, %v942_v35 }
 0x1da   :  { %1807 = vmatpush2.msra.mxu0 %v1588_v0  ;;  %1896 = vmatpush2.msra.mxu1 %v1652_v50  ;;  %v1017_v30 = vpop.f32.mrf.mxu1  ;;  %v1101_v16 = vadd.f32 %v1100_v63, %v1012_v49 }
 0x1db   :  { %1808 = vmatprep.subr.mxu0 %v1587_v5  ;;  %1897 = vmatprep.subr.mxu1 %v1651_v14  ;;  %v1102_v24 = vpop.f32.mrf.mxu0  ;;  %v1018_v44 = vadd.f32 %v1017_v30, %v938_v56 }
 0x1dc   :  { %1809 = vmatpush2.msra.mxu0 %v1586_v19  ;;  %1898 = vmatpush2.msra.mxu1 %v1650_v34  ;;  %v1019_v26 = vpop.f32.mrf.mxu1  ;;  %v1103_v4 = vadd.f32 %v1102_v24, %v1014_v53 }
 0x1dd   :  { %1810 = vmatprep.subr.mxu0 %v1585_v17  ;;  %1899 = vmatprep.subr.mxu1 %v1649_v45  ;;  %v1020_v0 = vadd.f32 %v1019_v26, %v942_v35 }
 0x1de   :  { %1811 = vmatpush2.msra.mxu0 %v1584_v27  ;;  %1900 = vmatpush2.msra.mxu1 %v1648_v18 }
 0x1df   :  { %1812 = vmatprep.subr.mxu0 %v1583_v22  ;;  %1901 = vmatprep.subr.mxu1 %v1647_v2 }
 0x1e0   :  { %1813 = vmatpush2.msra.mxu0 %v1582_v60  ;;  %1902 = vmatpush2.msra.mxu1 %v1646_v31  ;;  %v1106_v15 = vpop.f32.mrf.mxu0 }
 0x1e1   :  { %1814 = vmatprep.subr.mxu0 %v1581_v33  ;;  %1903 = vmatprep.subr.mxu1 %v1645_v37  ;;  %v1107_v8 = vadd.f32 %v1106_v15, %v1018_v44 }
 0x1e2   :  { %1815 = vmatpush2.msra.mxu0 %v1580_v39  ;;  %1904 = vmatpush2.msra.mxu1 %v1644_v38  ;;  %v1108_v20 = vpop.f32.mrf.mxu0 }
 0x1e3   :  { %1930 = vmatprep.subr.mxu0 %v1707_v59  ;;  %v1109_v52 = vadd.f32 %v1108_v20, %v1020_v0 }
 0x1e6   :  { %v1023_v12 = vpop.f32.mrf.mxu1 }
 0x1e7   :  { %v1024_v19 = vadd.f32 %v1023_v12, %v938_v56 }
 0x1e8   :  { %v1025_v46 = vpop.f32.mrf.mxu1 }
 0x1e9   :  { %v1026_v11 = vadd.f32 %v1025_v46, %v942_v35 }
 0x1eb   :  { %v1112_v29 = vpop.f32.mrf.mxu0 }
 0x1ec   :  { %v1029_v36 = vpop.f32.mrf.mxu1  ;;  %v1113_v33 = vadd.f32 %v1112_v29, %v1024_v19 }
 0x1ed   :  { %v1114_v41 = vpop.f32.mrf.mxu0  ;;  %v1030_v60 = vadd.f32 %v1029_v36, %v938_v56 }
 0x1ee   :  { %v1031_v40 = vpop.f32.mrf.mxu1  ;;  %v1115_v59 = vadd.f32 %v1114_v41, %v1026_v11 }
 0x1ef   :  { %v1032_v14 = vadd.f32 %v1031_v40, %v942_v35 }
 0x1f1   :  { %v1118_v7 = vpop.f32.mrf.mxu0 }
 0x1f2   :  { %v1119_v37 = vadd.f32 %v1118_v7, %v1030_v60 }
 0x1f3   :  { %v1120_v1 = vpop.f32.mrf.mxu0 }
 0x1f4   :  { %v1121_v24 = vadd.f32 %v1120_v1, %v1032_v14 }
 0x21a   :  { %v1189_v51 = vpop.f32.mrf.mxu1 }
 0x21b   :  { %v1190_v5 = vadd.f32 %v1189_v51, %v1101_v16 }
 0x21c   :  { %v1191_v23 = vpop.f32.mrf.mxu1 }
 0x21d   :  { %v1192_v57 = vadd.f32 %v1191_v23, %v1103_v4 }
 0x21f   :  { %v1195_v21 = vpop.f32.mrf.mxu1 }
 0x220   :  { %v1196_v22 = vadd.f32 %v1195_v21, %v1107_v8 }
 0x221   :  { %v1197_v25 = vpop.f32.mrf.mxu1 }
 0x222   :  { %v1198_v47 = vadd.f32 %v1197_v25, %v1109_v52  ;;  %v1705_v52 = vld [vmem:[%s4395_s5 + $0x4e8] sm:$0xff] }
 0x224   :  { %v1278_v28 = vpop.f32.mrf.mxu0  ;;  %v1201_v58 = vpop.f32.mrf.mxu1 }
 0x225   :  { %v1279_v9 = vadd.f32 %v1278_v28, %v1190_v5  ;;  %v1202_v45 = vadd.f32 %v1201_v58, %v1113_v33 }
 0x226   :  { %v1280_v48 = vpop.f32.mrf.mxu0  ;;  %v1203_v3 = vpop.f32.mrf.mxu1 }
 0x227   :  { %v1281_v39 = vadd.f32 %v1280_v48, %v1192_v57  ;;  %v1204_v38 = vadd.f32 %v1203_v3, %v1115_v59  ;;  %v1706_v57 = vld [vmem:[%s4395_s5 + $0x4f0] sm:$0xff] }
 0x228   :  { %v1284_v43 = vpop.f32.mrf.mxu0 }
 0x229   :  { %v1207_v61 = vpop.f32.mrf.mxu1  ;;  %v1285_v18 = vadd.f32 %v1284_v43, %v1196_v22 }
 0x22a   :  { %v1286_v13 = vpop.f32.mrf.mxu0  ;;  %v1208_v46 = vadd.f32 %v1207_v61, %v1119_v37 }
 0x22b   :  { %v1209_v27 = vpop.f32.mrf.mxu1  ;;  %v1287_v55 = vadd.f32 %v1286_v13, %v1198_v47 }
 0x22c   :  { %v1290_v17 = vpop.f32.mrf.mxu0  ;;  %v1210_v51 = vadd.f32 %v1209_v27, %v1121_v24 }
 0x22d   :  { %v1291_v36 = vadd.f32 %v1290_v17, %v1202_v45 }
 0x22e   :  { %v1292_v54 = vpop.f32.mrf.mxu0 }
 0x22f   :  { %v1293_v23 = vadd.f32 %v1292_v54, %v1204_v38  ;;  %v1699_v38 = vld [vmem:[%s4395_s5 + $0x4b8] sm:$0xff] }
 0x230   :  { %v1296_v30 = vpop.f32.mrf.mxu0 }
 0x231   :  { %v1297_v25 = vadd.f32 %v1296_v30, %v1208_v46 }
 0x232   :  { %v1298_v7 = vpop.f32.mrf.mxu0 }
 0x233   :  { %v1299_v49 = vadd.f32 %v1298_v7, %v1210_v51 }
 0x25d   :  { %v1367_v32 = vpop.f32.mrf.mxu1 }
 0x25e   :  { %v1368_v50 = vadd.f32 %v1367_v32, %v1279_v9  ;;  %v1704_v9 = vld [vmem:[%s4395_s5 + $0x4e0] sm:$0xff] }
 0x25f   :  { %v1369_v34 = vpop.f32.mrf.mxu1 }
 0x260   :  { %v1390_v2 = vmax.f32 %v1368_v50, 0.0  ;;  %v1370_v31 = vadd.f32 %v1369_v34, %v1281_v39  ;;  %v1703_v39 = vld [vmem:[%s4395_s5 + $0x4d8] sm:$0xff]  ;;  %v1702_v50 = vld [vmem:[%s4395_s5 + $0x4d0] sm:$0xff] }
 0x261   :  { %v1373_v42 = vpop.f32.mrf.mxu1 }
 0x262   :  { %v1403_v63 = vrot.slane %v1390_v2, 7  ;;  %v1391_v26 = vmax.f32 %v1370_v31, 0.0  ;;  %v1374_v12 = vadd.f32 %v1373_v42, %v1285_v18  ;;  %v1701_v18 = vld [vmem:[%s4395_s5 + $0x4c8] sm:$0xff]  ;;  %v1700_v31 = vld [vmem:[%s4395_s5 + $0x4c0] sm:$0xff] }
 0x263   :  { %v1375_v15 = vpop.f32.mrf.mxu1 }
 0x264   :  { %1415 = vst [vmem:[#allocation3] sm:$0xfe] %v1403_v63  ;;  %v1404_v20 = vrot.slane %v1391_v26, 7  ;;  %v1392_v29 = vmax.f32 %v1374_v12, 0.0  ;;  %v1376_v40 = vadd.f32 %v1375_v15, %v1287_v55  ;;  %v1698_v55 = vld [vmem:[%s4395_s5 + $0x4b0] sm:$0xff]  ;;  %v1697_v12 = vld [vmem:[%s4395_s5 + $0x4a8] sm:$0xff] }
 0x265   :  { %v1379_v41 = vpop.f32.mrf.mxu1 }
 0x266   :  { %1416 = vst [vmem:[#allocation3 + $0x8] sm:$0xfe] %v1404_v20  ;;  %v1405_v21 = vrot.slane %v1392_v29, 7  ;;  %v1393_v28 = vmax.f32 %v1376_v40, 0.0  ;;  %v1380_v62 = vadd.f32 %v1379_v41, %v1291_v36  ;;  %v1696_v36 = vld [vmem:[%s4395_s5 + $0x4a0] sm:$0xff]  ;;  %v1695_v41 = vld [vmem:[%s4395_s5 + $0x498] sm:$0xff] }
 0x267   :  { %v1381_v56 = vpop.f32.mrf.mxu1 }
 0x268   :  { %v4078_v1 = vsel %vm1402_vm6, %v1403_v63, %v1405_v21  ;;  %1419 = vst [vmem:[#allocation3 + $0x20] sm:$0x1] %v1405_v21  ;;  %v1407_v48 = vrot.slane %v1393_v28, 7  ;;  %v1394_v58 = vmax.f32 %v1380_v62, 0.0  ;;  %v1382_v35 = vadd.f32 %v1381_v56, %v1293_v23  ;;  %v1694_v28 = vld [vmem:[%s4395_s5 + $0x490] sm:$0xff] }
 0x269   :  { %v1385_v43 = vpop.f32.mrf.mxu1  ;;  %v1457_v60 = vrot.slane %v4078_v1, 1 }
 0x26a   :  { %v4081_v3 = vsel %vm1402_vm6, %v1404_v20, %v1407_v48  ;;  %1420 = vst [vmem:[#allocation3 + $0x28] sm:$0x1] %v1407_v48  ;;  %v1426_v53 = vrot.slane %v1394_v58, 5  ;;  %v1395_v44 = vmax.f32 %v1382_v35, 0.0  ;;  %v1386_v16 = vadd.f32 %v1385_v43, %v1297_v25  ;;  %v1693_v48 = vld [vmem:[%s4395_s5 + $0x488] sm:$0xff] }
 0x26b   :  { %v1387_v13 = vpop.f32.mrf.mxu1  ;;  %v4083_v61 = vld [vmem:[#allocation3] sm:$0xff]  ;;  %v1460_v22 = vrot.slane %v4081_v3, 1 }
 0x26c   :  { %1438 = vst [vmem:[#allocation3 + $0x20] sm:$0xf8] %v1426_v53  ;;  %v1427_v0 = vrot.slane %v1395_v44, 5  ;;  %v1396_v4 = vmax.f32 %v1386_v16, 0.0  ;;  %v1388_v5 = vadd.f32 %v1387_v13, %v1299_v49  ;;  %v1456_v19 = vrot.slane %v4083_v61, 1  ;;  %v1691_v16 = vld [vmem:[%s4395_s5 + $0x478] sm:$0xff] }
 0x26d   :  { %v4085_v8 = vld [vmem:[#allocation3 + $0x8] sm:$0xff] }
 0x26e   :  { %1439 = vst [vmem:[#allocation3 + $0x28] sm:$0xf8] %v1427_v0  ;;  %v1428_v17 = vrot.slane %v1396_v4, 5  ;;  %v1397_v11 = vmax.f32 %v1388_v5, 0.0  ;;  %v1459_v27 = vrot.slane %v4085_v8, 1  ;;  %1816 = vmatprep.mubr.f32.mxu0 %v4085_v8  ;;  %v1458_v59 = vsel %vm55_vm0, %v1456_v19, %v1457_v60  ;;  %v1690_v5 = vld [vmem:[%s4395_s5 + $0x470] sm:$0xff] }
 0x26f   :  { %1817 = vmatmul.mubr.f32.vlgmr.msra.gmra.mxu0 %v4083_v61  ;;  %v4102_v32 = vld [vmem:[#allocation3 + $0x20] sm:$0x3] }
 0x270   :  { %v4105_v33 = vsel %vm1425_vm7, %v1426_v53, %v1428_v17  ;;  %1442 = vst [vmem:[#allocation3 + $0x40] sm:$0x7] %v1428_v17  ;;  %v1430_v47 = vrot.slane %v1397_v11, 5  ;;  %1931 = vmatpush1.msra.mxu0 %v1706_v57  ;;  %1822 = vmatprep.mubr.f32.mxu0 %v4081_v3  ;;  %v1461_v54 = vsel %vm55_vm0, %v1459_v27, %v1460_v22  ;;  %v1462_v34 = vrot.slane %v4102_v32, 1  ;;  %v1692_v53 = vld [vmem:[%s4395_s5 + $0x480] sm:$0xff]  ;;  %v1689_v27 = vld [vmem:[%s4395_s5 + $0x468] sm:$0xff] }
 0x271   :  { %1932 = vmatprep.subr.mxu0 %v1705_v52  ;;  %1905 = vmatprep.mubr.f32.mxu1 %v1461_v54  ;;  %v4116_v14 = vld [vmem:[#allocation3 + $0x28] sm:$0x3]  ;;  %v1507_v40 = vrot.slane %v4105_v33, 2  ;;  %v1497_v7 = vrot.slane %v4105_v33, 1  ;;  %v1473_v11 = vrot.slane %v4085_v8, 2  ;;  %v1474_v8 = vrot.slane %v4081_v3, 2 }
 0x272   :  { %v1431_v45 = vsel %vm1425_vm7, %v1427_v0, %v1430_v47  ;;  %1443 = vst [vmem:[#allocation3 + $0x48] sm:$0x7] %v1430_v47  ;;  %1933 = vmatpush1.msra.mxu0 %v1704_v9  ;;  %1906 = vmatmul.mubr.f32.vlgmr.msra.gmra.mxu1 %v1458_v59  ;;  %v1464_v2 = vrot.slane %v4116_v14, 1  ;;  %v1463_v30 = vsel %vm55_vm0, %v1457_v60, %v1462_v34  ;;  %v1688_v60 = vld [vmem:[%s4395_s5 + $0x460] sm:$0xff]  ;;  %v1687_v47 = vld [vmem:[%s4395_s5 + $0x458] sm:$0xff]  ;;  %v1685_v59 = vld [vmem:[%s4395_s5 + $0x448] sm:$0xff] }
 0x273   :  { %1934 = vmatprep.subr.mxu0 %v1703_v39  ;;  %1823 = vmatmul.mubr.f32.gmra.mxu0 %v4078_v1  ;;  %v1484_v37 = vld [vmem:[#allocation3 + $0x20] sm:$0xfc]  ;;  %v1510_v15 = vrot.slane %v1431_v45, 2  ;;  %v1500_v20 = vrot.slane %v1431_v45, 1  ;;  %v1475_v34 = vsel %vm63_vm1, %v1473_v11, %v1474_v8  ;;  %v1684_v45 = vld [vmem:[%s4395_s5 + $0x440] sm:$0xff]  ;;  %v1713_v11 = vld [vmem:[%s4395_s5 + $0x528] sm:$0xff] }
 0x274   :  { %1935 = vmatpush1.msra.mxu0 %v1702_v50  ;;  %v1465_v42 = vsel %vm55_vm0, %v1460_v22, %v1464_v2  ;;  %v1506_v26 = vrot.slane %v1484_v37, 2  ;;  %v1496_v29 = vrot.slane %v1484_v37, 1  ;;  %v1686_v50 = vld [vmem:[%s4395_s5 + $0x450] sm:$0xff]  ;;  %v1683_v2 = vld [vmem:[%s4395_s5 + $0x438] sm:$0xff]  ;;  %v1681_v37 = vld [vmem:[%s4395_s5 + $0x428] sm:$0xff] }
 0x275   :  { %1936 = vmatprep.subr.mxu0 %v1701_v18  ;;  %1911 = vmatprep.mubr.f32.mxu1 %v1465_v42  ;;  %v1485_v63 = vld [vmem:[#allocation3 + $0x28] sm:$0xfc] }
 0x276   :  { %1937 = vmatpush1.msra.mxu0 %v1700_v31  ;;  %1912 = vmatmul.mubr.f32.gmra.mxu1 %v1463_v30  ;;  %v1499_v24 = vrot.slane %v1485_v63, 1  ;;  %v1509_v46 = vrot.slane %v1485_v63, 2  ;;  %v4158_v62 = vsel %vm63_vm1, %v1506_v26, %v1507_v40  ;;  %v1498_v44 = vsel %vm55_vm0, %v1496_v29, %v1497_v7  ;;  %v1682_v31 = vld [vmem:[%s4395_s5 + $0x430] sm:$0xff]  ;;  %v1679_v42 = vld [vmem:[%s4395_s5 + $0x418] sm:$0xff]  ;;  %v1677_v30 = vld [vmem:[%s4395_s5 + $0x408] sm:$0xff] }
 0x277   :  { %1938 = vmatprep.subr.mxu0 %v1699_v38  ;;  %v4143_v51 = vld [vmem:[#allocation3 + $0x40] sm:$0xf]  ;;  %v1516_v52 = vrot.slane %v1498_v44, 2  ;;  %v1680_v38 = vld [vmem:[%s4395_s5 + $0x420] sm:$0xff]  ;;  %v1739_v26 = vld [vmem:[%s4395_s5 + $0x5f8] sm:$0xff] }
 0x278   :  { %1939 = vmatpush1.msra.mxu0 %v1698_v55  ;;  %v4149_v23 = vsel %vm63_vm1, %v1509_v46, %v1510_v15  ;;  %v1502_v21 = vrot.slane %v4143_v51, 1  ;;  %v1501_v56 = vsel %vm55_vm0, %v1499_v24, %v1500_v20  ;;  %v1512_v43 = vrot.slane %v4143_v51, 2  ;;  %v1678_v55 = vld [vmem:[%s4395_s5 + $0x410] sm:$0xff]  ;;  %v1676_v63 = vld [vmem:[%s4395_s5 + $0x400] sm:$0xff]  ;;  %v1737_v24 = vld [vmem:[%s4395_s5 + $0x5e8] sm:$0xff] }
 0x279   :  { %1940 = vmatprep.subr.mxu0 %v1697_v12  ;;  %1828 = vmatprep.mubr.f32.mxu0 %v4149_v23  ;;  %v4160_v25 = vld [vmem:[#allocation3 + $0x48] sm:$0xf]  ;;  %v1519_v19 = vrot.slane %v1501_v56, 2  ;;  %v1738_v12 = vld [vmem:[%s4395_s5 + $0x5f0] sm:$0xff]  ;;  %v1736_v46 = vld [vmem:[%s4395_s5 + $0x5e0] sm:$0xff] }
 0x27a   :  { %1941 = vmatpush1.msra.mxu0 %v1696_v36  ;;  %v1504_v58 = vrot.slane %v4160_v25, 1  ;;  %v1514_v35 = vrot.slane %v4160_v25, 2  ;;  %v1503_v49 = vsel %vm55_vm0, %v1497_v7, %v1502_v21  ;;  %v4195_v22 = vsel %vm63_vm1, %v1507_v40, %v1512_v43  ;;  %v1734_v36 = vld [vmem:[%s4395_s5 + $0x5d0] sm:$0xff]  ;;  %v1732_v29 = vld [vmem:[%s4395_s5 + $0x5c0] sm:$0xff]  ;;  %v1731_v40 = vld [vmem:[%s4395_s5 + $0x5b8] sm:$0xff] }
 0x27b   :  { %1942 = vmatprep.subr.mxu0 %v1695_v41  ;;  %1829 = vmatmul.mubr.f32.gmra.mxu0 %v4158_v62  ;;  %v1517_v4 = vrot.slane %v1503_v49, 2  ;;  %v1528_v39 = vrot.slane %v1502_v21, 2  ;;  %v1730_v41 = vld [vmem:[%s4395_s5 + $0x5b0] sm:$0xff]  ;;  %v1729_v7 = vld [vmem:[%s4395_s5 + $0x5a8] sm:$0xff]  ;;  %v1728_v21 = vld [vmem:[%s4395_s5 + $0x5a0] sm:$0xff] }
 0x27c   :  { %1943 = vmatpush1.msra.mxu0 %v1694_v28  ;;  %v4181_v13 = vsel %vm63_vm1, %v1510_v15, %v1514_v35  ;;  %v1505_v0 = vsel %vm55_vm0, %v1500_v20, %v1504_v58  ;;  %v1530_v17 = vrot.slane %v1504_v58, 2  ;;  %v1735_v15 = vld [vmem:[%s4395_s5 + $0x5d8] sm:$0xff]  ;;  %v1733_v20 = vld [vmem:[%s4395_s5 + $0x5c8] sm:$0xff]  ;;  %v1726_v56 = vld [vmem:[%s4395_s5 + $0x590] sm:$0xff] }
 0x27d   :  { %1944 = vmatprep.subr.mxu0 %v1693_v48  ;;  %1834 = vmatprep.mubr.f32.mxu0 %v4181_v13  ;;  %v1520_v57 = vrot.slane %v1505_v0, 2  ;;  %v1518_v33 = vsel %vm63_vm1, %v1516_v52, %v1517_v4  ;;  %v1529_v18 = vsel %vm63_vm1, %v1517_v4, %v1528_v39  ;;  %v1727_v28 = vld [vmem:[%s4395_s5 + $0x598] sm:$0xff]  ;;  %v1725_v48 = vld [vmem:[%s4395_s5 + $0x588] sm:$0xff]  ;;  %v1724_v58 = vld [vmem:[%s4395_s5 + $0x580] sm:$0xff]  ;;  %v1478_v39 = vrot.slane %v4116_v14, 2 }
 0x27e   :  { %1945 = vmatpush1.msra.mxu0 %v1692_v53  ;;  %v1723_v49 = vld [vmem:[%s4395_s5 + $0x578] sm:$0xff]  ;;  %v1722_v53 = vld [vmem:[%s4395_s5 + $0x570] sm:$0xff]  ;;  %v1721_v44 = vld [vmem:[%s4395_s5 + $0x568] sm:$0xff]  ;;  %v1523_v14 = vrot.slane %v4195_v22, 2 }
 0x27f   :  { %1946 = vmatprep.subr.mxu0 %v1691_v16  ;;  %v1521_v9 = vsel %vm63_vm1, %v1519_v19, %v1520_v57  ;;  %1835 = vmatmul.mubr.f32.gmra.mxu0 %v4195_v22  ;;  %v1531_v54 = vsel %vm63_vm1, %v1520_v57, %v1530_v17  ;;  %v1720_v16 = vld [vmem:[%s4395_s5 + $0x560] sm:$0xff]  ;;  %v1719_v0 = vld [vmem:[%s4395_s5 + $0x558] sm:$0xff]  ;;  %v1718_v4 = vld [vmem:[%s4395_s5 + $0x550] sm:$0xff] }
 0x280   :  { %1947 = vmatpush1.msra.mxu0 %v1690_v5  ;;  %1917 = vmatprep.mubr.f32.mxu1 %v1521_v9  ;;  %v1717_v5 = vld [vmem:[%s4395_s5 + $0x548] sm:$0xff]  ;;  %v1716_v19 = vld [vmem:[%s4395_s5 + $0x540] sm:$0xff]  ;;  %v1715_v57 = vld [vmem:[%s4395_s5 + $0x538] sm:$0xff] }
 0x281   :  { %1948 = vmatprep.subr.mxu0 %v1689_v27  ;;  %1918 = vmatmul.mubr.f32.gmra.mxu1 %v1518_v33  ;;  %v1714_v17 = vld [vmem:[%s4395_s5 + $0x530] sm:$0xff]  ;;  %v1712_v27 = vld [vmem:[%s4395_s5 + $0x520] sm:$0xff]  ;;  %v1711_v52 = vld [vmem:[%s4395_s5 + $0x518] sm:$0xff] }
 0x282   :  { %1949 = vmatpush1.msra.mxu0 %v1688_v60  ;;  %1923 = vmatprep.mubr.f32.mxu1 %v1531_v54  ;;  %v1710_v9 = vld [vmem:[%s4395_s5 + $0x510] sm:$0xff]  ;;  %v1470_v60 = vrot.slane %v4083_v61, 2  ;;  %v1709_v33 = vld [vmem:[%s4395_s5 + $0x508] sm:$0xff]  ;;  %v1471_v54 = vrot.slane %v4078_v1, 2  ;;  %v1476_v61 = vrot.slane %v4102_v32, 2  ;;  %v1534_v32 = vrot.slane %v1514_v35, 2 }
 0x283   :  { %1950 = vmatprep.subr.mxu0 %v1687_v47  ;;  %1994 = vmatprep.mubr.f32.mxu0 %v1475_v34  ;;  %v1708_v47 = vld [vmem:[%s4395_s5 + $0x500] sm:$0xff]  ;;  %v1479_v34 = vsel %vm63_vm1, %v1474_v8, %v1478_v39  ;;  %v1532_v8 = vrot.slane %v1512_v43, 2 }
 0x284   :  { %1951 = vmatpush1.msra.mxu0 %v1686_v50  ;;  %v1472_v50 = vsel %vm63_vm1, %v1470_v60, %v1471_v54  ;;  %v1477_v1 = vsel %vm63_vm1, %v1471_v54, %v1476_v61 }
 0x285   :  { %1952 = vmatprep.subr.mxu0 %v1685_v59  ;;  %1924 = vmatmul.mubr.f32.gmra.mxu1 %v1529_v18  ;;  %v1526_v59 = vrot.slane %v4181_v13, 2  ;;  %v1522_v13 = vrot.slane %v4158_v62, 2  ;;  %v1533_v22 = vsel %vm63_vm1, %v1523_v14, %v1532_v8  ;;  %v1740_v62 = vld [vmem:[%s4397_s6] sm:$0x3] }
 0x286   :  { %1953 = vmatpush1.msra.mxu0 %v1684_v45  ;;  %v1525_v45 = vrot.slane %v4149_v23, 2  ;;  %v1745_v43 = vrot.slane %v1740_v62, %v2841_v6 }
 0x287   :  { %1954 = vmatprep.subr.mxu0 %v1683_v2  ;;  %v1524_v3 = vsel %vm63_vm1, %v1522_v13, %v1523_v14  ;;  %v1535_v23 = vsel %vm63_vm1, %v1526_v59, %v1534_v32 }
 0x288   :  { %1955 = vmatpush1.msra.mxu0 %v1682_v31  ;;  %v1527_v18 = vsel %vm63_vm1, %v1525_v45, %v1526_v59 }
 0x289   :  { %1956 = vmatprep.subr.mxu0 %v1681_v37 }
 0x28a   :  { %1957 = vmatpush1.msra.mxu0 %v1680_v38 }
 0x28b   :  { %1958 = vmatprep.subr.mxu0 %v1679_v42 }
 0x28c   :  { %1959 = vmatpush1.msra.mxu0 %v1678_v55 }
 0x28d   :  { %1960 = vmatprep.subr.mxu0 %v1677_v30  ;;  %v1749_v30 = vrot.slane %v1740_v62, %v2846_v10 }
 0x28e   :  { %1961 = vmatpush1.msra.mxu0 %v1676_v63 }
 0x28f   :  { %1962 = vmatprep.subr.mxu0 %v1739_v26 }
 0x290   :  { %1963 = vmatpush2.msra.mxu0 %v1738_v12 }
 0x291   :  { %1964 = vmatprep.subr.mxu0 %v1737_v24 }
 0x292   :  { %1965 = vmatpush2.msra.mxu0 %v1736_v46 }
 0x293   :  { %1966 = vmatprep.subr.mxu0 %v1735_v15 }
 0x294   :  { %1967 = vmatpush2.msra.mxu0 %v1734_v36 }
 0x295   :  { %1968 = vmatprep.subr.mxu0 %v1733_v20 }
 0x296   :  { %1969 = vmatpush2.msra.mxu0 %v1732_v29 }
 0x297   :  { %1970 = vmatprep.subr.mxu0 %v1731_v40 }
 0x298   :  { %1971 = vmatpush2.msra.mxu0 %v1730_v41 }
 0x299   :  { %1972 = vmatprep.subr.mxu0 %v1729_v7 }
 0x29a   :  { %1973 = vmatpush2.msra.mxu0 %v1728_v21 }
 0x29b   :  { %1974 = vmatprep.subr.mxu0 %v1727_v28 }
 0x29c   :  { %1975 = vmatpush2.msra.mxu0 %v1726_v56 }
 0x29d   :  { %1976 = vmatprep.subr.mxu0 %v1725_v48 }
 0x29e   :  { %1977 = vmatpush2.msra.mxu0 %v1724_v58 }
 0x29f   :  { %1978 = vmatprep.subr.mxu0 %v1723_v49 }
 0x2a0   :  { %1979 = vmatpush2.msra.mxu0 %v1722_v53 }
 0x2a1   :  { %1980 = vmatprep.subr.mxu0 %v1721_v44 }
 0x2a2   :  { %1981 = vmatpush2.msra.mxu0 %v1720_v16 }
 0x2a3   :  { %1982 = vmatprep.subr.mxu0 %v1719_v0 }
 0x2a4   :  { %1983 = vmatpush2.msra.mxu0 %v1718_v4 }
 0x2a5   :  { %1984 = vmatprep.subr.mxu0 %v1717_v5 }
 0x2a6   :  { %1985 = vmatpush2.msra.mxu0 %v1716_v19 }
 0x2a7   :  { %1986 = vmatprep.subr.mxu0 %v1715_v57 }
 0x2a8   :  { %1987 = vmatpush2.msra.mxu0 %v1714_v17 }
 0x2a9   :  { %1988 = vmatprep.subr.mxu0 %v1713_v11 }
 0x2aa   :  { %1989 = vmatpush2.msra.mxu0 %v1712_v27 }
 0x2ab   :  { %1990 = vmatprep.subr.mxu0 %v1711_v52 }
 0x2ac   :  { %1991 = vmatpush2.msra.mxu0 %v1710_v9 }
 0x2ad   :  { %1992 = vmatprep.subr.mxu0 %v1709_v33 }
 0x2ae   :  { %1993 = vmatpush2.msra.mxu0 %v1708_v47 }
 0x2af   :  { %1995 = vmatmul.mubr.f32.vlgmr.msra.gmra.mxu0 %v1472_v50 }
 0x2b0   :  { %2000 = vmatprep.mubr.f32.mxu0 %v1479_v34 }
 0x2b3   :  { %2001 = vmatmul.mubr.f32.gmra.mxu0 %v1477_v1 }
 0x2b4   :  { %2006 = vmatprep.mubr.f32.mxu0 %v1527_v18 }
 0x2b7   :  { %2007 = vmatmul.mubr.f32.gmra.mxu0 %v1524_v3 }
 0x2b8   :  { %2012 = vmatprep.mubr.f32.mxu0 %v1535_v23 }
 0x2bb   :  { %2013 = vmatmul.mubr.f32.gmra.mxu0 %v1533_v22 }
 0x32f   :  { %v1818_v2 = vpop.f32.mrf.mxu0 }
 0x330   :  { %v1819_v26 = vadd.f32 %v1818_v2, %v1745_v43 }
 0x331   :  { %v1820_v31 = vpop.f32.mrf.mxu0 }
 0x332   :  { %v1907_v35 = vpop.f32.mrf.mxu1  ;;  %v1821_v24 = vadd.f32 %v1820_v31, %v1749_v30 }
 0x333   :  { %v1824_v37 = vpop.f32.mrf.mxu0  ;;  %v1908_v20 = vadd.f32 %v1907_v35, %v1819_v26 }
 0x334   :  { %v1909_v42 = vpop.f32.mrf.mxu1  ;;  %v1825_v36 = vadd.f32 %v1824_v37, %v1745_v43 }
 0x335   :  { %v1826_v25 = vpop.f32.mrf.mxu0  ;;  %v1910_v41 = vadd.f32 %v1909_v42, %v1821_v24 }
 0x336   :  { %v1913_v55 = vpop.f32.mrf.mxu1  ;;  %v1827_v40 = vadd.f32 %v1826_v25, %v1749_v30 }
 0x337   :  { %v1914_v56 = vadd.f32 %v1913_v55, %v1825_v36 }
 0x338   :  { %v1915_v12 = vpop.f32.mrf.mxu1 }
 0x339   :  { %v1916_v49 = vadd.f32 %v1915_v12, %v1827_v40 }
 0x33b   :  { %v1830_v38 = vpop.f32.mrf.mxu0 }
 0x33c   :  { %v1831_v10 = vadd.f32 %v1830_v38, %v1745_v43 }
 0x33d   :  { %v1832_v51 = vpop.f32.mrf.mxu0 }
 0x33e   :  { %v1833_v4 = vadd.f32 %v1832_v51, %v1749_v30 }
 0x33f   :  { %v1836_v63 = vpop.f32.mrf.mxu0 }
 0x340   :  { %v1837_v11 = vadd.f32 %v1836_v63, %v1745_v43 }
 0x341   :  { %v1919_v46 = vpop.f32.mrf.mxu1  ;;  %v1838_v15 = vpop.f32.mrf.mxu0 }
 0x342   :  { %v1920_v5 = vadd.f32 %v1919_v46, %v1831_v10  ;;  %v1839_v47 = vadd.f32 %v1838_v15, %v1749_v30 }
 0x343   :  { %v1921_v21 = vpop.f32.mrf.mxu1 }
 0x344   :  { %v1922_v27 = vadd.f32 %v1921_v21, %v1833_v4 }
 0x345   :  { %v1925_v16 = vpop.f32.mrf.mxu1 }
 0x346   :  { %v1926_v39 = vadd.f32 %v1925_v16, %v1837_v11 }
 0x347   :  { %v1927_v60 = vpop.f32.mrf.mxu1 }
 0x348   :  { %v1928_v59 = vadd.f32 %v1927_v60, %v1839_v47 }
 0x36f   :  { %v1996_v29 = vpop.f32.mrf.mxu0 }
 0x370   :  { %v1997_v7 = vadd.f32 %v1996_v29, %v1908_v20 }
 0x371   :  { %v1998_v28 = vpop.f32.mrf.mxu0 }
 0x372   :  { %v2019_v48 = vmax.f32 %v1997_v7, 0.0  ;;  %v1999_v6 = vadd.f32 %v1998_v28, %v1910_v41 }
 0x373   :  { %v2002_v58 = vpop.f32.mrf.mxu0 }
 0x374   :  { %2027 = vst [vmem:[%s4398_s7] sm:$0xff] %v2019_v48  ;;  %v2020_v53 = vmax.f32 %v1999_v6, 0.0  ;;  %v2003_v44 = vadd.f32 %v2002_v58, %v1914_v56 }
 0x375   :  { %v2004_v0 = vpop.f32.mrf.mxu0 }
 0x376   :  { %2028 = vst [vmem:[%s4398_s7 + $0x8] sm:$0xff] %v2020_v53  ;;  %v2021_v19 = vmax.f32 %v2003_v44, 0.0  ;;  %v2005_v57 = vadd.f32 %v2004_v0, %v1916_v49 }
 0x377   :  { %v2008_v17 = vpop.f32.mrf.mxu0 }
 0x378   :  { %2029 = vst [vmem:[%s4398_s7 + $0x10] sm:$0xff] %v2021_v19  ;;  %v2022_v52 = vmax.f32 %v2005_v57, 0.0  ;;  %v2009_v9 = vadd.f32 %v2008_v17, %v1920_v5 }
 0x379   :  { %v2010_v33 = vpop.f32.mrf.mxu0 }
 0x37a   :  { %2030 = vst [vmem:[%s4398_s7 + $0x18] sm:$0xff] %v2022_v52  ;;  %v2023_v54 = vmax.f32 %v2009_v9, 0.0  ;;  %v2011_v50 = vadd.f32 %v2010_v33, %v1922_v27 }
 0x37b   :  { %v2014_v61 = vpop.f32.mrf.mxu0 }
 0x37c   :  { %2043 = vst [vmem:[%s4398_s7 + $0x20] sm:$0xff] %v2023_v54  ;;  %v2024_v34 = vmax.f32 %v2011_v50, 0.0  ;;  %v2015_v45 = vadd.f32 %v2014_v61, %v1926_v39 }
 0x37d   :  { %v2016_v14 = vpop.f32.mrf.mxu0 }
 0x37e   :  { %2044 = vst [vmem:[%s4398_s7 + $0x28] sm:$0xff] %v2024_v34  ;;  %v2025_v1 = vmax.f32 %v2015_v45, 0.0  ;;  %v2017_v18 = vadd.f32 %v2016_v14, %v1928_v59 }
 0x380   :  { %2045 = vst [vmem:[%s4398_s7 + $0x30] sm:$0xff] %v2025_v1  ;;  %v2026_v32 = vmax.f32 %v2017_v18, 0.0 }
 0x382   :  { %2046 = vst [vmem:[%s4398_s7 + $0x38] sm:$0xff] %v2026_v32 }

</bundles_post_ra>
